<compile_context>
chip_gen: v7x
topology: tpu7x:2x2x1
jax: 0.10.0
libtpu: 0.0.40
codegen_flags: <defaults>
</compile_context>

<pallas_src>
import jax
import jax.numpy as jnp
from jax.experimental import pallas as pl
from jax.experimental.pallas import tpu as pltpu

_BN_EPS = 1e-5
_NEG_SLOPE = 0.2


def _round_up(n: int, m: int) -> int:
    return ((n + m - 1) // m) * m


def _epilogue(y, scale, bias, activation):
    y = y * scale + bias
    if activation == "leaky_relu":
        return jnp.where(y >= 0, y, _NEG_SLOPE * y)
    if activation == "sigmoid":
        return jax.nn.sigmoid(y)
    return y


def _make_fused_kernel(activation: str, multi_k: bool):
    """Tiled matmul with fused per-output-channel scale/bias + activation.

    multi_k=False: single K step -> no scratch accumulator, direct epilogue+store.
    multi_k=True : K is split across the last grid axis -> f32 VMEM accumulator.
    """
    if not multi_k:

        def kernel(a_ref, w_ref, scale_ref, bias_ref, o_ref):
            y = jnp.dot(a_ref[...], w_ref[...], preferred_element_type=jnp.float32)
            o_ref[...] = _epilogue(y, scale_ref[...], bias_ref[...],
                                   activation).astype(o_ref.dtype)

        return kernel

    def kernel(a_ref, w_ref, scale_ref, bias_ref, o_ref, acc_ref):
        @pl.when(pl.program_id(2) == 0)
        def _():
            acc_ref[...] = jnp.zeros_like(acc_ref)

        acc_ref[...] += jnp.dot(
            a_ref[...], w_ref[...], preferred_element_type=jnp.float32
        )

        @pl.when(pl.program_id(2) == pl.num_programs(2) - 1)
        def _():
            o_ref[...] = _epilogue(acc_ref[...], scale_ref[...], bias_ref[...],
                                   activation).astype(o_ref.dtype)

    return kernel


def _pick_tiles(M, K, N, budget_bytes=12 << 20):
    """Largest (8,128)-aligned tiles that keep double-buffered VMEM under budget."""
    tm = min(256, _round_up(M, 8))
    tn = min(256, _round_up(N, 128))
    kp = _round_up(K, 128)
    tk = 128
    for cand in (4096, 2048, 1024, 512, 256, 128):
        c = min(cand, kp)
        # 2x-buffered A and W input tiles, 2x-buffered output tile, f32 acc.
        vmem = 4 * (2 * (tm * c + c * tn) + 3 * tm * tn)
        if vmem <= budget_bytes:
            tk = c
            break
    return tm, tk, tn


def _matmul_scale_bias_act(a, w, scale, bias, activation):
    """act((M,K) @ (K,N) * scale[N] + bias[N]) via a single Pallas MXU kernel."""
    M, K = a.shape
    K2, N = w.shape
    assert K == K2

    tm, tk, tn = _pick_tiles(M, K, N)
    Mp, Kp, Np = _round_up(M, tm), _round_up(K, tk), _round_up(N, tn)

    # Zero-pad to tile multiples: zero K-padding adds nothing to the sum;
    # padded rows/cols are sliced off afterwards. Keeps every block lane-dense.
    a_p = jnp.pad(a, ((0, Mp - M), (0, Kp - K)))
    w_p = jnp.pad(w, ((0, Kp - K), (0, Np - N)))
    scale_p = jnp.pad(scale.reshape(1, N).astype(a.dtype), ((0, 0), (0, Np - N)))
    bias_p = jnp.pad(bias.reshape(1, N).astype(a.dtype), ((0, 0), (0, Np - N)))

    gm, gn, gk = Mp // tm, Np // tn, Kp // tk

    if gk == 1:
        grid = (gm, gn)
        in_specs = [
            pl.BlockSpec((tm, tk), lambda i, j: (i, 0)),
            pl.BlockSpec((tk, tn), lambda i, j: (0, j)),
            pl.BlockSpec((1, tn), lambda i, j: (0, j)),
            pl.BlockSpec((1, tn), lambda i, j: (0, j)),
        ]
        out_specs = pl.BlockSpec((tm, tn), lambda i, j: (i, j))
        scratch = []
        dims = ("parallel", "parallel")
        kernel = _make_fused_kernel(activation, multi_k=False)
    else:
        grid = (gm, gn, gk)
        in_specs = [
            pl.BlockSpec((tm, tk), lambda i, j, k: (i, k)),
            pl.BlockSpec((tk, tn), lambda i, j, k: (k, j)),
            pl.BlockSpec((1, tn), lambda i, j, k: (0, j)),
            pl.BlockSpec((1, tn), lambda i, j, k: (0, j)),
        ]
        out_specs = pl.BlockSpec((tm, tn), lambda i, j, k: (i, j))
        scratch = [pltpu.VMEM((tm, tn), jnp.float32)]
        dims = ("parallel", "parallel", "arbitrary")
        kernel = _make_fused_kernel(activation, multi_k=True)

    out_p = pl.pallas_call(
        kernel,
        out_shape=jax.ShapeDtypeStruct((Mp, Np), a.dtype),
        grid_spec=pltpu.PrefetchScalarGridSpec(
            num_scalar_prefetch=0,
            grid=grid,
            in_specs=in_specs,
            out_specs=out_specs,
            scratch_shapes=scratch,
        ),
        compiler_params=pltpu.CompilerParams(
            dimension_semantics=dims,
            vmem_limit_bytes=32 << 20,
        ),
    )(a_p, w_p, scale_p, bias_p)

    return out_p[:M, :N]


def _im2col_nhwc(x, kh, kw, stride, pad):
    """NHWC -> (B*OH*OW, kh*kw*C) patches (kh, kw, C ordering)."""
    B, H, W, C = x.shape
    OH = (H + 2 * pad - kh) // stride + 1
    OW = (W + 2 * pad - kw) // stride + 1
    xp = jnp.pad(x, ((0, 0), (pad, pad), (pad, pad), (0, 0)))
    cols = []
    for i in range(kh):
        for j in range(kw):
            cols.append(
                xp[
                    :,
                    i : i + stride * (OH - 1) + 1 : stride,
                    j : j + stride * (OW - 1) + 1 : stride,
                    :,
                ]
            )
    patches = jnp.stack(cols, axis=3)  # (B, OH, OW, kh*kw, C)
    return patches.reshape(B * OH * OW, kh * kw * C), OH, OW


def conv_bn_act_nhwc(x, w, scale, bias, *, stride, pad, activation):
    """Conv2d(bias=False) + folded BatchNorm affine + activation, NHWC in/out."""
    B, H, W_, C = x.shape
    OC, IC, KH, KW = w.shape
    assert IC == C
    a, OH, OW = _im2col_nhwc(x, KH, KW, stride, pad)
    # PyTorch weight (OC, IC, KH, KW) -> (KH*KW*IC, OC) matching patch ordering.
    wmat = w.transpose(2, 3, 1, 0).reshape(KH * KW * IC, OC)
    out = _matmul_scale_bias_act(a, wmat, scale, bias, activation)
    return out.reshape(B, OH, OW, OC)


def _fold_bn(gamma, beta, mean, var, eps=_BN_EPS):
    scale = gamma / jnp.sqrt(var + eps)
    return scale, beta - mean * scale


def cifar_discriminator_forward(x, params):
    # TODO(synk): BatchNorm is applied in eval mode (running statistics folded
    # into the matmul epilogue); training-mode batch statistics not implemented.
    s1, b1 = _fold_bn(params["g1"], params["b1"], params["m1"], params["v1"])
    s2, b2 = _fold_bn(params["g2"], params["b2"], params["m2"], params["v2"])
    s3, b3 = _fold_bn(params["g3"], params["b3"], params["m3"], params["v3"])

    h = x.transpose(0, 2, 3, 1)  # NCHW -> NHWC once; stay NHWC between layers
    h = conv_bn_act_nhwc(h, params["w1"], s1, b1, stride=2, pad=1,
                         activation="leaky_relu")
    h = conv_bn_act_nhwc(h, params["w2"], s2, b2, stride=2, pad=1,
                         activation="leaky_relu")
    h = conv_bn_act_nhwc(h, params["w3"], s3, b3, stride=2, pad=1,
                         activation="leaky_relu")
    one = jnp.ones((1,), x.dtype)
    zero = jnp.zeros((1,), x.dtype)
    h = conv_bn_act_nhwc(h, params["w4"], one, zero, stride=1, pad=0,
                         activation="sigmoid")
    # output.view(-1, 1).squeeze(1): (B, 1, 1, 1) -> (B,)
    return h.reshape(-1)


def reference_forward(x, params):
    """Pure-JAX reference mirroring the PyTorch module (eval-mode BN)."""

    def conv(h, w, stride, pad):
        return jax.lax.conv_general_dilated(
            h, w, window_strides=(stride, stride),
            padding=((pad, pad), (pad, pad)),
            dimension_numbers=("NCHW", "OIHW", "NCHW"),
            precision=jax.lax.Precision.HIGHEST,
        )

    def bn(h, g, b, m, v, eps=_BN_EPS):
        inv = (g / jnp.sqrt(v + eps))[None, :, None, None]
        return (h - m[None, :, None, None]) * inv + b[None, :, None, None]

    def lrelu(h):
        return jnp.where(h >= 0, h, _NEG_SLOPE * h)

    h = lrelu(bn(conv(x, params["w1"], 2, 1),
                 params["g1"], params["b1"], params["m1"], params["v1"]))
    h = lrelu(bn(conv(h, params["w2"], 2, 1),
                 params["g2"], params["b2"], params["m2"], params["v2"]))
    h = lrelu(bn(conv(h, params["w3"], 2, 1),
                 params["g3"], params["b3"], params["m3"], params["v3"]))
    h = jax.nn.sigmoid(conv(h, params["w4"], 1, 0))
    return h.reshape(-1)


def _init_params(key):
    ks = jax.random.split(key, 7)

    def w(k, oc, ic):
        return 0.02 * jax.random.normal(k, (oc, ic, 4, 4), jnp.float32)

    def bnp(k, c):
        k1, k2, k3, k4 = jax.random.split(k, 4)
        gamma = 1.0 + 0.02 * jax.random.normal(k1, (c,), jnp.float32)
        beta = 0.02 * jax.random.normal(k2, (c,), jnp.float32)
        mean = 0.1 * jax.random.normal(k3, (c,), jnp.float32)
        var = jax.random.uniform(k4, (c,), jnp.float32, minval=0.5, maxval=1.5)
        return gamma, beta, mean, var

    g1, b1, m1, v1 = bnp(ks[4], 64)
    g2, b2, m2, v2 = bnp(ks[5], 128)
    g3, b3, m3, v3 = bnp(ks[6], 256)
    return dict(
        w1=w(ks[0], 64, 3), w2=w(ks[1], 128, 64),
        w3=w(ks[2], 256, 128), w4=w(ks[3], 1, 256),
        g1=g1, b1=b1, m1=m1, v1=v1,
        g2=g2, b2=b2, m2=m2, v2=v2,
        g3=g3, b3=b3, m3=m3, v3=v3,
    )


if __name__ == "__main__":
    key = jax.random.PRNGKey(0)
    kx, kp = jax.random.split(key)
    B = 2
    x = jax.random.normal(kx, (B, 3, 32, 32), dtype=jnp.float32)  # CIFAR NCHW
    params = _init_params(kp)

    fwd = jax.jit(cifar_discriminator_forward)
    out = jax.block_until_ready(fwd(x, params))

    ref = reference_forward(x, params)
    assert out.shape == (B,), out.shape
    assert jnp.allclose(out, ref, atol=1e-3, rtol=1e-3), (out, ref)

    print("KERNEL_OK")
</pallas_src>

<mosaic_0001>
module attributes {stable_mosaic.version = 11 : i64} {
  func.func @kernel(%arg0: i32, %arg1: i32, %arg2: memref<256x128xf32, #tpu.memory_space<vmem>>, %arg3: memref<128x128xf32, #tpu.memory_space<vmem>>, %arg4: memref<1x128xf32, #tpu.memory_space<vmem>>, %arg5: memref<1x128xf32, #tpu.memory_space<vmem>>, %arg6: memref<256x128xf32, #tpu.memory_space<vmem>>) attributes {dimension_semantics = [#tpu.dimension_semantics<parallel>, #tpu.dimension_semantics<parallel>], iteration_bounds = array<i64: 2, 1>, scalar_prefetch = 0 : i64, scratch_operands = 0 : i64, tpu.core_type = #tpu.core_type<tc>, window_params = [{transform_indices = @transform_0, window_bounds = array<i64: 256, 128>}, {transform_indices = @transform_1, window_bounds = array<i64: 128, 128>}, {transform_indices = @transform_2, window_bounds = array<i64: 1, 128>}, {transform_indices = @transform_3, window_bounds = array<i64: 1, 128>}, {transform_indices = @transform_4, window_bounds = array<i64: 256, 128>}]} {
    %c0 = arith.constant 0 : index
    %c0_0 = arith.constant 0 : index
    %0 = vector.load %arg2[%c0, %c0_0] : memref<256x128xf32, #tpu.memory_space<vmem>>, vector<256x128xf32>
    %c0_1 = arith.constant 0 : index
    %c0_2 = arith.constant 0 : index
    %1 = vector.load %arg3[%c0_1, %c0_2] : memref<128x128xf32, #tpu.memory_space<vmem>>, vector<128x128xf32>
    %cst = arith.constant dense<0.000000e+00> : vector<256x128xf32>
    %2 = tpu.matmul %0, %1, %cst {dimension_numbers = #tpu.dot_dimension_numbers<[1], [0], [0], [1], [0, 0, 1, 1], [], []>} : vector<256x128xf32>, vector<128x128xf32>, vector<256x128xf32> -> vector<256x128xf32>
    %c0_3 = arith.constant 0 : index
    %c0_4 = arith.constant 0 : index
    %3 = vector.load %arg4[%c0_3, %c0_4] : memref<1x128xf32, #tpu.memory_space<vmem>>, vector<1x128xf32>
    %c0_5 = arith.constant 0 : index
    %c0_6 = arith.constant 0 : index
    %4 = vector.load %arg5[%c0_5, %c0_6] : memref<1x128xf32, #tpu.memory_space<vmem>>, vector<1x128xf32>
    %5 = vector.broadcast %3 : vector<1x128xf32> to vector<256x128xf32>
    %6 = arith.mulf %2, %5 : vector<256x128xf32>
    %7 = vector.broadcast %4 : vector<1x128xf32> to vector<256x128xf32>
    %8 = arith.addf %6, %7 : vector<256x128xf32>
    %cst_7 = arith.constant 0.000000e+00 : f32
    %9 = vector.broadcast %cst_7 : f32 to vector<256x128xf32>
    %10 = arith.cmpf oge, %8, %9 : vector<256x128xf32>
    %cst_8 = arith.constant 2.000000e-01 : f32
    %11 = vector.broadcast %cst_8 : f32 to vector<256x128xf32>
    %12 = arith.mulf %11, %8 : vector<256x128xf32>
    %13 = arith.select %10, %8, %12 : vector<256x128xi1>, vector<256x128xf32>
    %c0_9 = arith.constant 0 : index
    %c0_10 = arith.constant 0 : index
    %14 = vector.load %arg6[%c0_9, %c0_10] : memref<256x128xf32, #tpu.memory_space<vmem>>, vector<256x128xf32>
    tpu.vector_store %arg6[%c0_9, %c0_10], %13 {strides = array<i32>} : memref<256x128xf32, #tpu.memory_space<vmem>>, vector<256x128xf32>,
    return
  }
  func.func @transform_0(%arg0: i32, %arg1: i32) -> (i32, i32) {
    %c0_i32 = arith.constant 0 : i32
    %c0_i32_0 = arith.constant 0 : i32
    return %arg0, %c0_i32 : i32, i32
  }
  func.func @transform_1(%arg0: i32, %arg1: i32) -> (i32, i32) {
    %c0_i32 = arith.constant 0 : i32
    %c0_i32_0 = arith.constant 0 : i32
    return %c0_i32, %arg1 : i32, i32
  }
  func.func @transform_2(%arg0: i32, %arg1: i32) -> (i32, i32) {
    %c0_i32 = arith.constant 0 : i32
    %c0_i32_0 = arith.constant 0 : i32
    return %c0_i32, %arg1 : i32, i32
  }
  func.func @transform_3(%arg0: i32, %arg1: i32) -> (i32, i32) {
    %c0_i32 = arith.constant 0 : i32
    %c0_i32_0 = arith.constant 0 : i32
    return %c0_i32, %arg1 : i32, i32
  }
  func.func @transform_4(%arg0: i32, %arg1: i32) -> (i32, i32) {
    %c0_i32 = arith.constant 0 : i32
    return %arg0, %arg1 : i32, i32
  }
}

module attributes {stable_mosaic.version = 11 : i64} {
  func.func @kernel(%arg0: i32, %arg1: i32, %arg2: memref<128x1024xf32, #tpu.memory_space<vmem>>, %arg3: memref<1024x128xf32, #tpu.memory_space<vmem>>, %arg4: memref<1x128xf32, #tpu.memory_space<vmem>>, %arg5: memref<1x128xf32, #tpu.memory_space<vmem>>, %arg6: memref<128x128xf32, #tpu.memory_space<vmem>>) attributes {dimension_semantics = [#tpu.dimension_semantics<parallel>, #tpu.dimension_semantics<parallel>], iteration_bounds = array<i64: 1, 1>, scalar_prefetch = 0 : i64, scratch_operands = 0 : i64, tpu.core_type = #tpu.core_type<tc>, window_params = [{transform_indices = @transform_0, window_bounds = array<i64: 128, 1024>}, {transform_indices = @transform_1, window_bounds = array<i64: 1024, 128>}, {transform_indices = @transform_2, window_bounds = array<i64: 1, 128>}, {transform_indices = @transform_3, window_bounds = array<i64: 1, 128>}, {transform_indices = @transform_4, window_bounds = array<i64: 128, 128>}]} {
    %c0 = arith.constant 0 : index
    %c0_0 = arith.constant 0 : index
    %0 = vector.load %arg2[%c0, %c0_0] : memref<128x1024xf32, #tpu.memory_space<vmem>>, vector<128x1024xf32>
    %c0_1 = arith.constant 0 : index
    %c0_2 = arith.constant 0 : index
    %1 = vector.load %arg3[%c0_1, %c0_2] : memref<1024x128xf32, #tpu.memory_space<vmem>>, vector<1024x128xf32>
    %cst = arith.constant dense<0.000000e+00> : vector<128x128xf32>
    %2 = tpu.matmul %0, %1, %cst {dimension_numbers = #tpu.dot_dimension_numbers<[1], [0], [0], [1], [0, 0, 1, 1], [], []>} : vector<128x1024xf32>, vector<1024x128xf32>, vector<128x128xf32> -> vector<128x128xf32>
    %c0_3 = arith.constant 0 : index
    %c0_4 = arith.constant 0 : index
    %3 = vector.load %arg4[%c0_3, %c0_4] : memref<1x128xf32, #tpu.memory_space<vmem>>, vector<1x128xf32>
    %c0_5 = arith.constant 0 : index
    %c0_6 = arith.constant 0 : index
    %4 = vector.load %arg5[%c0_5, %c0_6] : memref<1x128xf32, #tpu.memory_space<vmem>>, vector<1x128xf32>
    %5 = vector.broadcast %3 : vector<1x128xf32> to vector<128x128xf32>
    %6 = arith.mulf %2, %5 : vector<128x128xf32>
    %7 = vector.broadcast %4 : vector<1x128xf32> to vector<128x128xf32>
    %8 = arith.addf %6, %7 : vector<128x128xf32>
    %cst_7 = arith.constant 0.000000e+00 : f32
    %9 = vector.broadcast %cst_7 : f32 to vector<128x128xf32>
    %10 = arith.cmpf oge, %8, %9 : vector<128x128xf32>
    %cst_8 = arith.constant 2.000000e-01 : f32
    %11 = vector.broadcast %cst_8 : f32 to vector<128x128xf32>
    %12 = arith.mulf %11, %8 : vector<128x128xf32>
    %13 = arith.select %10, %8, %12 : vector<128x128xi1>, vector<128x128xf32>
    %c0_9 = arith.constant 0 : index
    %c0_10 = arith.constant 0 : index
    %14 = vector.load %arg6[%c0_9, %c0_10] : memref<128x128xf32, #tpu.memory_space<vmem>>, vector<128x128xf32>
    tpu.vector_store %arg6[%c0_9, %c0_10], %13 {strides = array<i32>} : memref<128x128xf32, #tpu.memory_space<vmem>>, vector<128x128xf32>,
    return
  }
  func.func @transform_0(%arg0: i32, %arg1: i32) -> (i32, i32) {
    %c0_i32 = arith.constant 0 : i32
    %c0_i32_0 = arith.constant 0 : i32
    return %arg0, %c0_i32 : i32, i32
  }
  func.func @transform_1(%arg0: i32, %arg1: i32) -> (i32, i32) {
    %c0_i32 = arith.constant 0 : i32
    %c0_i32_0 = arith.constant 0 : i32
    return %c0_i32, %arg1 : i32, i32
  }
  func.func @transform_2(%arg0: i32, %arg1: i32) -> (i32, i32) {
    %c0_i32 = arith.constant 0 : i32
    %c0_i32_0 = arith.constant 0 : i32
    return %c0_i32, %arg1 : i32, i32
  }
  func.func @transform_3(%arg0: i32, %arg1: i32) -> (i32, i32) {
    %c0_i32 = arith.constant 0 : i32
    %c0_i32_0 = arith.constant 0 : i32
    return %c0_i32, %arg1 : i32, i32
  }
  func.func @transform_4(%arg0: i32, %arg1: i32) -> (i32, i32) {
    %c0_i32 = arith.constant 0 : i32
    return %arg0, %arg1 : i32, i32
  }
}

module attributes {stable_mosaic.version = 11 : i64} {
  func.func @kernel(%arg0: i32, %arg1: i32, %arg2: memref<32x2048xf32, #tpu.memory_space<vmem>>, %arg3: memref<2048x256xf32, #tpu.memory_space<vmem>>, %arg4: memref<1x256xf32, #tpu.memory_space<vmem>>, %arg5: memref<1x256xf32, #tpu.memory_space<vmem>>, %arg6: memref<32x256xf32, #tpu.memory_space<vmem>>) attributes {dimension_semantics = [#tpu.dimension_semantics<parallel>, #tpu.dimension_semantics<parallel>], iteration_bounds = array<i64: 1, 1>, scalar_prefetch = 0 : i64, scratch_operands = 0 : i64, tpu.core_type = #tpu.core_type<tc>, window_params = [{transform_indices = @transform_0, window_bounds = array<i64: 32, 2048>}, {transform_indices = @transform_1, window_bounds = array<i64: 2048, 256>}, {transform_indices = @transform_2, window_bounds = array<i64: 1, 256>}, {transform_indices = @transform_3, window_bounds = array<i64: 1, 256>}, {transform_indices = @transform_4, window_bounds = array<i64: 32, 256>}]} {
    %c0 = arith.constant 0 : index
    %c0_0 = arith.constant 0 : index
    %0 = vector.load %arg2[%c0, %c0_0] : memref<32x2048xf32, #tpu.memory_space<vmem>>, vector<32x2048xf32>
    %c0_1 = arith.constant 0 : index
    %c0_2 = arith.constant 0 : index
    %1 = vector.load %arg3[%c0_1, %c0_2] : memref<2048x256xf32, #tpu.memory_space<vmem>>, vector<2048x256xf32>
    %cst = arith.constant dense<0.000000e+00> : vector<32x256xf32>
    %2 = tpu.matmul %0, %1, %cst {dimension_numbers = #tpu.dot_dimension_numbers<[1], [0], [0], [1], [0, 0, 1, 1], [], []>} : vector<32x2048xf32>, vector<2048x256xf32>, vector<32x256xf32> -> vector<32x256xf32>
    %c0_3 = arith.constant 0 : index
    %c0_4 = arith.constant 0 : index
    %3 = vector.load %arg4[%c0_3, %c0_4] : memref<1x256xf32, #tpu.memory_space<vmem>>, vector<1x256xf32>
    %c0_5 = arith.constant 0 : index
    %c0_6 = arith.constant 0 : index
    %4 = vector.load %arg5[%c0_5, %c0_6] : memref<1x256xf32, #tpu.memory_space<vmem>>, vector<1x256xf32>
    %5 = vector.broadcast %3 : vector<1x256xf32> to vector<32x256xf32>
    %6 = arith.mulf %2, %5 : vector<32x256xf32>
    %7 = vector.broadcast %4 : vector<1x256xf32> to vector<32x256xf32>
    %8 = arith.addf %6, %7 : vector<32x256xf32>
    %cst_7 = arith.constant 0.000000e+00 : f32
    %9 = vector.broadcast %cst_7 : f32 to vector<32x256xf32>
    %10 = arith.cmpf oge, %8, %9 : vector<32x256xf32>
    %cst_8 = arith.constant 2.000000e-01 : f32
    %11 = vector.broadcast %cst_8 : f32 to vector<32x256xf32>
    %12 = arith.mulf %11, %8 : vector<32x256xf32>
    %13 = arith.select %10, %8, %12 : vector<32x256xi1>, vector<32x256xf32>
    %c0_9 = arith.constant 0 : index
    %c0_10 = arith.constant 0 : index
    %14 = vector.load %arg6[%c0_9, %c0_10] : memref<32x256xf32, #tpu.memory_space<vmem>>, vector<32x256xf32>
    tpu.vector_store %arg6[%c0_9, %c0_10], %13 {strides = array<i32>} : memref<32x256xf32, #tpu.memory_space<vmem>>, vector<32x256xf32>,
    return
  }
  func.func @transform_0(%arg0: i32, %arg1: i32) -> (i32, i32) {
    %c0_i32 = arith.constant 0 : i32
    %c0_i32_0 = arith.constant 0 : i32
    return %arg0, %c0_i32 : i32, i32
  }
  func.func @transform_1(%arg0: i32, %arg1: i32) -> (i32, i32) {
    %c0_i32 = arith.constant 0 : i32
    %c0_i32_0 = arith.constant 0 : i32
    return %c0_i32, %arg1 : i32, i32
  }
  func.func @transform_2(%arg0: i32, %arg1: i32) -> (i32, i32) {
    %c0_i32 = arith.constant 0 : i32
    %c0_i32_0 = arith.constant 0 : i32
    return %c0_i32, %arg1 : i32, i32
  }
  func.func @transform_3(%arg0: i32, %arg1: i32) -> (i32, i32) {
    %c0_i32 = arith.constant 0 : i32
    %c0_i32_0 = arith.constant 0 : i32
    return %c0_i32, %arg1 : i32, i32
  }
  func.func @transform_4(%arg0: i32, %arg1: i32) -> (i32, i32) {
    %c0_i32 = arith.constant 0 : i32
    return %arg0, %arg1 : i32, i32
  }
}

module attributes {stable_mosaic.version = 11 : i64} {
  func.func @kernel(%arg0: i32, %arg1: i32, %arg2: memref<8x4096xf32, #tpu.memory_space<vmem>>, %arg3: memref<4096x128xf32, #tpu.memory_space<vmem>>, %arg4: memref<1x128xf32, #tpu.memory_space<vmem>>, %arg5: memref<1x128xf32, #tpu.memory_space<vmem>>, %arg6: memref<8x128xf32, #tpu.memory_space<vmem>>) attributes {dimension_semantics = [#tpu.dimension_semantics<parallel>, #tpu.dimension_semantics<parallel>], iteration_bounds = array<i64: 1, 1>, scalar_prefetch = 0 : i64, scratch_operands = 0 : i64, tpu.core_type = #tpu.core_type<tc>, window_params = [{transform_indices = @transform_0, window_bounds = array<i64: 8, 4096>}, {transform_indices = @transform_1, window_bounds = array<i64: 4096, 128>}, {transform_indices = @transform_2, window_bounds = array<i64: 1, 128>}, {transform_indices = @transform_3, window_bounds = array<i64: 1, 128>}, {transform_indices = @transform_4, window_bounds = array<i64: 8, 128>}]} {
    %c0 = arith.constant 0 : index
    %c0_0 = arith.constant 0 : index
    %0 = vector.load %arg2[%c0, %c0_0] : memref<8x4096xf32, #tpu.memory_space<vmem>>, vector<8x4096xf32>
    %c0_1 = arith.constant 0 : index
    %c0_2 = arith.constant 0 : index
    %1 = vector.load %arg3[%c0_1, %c0_2] : memref<4096x128xf32, #tpu.memory_space<vmem>>, vector<4096x128xf32>
    %cst = arith.constant dense<0.000000e+00> : vector<8x128xf32>
    %2 = tpu.matmul %0, %1, %cst {dimension_numbers = #tpu.dot_dimension_numbers<[1], [0], [0], [1], [0, 0, 1, 1], [], []>} : vector<8x4096xf32>, vector<4096x128xf32>, vector<8x128xf32> -> vector<8x128xf32>
    %c0_3 = arith.constant 0 : index
    %c0_4 = arith.constant 0 : index
    %3 = vector.load %arg4[%c0_3, %c0_4] : memref<1x128xf32, #tpu.memory_space<vmem>>, vector<1x128xf32>
    %c0_5 = arith.constant 0 : index
    %c0_6 = arith.constant 0 : index
    %4 = vector.load %arg5[%c0_5, %c0_6] : memref<1x128xf32, #tpu.memory_space<vmem>>, vector<1x128xf32>
    %5 = vector.broadcast %3 : vector<1x128xf32> to vector<8x128xf32>
    %6 = arith.mulf %2, %5 : vector<8x128xf32>
    %7 = vector.broadcast %4 : vector<1x128xf32> to vector<8x128xf32>
    %8 = arith.addf %6, %7 : vector<8x128xf32>
    %9 = arith.negf %8 : vector<8x128xf32>
    %10 = math.exp %9 : vector<8x128xf32>
    %cst_7 = arith.constant 1.000000e+00 : f32
    %11 = vector.broadcast %cst_7 : f32 to vector<8x128xf32>
    %12 = arith.addf %11, %10 : vector<8x128xf32>
    %13 = arith.divf %11, %12 : vector<8x128xf32>
    %c0_8 = arith.constant 0 : index
    %c0_9 = arith.constant 0 : index
    %14 = vector.load %arg6[%c0_8, %c0_9] : memref<8x128xf32, #tpu.memory_space<vmem>>, vector<8x128xf32>
    tpu.vector_store %arg6[%c0_8, %c0_9], %13 {strides = array<i32>} : memref<8x128xf32, #tpu.memory_space<vmem>>, vector<8x128xf32>,
    return
  }
  func.func @transform_0(%arg0: i32, %arg1: i32) -> (i32, i32) {
    %c0_i32 = arith.constant 0 : i32
    %c0_i32_0 = arith.constant 0 : i32
    return %arg0, %c0_i32 : i32, i32
  }
  func.func @transform_1(%arg0: i32, %arg1: i32) -> (i32, i32) {
    %c0_i32 = arith.constant 0 : i32
    %c0_i32_0 = arith.constant 0 : i32
    return %c0_i32, %arg1 : i32, i32
  }
  func.func @transform_2(%arg0: i32, %arg1: i32) -> (i32, i32) {
    %c0_i32 = arith.constant 0 : i32
    %c0_i32_0 = arith.constant 0 : i32
    return %c0_i32, %arg1 : i32, i32
  }
  func.func @transform_3(%arg0: i32, %arg1: i32) -> (i32, i32) {
    %c0_i32 = arith.constant 0 : i32
    %c0_i32_0 = arith.constant 0 : i32
    return %c0_i32, %arg1 : i32, i32
  }
  func.func @transform_4(%arg0: i32, %arg1: i32) -> (i32, i32) {
    %c0_i32 = arith.constant 0 : i32
    return %arg0, %arg1 : i32, i32
  }
}

</mosaic_0001>

<bundles_post_ra>
// kernel: cifar_discriminator_forward.4
= control target key start
LH: loop header
LB: loop body
LE: loop exit
PB: predicated region body
PF: predicated region fallthrough
CT: control target
= control target key end

     0   :  { %s1124_s15 = smov 0   ;;  %s1126_s16 = smov 0   ;;  %s1354_s0 = inlined_call_operand.vmem [shape: f32[512,128], index: 0, kind: input, shape index: {}]   ;;  %s1355_s1 = inlined_call_operand.vmem [shape: f32[128,128], index: 1, kind: input, shape index: {}]   ;;  %s1356_s2 = inlined_call_operand.vmem [shape: f32[1,128], index: 2, kind: input, shape index: {}]   ;;  %s1357_s3 = inlined_call_operand.vmem [shape: f32[1,128], index: 3, kind: input, shape index: {}]   ;;  %s1358_s4 = inlined_call_operand.vmem [shape: f32[512,128], index: 4, kind: output, shape index: {}]  }
   0x1   :  { %s1128_s17 = smov 0  }
   0x2 LB: > { %s26_s18 = sadd.s32 1, %s1093_s16  ;;  %p866_p0 = scmp.ge.s32.totalorder %s1097_s17, 1  ;;  %s1097_s17 = sphi %s1128_s17, %s14_s17   ;;  %s1093_s16 = sphi %s1126_s16, %s1360_s16   ;;  %s1089_s15 = sphi %s1124_s15, %s1359_s15  }
   0x3   : > { %p28_p1 = scmp.ge.s32.totalorder %s26_s18, 2  ;;  %p202_p2 = scmp.lt.s32.totalorder %s1097_s17, 3 }
   0x5   : > { %s1362_s18 = smov (%p28_p1, %s26_s18), 0  ;;  %p203_p3 = pnand %p866_p0, %p202_p2 }
   0x6   : > { %v298_v0 = vld [vmem:[%s1355_s1] sm:$0xff] (!%p203_p3)  ;;  %v299_v1 = vld [vmem:[%s1355_s1 + $0x8] sm:$0xff] (!%p203_p3)  ;;  %v300_v2 = vld [vmem:[%s1355_s1 + $0x10] sm:$0xff] (!%p203_p3)  ;;  %s867_s25 = sshll.u32 (!%p203_p3), %s1089_s15, 5 }
   0x7   : > { %206 = sbr.rel (%p203_p3) target bundleno = 299 (0x12b), region = 36  ;;  %v1003_v3 = vpack.c.bf16 (!%p203_p3), %v299_v1, %v298_v0  ;;  %v301_v4 = vld [vmem:[%s1355_s1 + $0x18] sm:$0xff] (!%p203_p3)  ;;  %p242_p4 = scmp.lt.s32.totalorder (!%p203_p3), %s867_s25, 63  ;;  %v302_v6 = vld [vmem:[%s1355_s1 + $0x20] sm:$0xff] (!%p203_p3)  ;;  %v303_v7 = vld [vmem:[%s1355_s1 + $0x28] sm:$0xff] (!%p203_p3) }
   0x8   : > { %v1007_v5 = vpack.c.bf16 (!%p203_p3), %v301_v4, %v300_v2  ;;  %v1011_v8 = vpack.c.bf16 (!%p203_p3), %v303_v7, %v302_v6  ;;  %v304_v9 = vld [vmem:[%s1355_s1 + $0x30] sm:$0xff] (!%p203_p3)  ;;  %v305_v10 = vld [vmem:[%s1355_s1 + $0x38] sm:$0xff] (!%p203_p3)  ;;  %v306_v14 = vld [vmem:[%s1355_s1 + $0x40] sm:$0xff] (!%p203_p3) }
   0x9   : > { %1004 = vmatprep.subr.bf16.mxu0 (!%p203_p3), %v1003_v3  ;;  %1035 = vmatprep.subr.bf16.mxu1 (!%p203_p3), %v1003_v3  ;;  %v1015_v13 = vpack.c.bf16 (!%p203_p3), %v305_v10, %v304_v9  ;;  %v307_v15 = vld [vmem:[%s1355_s1 + $0x48] sm:$0xff] (!%p203_p3)  ;;  %v308_v17 = vld [vmem:[%s1355_s1 + $0x50] sm:$0xff] (!%p203_p3)  ;;  %v309_v18 = vld [vmem:[%s1355_s1 + $0x58] sm:$0xff] (!%p203_p3) }
   0xa   : > { %1006 = vmatpush3.bf16.msra.mxu0 (!%p203_p3), %v1003_v3  ;;  %1043 = vmatpush3.bf16.msra.mxu1 (!%p203_p3), %v1003_v3  ;;  %v1019_v16 = vpack.c.bf16 (!%p203_p3), %v307_v15, %v306_v14  ;;  %v1023_v19 = vpack.c.bf16 (!%p203_p3), %v309_v18, %v308_v17  ;;  %v310_v20 = vld [vmem:[%s1355_s1 + $0x60] sm:$0xff] (!%p203_p3)  ;;  %v311_v21 = vld [vmem:[%s1355_s1 + $0x68] sm:$0xff] (!%p203_p3)  ;;  %v312_v23 = vld [vmem:[%s1355_s1 + $0x70] sm:$0xff] (!%p203_p3) }
   0xb   : > { %1008 = vmatprep.subr.bf16.mxu0 (!%p203_p3), %v1007_v5  ;;  %1036 = vmatprep.subr.bf16.mxu1 (!%p203_p3), %v1007_v5  ;;  %v1027_v22 = vpack.c.bf16 (!%p203_p3), %v311_v21, %v310_v20  ;;  %v313_v24 = vld [vmem:[%s1355_s1 + $0x78] sm:$0xff] (!%p203_p3)  ;;  %v1235_v56 = vld [vmem:[%s1356_s2] ss:$0 sm:$0xff] (!%p203_p3) }
   0xc   : > { %v1031_v25 = vpack.c.bf16 (!%p203_p3), %v313_v24, %v312_v23  ;;  %v1240_v58 = vld [vmem:[%s1357_s3] ss:$0 sm:$0xff] (!%p203_p3) }
   0xe   : > { %s1364_s25 = smov (!%p242_p4, %s867_s25), 63  ;;  %1010 = vmatpush3.bf16.msra.mxu0 %v1007_v5  ;;  %1044 = vmatpush3.bf16.msra.mxu1 %v1007_v5 }
   0xf   : > { %s868_s6 = sshll.u32 %s1364_s25, 3  ;;  %1012 = vmatprep.subr.bf16.mxu0 %v1011_v8  ;;  %1037 = vmatprep.subr.bf16.mxu1 %v1011_v8 }
  0x10   : > { %s1174_s13 = scalar_lea.vmem %s1354_s0, %s868_s6  ;;  %s1255_s15 = scalar_lea.vmem %s1358_s4, %s868_s6 }
  0x11   : > { %v266_v11 = vld [vmem:[%s1174_s13] sm:$0xff]  ;;  %v267_v26 = vld [vmem:[%s1174_s13 + $0x8] sm:$0xff]  ;;  %v268_v28 = vld [vmem:[%s1174_s13 + $0x10] sm:$0xff] }
  0x12   : > { %v282_v12 = vld [vmem:[%s1174_s13 + $0x80] sm:$0xff]  ;;  %955 = vmatprep.mubr.f32.mxu0 %v266_v11  ;;  %1014 = vmatpush3.bf16.msra.mxu0 %v1011_v8  ;;  %v283_v27 = vld [vmem:[%s1174_s13 + $0x88] sm:$0xff]  ;;  %v284_v29 = vld [vmem:[%s1174_s13 + $0x90] sm:$0xff] }
  0x13   : > { %979 = vmatprep.mubr.f32.mxu1 %v282_v12  ;;  %1045 = vmatpush3.bf16.msra.mxu1 %v1011_v8  ;;  %v269_v30 = vld [vmem:[%s1174_s13 + $0x18] sm:$0xff]  ;;  %v270_v32 = vld [vmem:[%s1174_s13 + $0x20] sm:$0xff]  ;;  %v271_v34 = vld [vmem:[%s1174_s13 + $0x28] sm:$0xff] }
  0x14   : > { %1016 = vmatprep.subr.bf16.mxu0 %v1015_v13  ;;  %1038 = vmatprep.subr.bf16.mxu1 %v1015_v13  ;;  %v285_v31 = vld [vmem:[%s1174_s13 + $0x98] sm:$0xff]  ;;  %v286_v33 = vld [vmem:[%s1174_s13 + $0xa0] sm:$0xff]  ;;  %v287_v35 = vld [vmem:[%s1174_s13 + $0xa8] sm:$0xff] }
  0x15   : > { %v272_v36 = vld [vmem:[%s1174_s13 + $0x30] sm:$0xff]  ;;  %v273_v38 = vld [vmem:[%s1174_s13 + $0x38] sm:$0xff]  ;;  %v274_v40 = vld [vmem:[%s1174_s13 + $0x40] sm:$0xff] }
  0x16   : > { %1018 = vmatpush3.bf16.msra.mxu0 %v1015_v13  ;;  %v288_v37 = vld [vmem:[%s1174_s13 + $0xb0] sm:$0xff]  ;;  %v289_v39 = vld [vmem:[%s1174_s13 + $0xb8] sm:$0xff]  ;;  %v290_v41 = vld [vmem:[%s1174_s13 + $0xc0] sm:$0xff] }
  0x17   : > { %1046 = vmatpush3.bf16.msra.mxu1 %v1015_v13  ;;  %1020 = vmatprep.subr.bf16.mxu0 %v1019_v16  ;;  %v275_v42 = vld [vmem:[%s1174_s13 + $0x48] sm:$0xff]  ;;  %v276_v44 = vld [vmem:[%s1174_s13 + $0x50] sm:$0xff]  ;;  %v277_v46 = vld [vmem:[%s1174_s13 + $0x58] sm:$0xff] }
  0x18   : > { %1039 = vmatprep.subr.bf16.mxu1 %v1019_v16  ;;  %v291_v43 = vld [vmem:[%s1174_s13 + $0xc8] sm:$0xff]  ;;  %v292_v45 = vld [vmem:[%s1174_s13 + $0xd0] sm:$0xff]  ;;  %v293_v47 = vld [vmem:[%s1174_s13 + $0xd8] sm:$0xff] }
  0x19   : > { %v278_v48 = vld [vmem:[%s1174_s13 + $0x60] sm:$0xff]  ;;  %v279_v50 = vld [vmem:[%s1174_s13 + $0x68] sm:$0xff]  ;;  %v280_v52 = vld [vmem:[%s1174_s13 + $0x70] sm:$0xff] }
  0x1a   : > { %1022 = vmatpush3.bf16.msra.mxu0 %v1019_v16  ;;  %v294_v49 = vld [vmem:[%s1174_s13 + $0xe0] sm:$0xff]  ;;  %v295_v51 = vld [vmem:[%s1174_s13 + $0xe8] sm:$0xff]  ;;  %v296_v53 = vld [vmem:[%s1174_s13 + $0xf0] sm:$0xff] }
  0x1b   : > { %1047 = vmatpush3.bf16.msra.mxu1 %v1019_v16  ;;  %1024 = vmatprep.subr.bf16.mxu0 %v1023_v19  ;;  %v281_v54 = vld [vmem:[%s1174_s13 + $0x78] sm:$0xff] }
  0x1c   : > { %1040 = vmatprep.subr.bf16.mxu1 %v1023_v19  ;;  %v297_v55 = vld [vmem:[%s1174_s13 + $0xf8] sm:$0xff] }
  0x1e   : > { %1026 = vmatpush3.bf16.msra.mxu0 %v1023_v19 }
  0x1f   : > { %1048 = vmatpush3.bf16.msra.mxu1 %v1023_v19  ;;  %1028 = vmatprep.subr.bf16.mxu0 %v1027_v22 }
  0x20   : > { %1041 = vmatprep.subr.bf16.mxu1 %v1027_v22 }
  0x22   : > { %1030 = vmatpush3.bf16.msra.mxu0 %v1027_v22 }
  0x23   : > { %1049 = vmatpush3.bf16.msra.mxu1 %v1027_v22  ;;  %1032 = vmatprep.subr.bf16.mxu0 %v1031_v25 }
  0x24   : > { %1042 = vmatprep.subr.bf16.mxu1 %v1031_v25 }
  0x26   : > { %1034 = vmatpush3.bf16.msra.mxu0 %v1031_v25 }
  0x27   : > { %1050 = vmatpush3.bf16.msra.mxu1 %v1031_v25 }
  0x29   : > { %956 = vmatmul.mubr.f32.vlgmr.msra.gmra.mrb[0].mxu0 %v267_v26 }
  0x2a   : > { %980 = vmatmul.mubr.f32.vlgmr.msra.gmra.mrb[0].mxu1 %v283_v27  ;;  %958 = vmatprep.mubr.f32.mxu0 %v268_v28 }
  0x2b   : > { %982 = vmatprep.mubr.f32.mxu1 %v284_v29 }
  0x2d   : > { %959 = vmatmul.mubr.f32.gmra.mrb[2].mxu0 %v269_v30 }
  0x2e   : > { %983 = vmatmul.mubr.f32.gmra.mrb[2].mxu1 %v285_v31  ;;  %961 = vmatprep.mubr.f32.mxu0 %v270_v32 }
  0x2f   : > { %985 = vmatprep.mubr.f32.mxu1 %v286_v33 }
  0x31   : > { %962 = vmatmul.mubr.f32.gmra.mrb[4].mxu0 %v271_v34 }
  0x32   : > { %986 = vmatmul.mubr.f32.gmra.mrb[4].mxu1 %v287_v35  ;;  %964 = vmatprep.mubr.f32.mxu0 %v272_v36 }
  0x33   : > { %988 = vmatprep.mubr.f32.mxu1 %v288_v37 }
  0x35   : > { %965 = vmatmul.mubr.f32.gmra.mrb[6].mxu0 %v273_v38 }
  0x36   : > { %989 = vmatmul.mubr.f32.gmra.mrb[6].mxu1 %v289_v39  ;;  %967 = vmatprep.mubr.f32.mxu0 %v274_v40 }
  0x37   : > { %991 = vmatprep.mubr.f32.mxu1 %v290_v41 }
  0x39   : > { %968 = vmatmul.mubr.f32.gmra.mrb[8].mxu0 %v275_v42 }
  0x3a   : > { %992 = vmatmul.mubr.f32.gmra.mrb[8].mxu1 %v291_v43  ;;  %970 = vmatprep.mubr.f32.mxu0 %v276_v44 }
  0x3b   : > { %994 = vmatprep.mubr.f32.mxu1 %v292_v45 }
  0x3d   : > { %971 = vmatmul.mubr.f32.gmra.mrb[10].mxu0 %v277_v46 }
  0x3e   : > { %995 = vmatmul.mubr.f32.gmra.mrb[10].mxu1 %v293_v47  ;;  %973 = vmatprep.mubr.f32.mxu0 %v278_v48 }
  0x3f   : > { %997 = vmatprep.mubr.f32.mxu1 %v294_v49 }
  0x41   : > { %974 = vmatmul.mubr.f32.gmra.mrb[12].mxu0 %v279_v50 }
  0x42   : > { %998 = vmatmul.mubr.f32.gmra.mrb[12].mxu1 %v295_v51  ;;  %976 = vmatprep.mubr.f32.mxu0 %v280_v52 }
  0x43   : > { %1000 = vmatprep.mubr.f32.mxu1 %v296_v53 }
  0x45   : > { %977 = vmatmul.mubr.f32.gmra.mrb[14].mxu0 %v281_v54 }
  0x46   : > { %1001 = vmatmul.mubr.f32.gmra.mrb[14].mxu1 %v297_v55 }
  0xfc   : > { %v957_v57 = vpop.f32.mrb[0].mxu0 }
  0xfd   : > { %v981_v59 = vpop.f32.mrb[0].mxu1  ;;  %v548_v60 = vmul.f32 %v957_v57, %v1235_v56  ;;  %v380_v62 = vpop.f32.mrb[1].mxu0 }
  0xfe   : > { %v564_v61 = vmul.f32 %v981_v59, %v1235_v56  ;;  %v460_v63 = vpop.f32.mrb[1].mxu1  ;;  %v547_v0 = vmul.f32 %v1235_v56, %v380_v62 }
  0xff   : > { %v563_v1 = vmul.f32 %v1235_v56, %v460_v63  ;;  %v586_v2 = vadd.f32 %v1240_v58, %v548_v60 }
 0x100   : > { %v602_v3 = vadd.f32 %v1240_v58, %v564_v61  ;;  %v585_v4 = vadd.f32 %v1240_v58, %v547_v0  ;;  %v960_v6 = vpop.f32.mrb[2].mxu0 }
 0x101   : > { %v601_v5 = vadd.f32 %v1240_v58, %v563_v1  ;;  %v984_v7 = vpop.f32.mrb[2].mxu1  ;;  %vm618_vm0 = vcmp.ge.f32.partialorder %v586_v2, 0.0  ;;  %v650_v8 = vmul.f32 0.2, %v586_v2  ;;  %v550_v14 = vmul.f32 %v960_v6, %v1235_v56  ;;  %v390_v16 = vpop.f32.mrb[3].mxu0 }
 0x102   : > { %vm634_vm1 = vcmp.ge.f32.partialorder %v602_v3, 0.0  ;;  %v666_v9 = vmul.f32 0.2, %v602_v3  ;;  %vm617_vm2 = vcmp.ge.f32.partialorder %v585_v4, 0.0  ;;  %v649_v10 = vmul.f32 0.2, %v585_v4 }
 0x103   : > { %vm633_vm3 = vcmp.ge.f32.partialorder %v601_v5, 0.0  ;;  %v665_v11 = vmul.f32 0.2, %v601_v5  ;;  %v682_v12 = vsel %vm618_vm0, %v586_v2, %v650_v8  ;;  %v566_v15 = vmul.f32 %v984_v7, %v1235_v56  ;;  %v470_v17 = vpop.f32.mrb[3].mxu1 }
 0x104   : > { %v698_v13 = vsel %vm634_vm1, %v602_v3, %v666_v9  ;;  %714 = vst [vmem:[%s1255_s15 + $0x8] sm:$0xff] %v682_v12  ;;  %v681_v18 = vsel %vm617_vm2, %v585_v4, %v649_v10  ;;  %v549_v20 = vmul.f32 %v1235_v56, %v390_v16  ;;  %v565_v21 = vmul.f32 %v1235_v56, %v470_v17  ;;  %v963_v22 = vpop.f32.mrb[4].mxu0 }
 0x105   : > { %730 = vst [vmem:[%s1255_s15 + $0x88] sm:$0xff] %v698_v13  ;;  %v697_v19 = vsel %vm633_vm3, %v601_v5, %v665_v11  ;;  %v987_v23 = vpop.f32.mrb[4].mxu1  ;;  %713 = vst [vmem:[%s1255_s15] sm:$0xff] %v681_v18  ;;  %v588_v24 = vadd.f32 %v1240_v58, %v550_v14  ;;  %v604_v25 = vadd.f32 %v1240_v58, %v566_v15  ;;  %v400_v28 = vpop.f32.mrb[5].mxu0 }
 0x106   : > { %729 = vst [vmem:[%s1255_s15 + $0x80] sm:$0xff] %v697_v19  ;;  %v552_v26 = vmul.f32 %v963_v22, %v1235_v56  ;;  %v568_v27 = vmul.f32 %v987_v23, %v1235_v56  ;;  %v480_v29 = vpop.f32.mrb[5].mxu1  ;;  %v587_v30 = vadd.f32 %v1240_v58, %v549_v20  ;;  %v603_v31 = vadd.f32 %v1240_v58, %v565_v21 }
 0x107   : > { %v551_v32 = vmul.f32 %v1235_v56, %v400_v28  ;;  %v567_v33 = vmul.f32 %v1235_v56, %v480_v29  ;;  %vm620_vm4 = vcmp.ge.f32.partialorder %v588_v24, 0.0  ;;  %v652_v34 = vmul.f32 0.2, %v588_v24 }
 0x108   : > { %vm636_vm5 = vcmp.ge.f32.partialorder %v604_v25, 0.0  ;;  %v668_v35 = vmul.f32 0.2, %v604_v25  ;;  %vm619_vm6 = vcmp.ge.f32.partialorder %v587_v30, 0.0  ;;  %v651_v36 = vmul.f32 0.2, %v587_v30 }
 0x109   : > { %vm635_vm7 = vcmp.ge.f32.partialorder %v603_v31, 0.0  ;;  %v667_v37 = vmul.f32 0.2, %v603_v31  ;;  %v684_v38 = vsel %vm620_vm4, %v588_v24, %v652_v34  ;;  %v590_v40 = vadd.f32 %v1240_v58, %v552_v26  ;;  %v966_v42 = vpop.f32.mrb[6].mxu0  ;;  %v990_v43 = vpop.f32.mrb[6].mxu1 }
 0x10a   : > { %v700_v39 = vsel %vm636_vm5, %v604_v25, %v668_v35  ;;  %v606_v41 = vadd.f32 %v1240_v58, %v568_v27  ;;  %716 = vst [vmem:[%s1255_s15 + $0x18] sm:$0xff] %v684_v38  ;;  %v683_v44 = vsel %vm619_vm6, %v587_v30, %v651_v36  ;;  %v589_v46 = vadd.f32 %v1240_v58, %v551_v32  ;;  %v410_v48 = vpop.f32.mrb[7].mxu0  ;;  %v490_v49 = vpop.f32.mrb[7].mxu1 }
 0x10b   : > { %732 = vst [vmem:[%s1255_s15 + $0x98] sm:$0xff] %v700_v39  ;;  %v699_v45 = vsel %vm635_vm7, %v603_v31, %v667_v37  ;;  %v605_v47 = vadd.f32 %v1240_v58, %v567_v33  ;;  %715 = vst [vmem:[%s1255_s15 + $0x10] sm:$0xff] %v683_v44  ;;  %vm622_vm8 = vcmp.ge.f32.partialorder %v590_v40, 0.0  ;;  %v654_v50 = vmul.f32 0.2, %v590_v40 }
 0x10c   : > { %731 = vst [vmem:[%s1255_s15 + $0x90] sm:$0xff] %v699_v45  ;;  %vm638_vm9 = vcmp.ge.f32.partialorder %v606_v41, 0.0  ;;  %v670_v51 = vmul.f32 0.2, %v606_v41  ;;  %vm621_vm10 = vcmp.ge.f32.partialorder %v589_v46, 0.0  ;;  %v554_v57 = vmul.f32 %v966_v42, %v1235_v56  ;;  %v969_v60 = vpop.f32.mrb[8].mxu0 }
 0x10d   : > { %v653_v52 = vmul.f32 0.2, %v589_v46  ;;  %vm637_vm11 = vcmp.ge.f32.partialorder %v605_v47, 0.0  ;;  %v669_v53 = vmul.f32 0.2, %v605_v47  ;;  %v686_v54 = vsel %vm622_vm8, %v590_v40, %v654_v50  ;;  %v993_v61 = vpop.f32.mrb[8].mxu1 }
 0x10e   : > { %v702_v55 = vsel %vm638_vm9, %v606_v41, %v670_v51  ;;  %v570_v59 = vmul.f32 %v990_v43, %v1235_v56  ;;  %718 = vst [vmem:[%s1255_s15 + $0x28] sm:$0xff] %v686_v54  ;;  %v553_v0 = vmul.f32 %v1235_v56, %v410_v48  ;;  %v569_v1 = vmul.f32 %v1235_v56, %v490_v49  ;;  %v420_v2 = vpop.f32.mrb[9].mxu0  ;;  %v500_v3 = vpop.f32.mrb[9].mxu1 }
 0x10f   : > { %734 = vst [vmem:[%s1255_s15 + $0xa8] sm:$0xff] %v702_v55  ;;  %v685_v62 = vsel %vm621_vm10, %v589_v46, %v653_v52  ;;  %v701_v63 = vsel %vm637_vm11, %v605_v47, %v669_v53  ;;  %v592_v4 = vadd.f32 %v1240_v58, %v554_v57  ;;  %v556_v6 = vmul.f32 %v969_v60, %v1235_v56 }
 0x110   : > { %717 = vst [vmem:[%s1255_s15 + $0x20] sm:$0xff] %v685_v62  ;;  %733 = vst [vmem:[%s1255_s15 + $0xa0] sm:$0xff] %v701_v63  ;;  %v608_v5 = vadd.f32 %v1240_v58, %v570_v59  ;;  %v572_v7 = vmul.f32 %v993_v61, %v1235_v56  ;;  %v591_v8 = vadd.f32 %v1240_v58, %v553_v0  ;;  %v972_v12 = vpop.f32.mrb[10].mxu0 }
 0x111   : > { %v607_v9 = vadd.f32 %v1240_v58, %v569_v1  ;;  %v555_v10 = vmul.f32 %v1235_v56, %v420_v2  ;;  %v571_v11 = vmul.f32 %v1235_v56, %v500_v3  ;;  %v996_v13 = vpop.f32.mrb[10].mxu1  ;;  %vm624_vm12 = vcmp.ge.f32.partialorder %v592_v4, 0.0  ;;  %v430_v22 = vpop.f32.mrb[11].mxu0 }
 0x112   : > { %v656_v14 = vmul.f32 0.2, %v592_v4  ;;  %vm640_vm13 = vcmp.ge.f32.partialorder %v608_v5, 0.0  ;;  %v672_v15 = vmul.f32 0.2, %v608_v5  ;;  %vm623_vm14 = vcmp.ge.f32.partialorder %v591_v8, 0.0 }
 0x113   : > { %v655_v16 = vmul.f32 0.2, %v591_v8  ;;  %vm639_vm15 = vcmp.ge.f32.partialorder %v607_v9, 0.0  ;;  %v671_v17 = vmul.f32 0.2, %v607_v9  ;;  %v594_v20 = vadd.f32 %v1240_v58, %v556_v6  ;;  %v510_v23 = vpop.f32.mrb[11].mxu1 }
 0x114   : > { %v688_v18 = vsel %vm624_vm12, %v592_v4, %v656_v14  ;;  %v704_v19 = vsel %vm640_vm13, %v608_v5, %v672_v15  ;;  %v610_v21 = vadd.f32 %v1240_v58, %v572_v7  ;;  %v593_v26 = vadd.f32 %v1240_v58, %v555_v10  ;;  %v975_v28 = vpop.f32.mrb[12].mxu0 }
 0x115   : > { %720 = vst [vmem:[%s1255_s15 + $0x38] sm:$0xff] %v688_v18  ;;  %736 = vst [vmem:[%s1255_s15 + $0xb8] sm:$0xff] %v704_v19  ;;  %v687_v24 = vsel %vm623_vm14, %v591_v8, %v655_v16  ;;  %v703_v25 = vsel %vm639_vm15, %v607_v9, %v671_v17  ;;  %v609_v27 = vadd.f32 %v1240_v58, %v571_v11  ;;  %v999_v29 = vpop.f32.mrb[12].mxu1  ;;  %vm626_vm0 = vcmp.ge.f32.partialorder %v594_v20, 0.0  ;;  %v440_v38 = vpop.f32.mrb[13].mxu0 }
 0x116   : > { %719 = vst [vmem:[%s1255_s15 + $0x30] sm:$0xff] %v687_v24  ;;  %735 = vst [vmem:[%s1255_s15 + $0xb0] sm:$0xff] %v703_v25  ;;  %v658_v30 = vmul.f32 0.2, %v594_v20  ;;  %vm642_vm1 = vcmp.ge.f32.partialorder %v610_v21, 0.0  ;;  %vm625_vm2 = vcmp.ge.f32.partialorder %v593_v26, 0.0  ;;  %v558_v36 = vmul.f32 %v972_v12, %v1235_v56 }
 0x117   : > { %v674_v31 = vmul.f32 0.2, %v610_v21  ;;  %v657_v32 = vmul.f32 0.2, %v593_v26  ;;  %vm641_vm3 = vcmp.ge.f32.partialorder %v609_v27, 0.0  ;;  %v574_v37 = vmul.f32 %v996_v13, %v1235_v56  ;;  %v520_v39 = vpop.f32.mrb[13].mxu1 }
 0x118   : > { %v673_v33 = vmul.f32 0.2, %v609_v27  ;;  %v690_v34 = vsel %vm626_vm0, %v594_v20, %v658_v30  ;;  %v557_v42 = vmul.f32 %v1235_v56, %v430_v22  ;;  %v573_v43 = vmul.f32 %v1235_v56, %v510_v23  ;;  %v978_v44 = vpop.f32.mrb[14].mxu0 }
 0x119   : > { %v706_v35 = vsel %vm642_vm1, %v610_v21, %v674_v31  ;;  %722 = vst [vmem:[%s1255_s15 + $0x48] sm:$0xff] %v690_v34  ;;  %v689_v40 = vsel %vm625_vm2, %v593_v26, %v657_v32  ;;  %v1002_v45 = vpop.f32.mrb[14].mxu1  ;;  %v596_v46 = vadd.f32 %v1240_v58, %v558_v36  ;;  %v612_v47 = vadd.f32 %v1240_v58, %v574_v37  ;;  %v450_v50 = vpop.f32.mrb[15].mxu0 }
 0x11a   : > { %738 = vst [vmem:[%s1255_s15 + $0xc8] sm:$0xff] %v706_v35  ;;  %v705_v41 = vsel %vm641_vm3, %v609_v27, %v673_v33  ;;  %721 = vst [vmem:[%s1255_s15 + $0x40] sm:$0xff] %v689_v40  ;;  %v560_v48 = vmul.f32 %v975_v28, %v1235_v56  ;;  %v576_v49 = vmul.f32 %v999_v29, %v1235_v56  ;;  %v530_v51 = vpop.f32.mrb[15].mxu1 }
 0x11b   : > { %737 = vst [vmem:[%s1255_s15 + $0xc0] sm:$0xff] %v705_v41  ;;  %v595_v52 = vadd.f32 %v1240_v58, %v557_v42  ;;  %v611_v53 = vadd.f32 %v1240_v58, %v573_v43  ;;  %v559_v54 = vmul.f32 %v1235_v56, %v440_v38  ;;  %v575_v55 = vmul.f32 %v1235_v56, %v520_v39 }
 0x11c   : > { %vm628_vm4 = vcmp.ge.f32.partialorder %v596_v46, 0.0  ;;  %v660_v57 = vmul.f32 0.2, %v596_v46  ;;  %vm644_vm5 = vcmp.ge.f32.partialorder %v612_v47, 0.0  ;;  %v676_v59 = vmul.f32 0.2, %v612_v47 }
 0x11d   : > { %vm627_vm6 = vcmp.ge.f32.partialorder %v595_v52, 0.0  ;;  %v659_v60 = vmul.f32 0.2, %v595_v52  ;;  %vm643_vm7 = vcmp.ge.f32.partialorder %v611_v53, 0.0  ;;  %v675_v61 = vmul.f32 0.2, %v611_v53 }
 0x11e   : > { %v692_v62 = vsel %vm628_vm4, %v596_v46, %v660_v57  ;;  %v708_v63 = vsel %vm644_vm5, %v612_v47, %v676_v59  ;;  %v598_v0 = vadd.f32 %v1240_v58, %v560_v48  ;;  %v614_v1 = vadd.f32 %v1240_v58, %v576_v49 }
 0x11f   : > { %724 = vst [vmem:[%s1255_s15 + $0x58] sm:$0xff] %v692_v62  ;;  %740 = vst [vmem:[%s1255_s15 + $0xd8] sm:$0xff] %v708_v63  ;;  %v691_v2 = vsel %vm627_vm6, %v595_v52, %v659_v60  ;;  %v707_v3 = vsel %vm643_vm7, %v611_v53, %v675_v61  ;;  %v597_v4 = vadd.f32 %v1240_v58, %v559_v54 }
 0x120   : > { %v613_v5 = vadd.f32 %v1240_v58, %v575_v55  ;;  %723 = vst [vmem:[%s1255_s15 + $0x50] sm:$0xff] %v691_v2  ;;  %739 = vst [vmem:[%s1255_s15 + $0xd0] sm:$0xff] %v707_v3  ;;  %vm630_vm8 = vcmp.ge.f32.partialorder %v598_v0, 0.0  ;;  %v662_v6 = vmul.f32 0.2, %v598_v0  ;;  %vm646_vm9 = vcmp.ge.f32.partialorder %v614_v1, 0.0 }
 0x121   : > { %v678_v7 = vmul.f32 0.2, %v614_v1  ;;  %vm629_vm10 = vcmp.ge.f32.partialorder %v597_v4, 0.0  ;;  %v661_v8 = vmul.f32 0.2, %v597_v4  ;;  %v562_v12 = vmul.f32 %v978_v44, %v1235_v56 }
 0x122   : > { %vm645_vm11 = vcmp.ge.f32.partialorder %v613_v5, 0.0  ;;  %v677_v9 = vmul.f32 0.2, %v613_v5  ;;  %v694_v10 = vsel %vm630_vm8, %v598_v0, %v662_v6  ;;  %v578_v13 = vmul.f32 %v1002_v45, %v1235_v56 }
 0x123   : > { %v710_v11 = vsel %vm646_vm9, %v614_v1, %v678_v7  ;;  %726 = vst [vmem:[%s1255_s15 + $0x68] sm:$0xff] %v694_v10  ;;  %v693_v14 = vsel %vm629_vm10, %v597_v4, %v661_v8  ;;  %v561_v16 = vmul.f32 %v1235_v56, %v450_v50  ;;  %v577_v17 = vmul.f32 %v1235_v56, %v530_v51 }
 0x124   : > { %742 = vst [vmem:[%s1255_s15 + $0xe8] sm:$0xff] %v710_v11  ;;  %v709_v15 = vsel %vm645_vm11, %v613_v5, %v677_v9  ;;  %725 = vst [vmem:[%s1255_s15 + $0x60] sm:$0xff] %v693_v14  ;;  %v600_v18 = vadd.f32 %v1240_v58, %v562_v12  ;;  %v616_v19 = vadd.f32 %v1240_v58, %v578_v13 }
 0x125   : > { %741 = vst [vmem:[%s1255_s15 + $0xe0] sm:$0xff] %v709_v15  ;;  %v599_v20 = vadd.f32 %v1240_v58, %v561_v16  ;;  %v615_v21 = vadd.f32 %v1240_v58, %v577_v17 }
 0x126   : > { %vm632_vm12 = vcmp.ge.f32.partialorder %v600_v18, 0.0  ;;  %v664_v22 = vmul.f32 0.2, %v600_v18  ;;  %vm648_vm13 = vcmp.ge.f32.partialorder %v616_v19, 0.0  ;;  %v680_v23 = vmul.f32 0.2, %v616_v19 }
 0x127   : > { %vm631_vm14 = vcmp.ge.f32.partialorder %v599_v20, 0.0  ;;  %v663_v56 = vmul.f32 0.2, %v599_v20  ;;  %vm647_vm15 = vcmp.ge.f32.partialorder %v615_v21, 0.0  ;;  %v679_v24 = vmul.f32 0.2, %v615_v21 }
 0x128   : > { %v696_v25 = vsel %vm632_vm12, %v600_v18, %v664_v22  ;;  %v712_v26 = vsel %vm648_vm13, %v616_v19, %v680_v23 }
 0x129   : > { %728 = vst [vmem:[%s1255_s15 + $0x78] sm:$0xff] %v696_v25  ;;  %744 = vst [vmem:[%s1255_s15 + $0xf8] sm:$0xff] %v712_v26  ;;  %v695_v27 = vsel %vm631_vm14, %v599_v20, %v663_v56  ;;  %v711_v28 = vsel %vm647_vm15, %v615_v21, %v679_v24 }
 0x12a   : > { %727 = vst [vmem:[%s1255_s15 + $0x70] sm:$0xff] %v695_v27  ;;  %743 = vst [vmem:[%s1255_s15 + $0xf0] sm:$0xff] %v711_v28 }
 0x12b PF: > { %s14_s17 = sadd.s32 1, %s1097_s17   ;;  %s1359_s15 = smov %s1093_s16 }
 0x12c   : > { %p11_p5 = scmp.ge.s32.totalorder %s14_s17, 4   ;;  %s1360_s16 = smov %s1362_s18 }
 0x12e   :  { %13 = sbr.rel (!%p11_p5) target bundleno = 2 (0x2), region = 75 }

// kernel: cifar_discriminator_forward.5
= control target key start
LH: loop header
LB: loop body
LE: loop exit
PB: predicated region body
PF: predicated region fallthrough
CT: control target
= control target key end

     0   :  { %s2348_s1 = inlined_call_operand.vmem [shape: f32[1024,128], index: 1, kind: input, shape index: {}]   ;;  %s2349_s0 = inlined_call_operand.vmem [shape: f32[128,1024], index: 0, kind: input, shape index: {}]   ;;  %s2350_s2 = inlined_call_operand.vmem [shape: f32[1,128], index: 2, kind: input, shape index: {}]   ;;  %s2351_s3 = inlined_call_operand.vmem [shape: f32[1,128], index: 3, kind: input, shape index: {}]   ;;  %s2352_s4 = inlined_call_operand.vmem [shape: f32[128,128], index: 4, kind: output, shape index: {}]  }
   0x1   :  { %v161_v0 = vld [vmem:[%s2348_s1 + $0x80] sm:$0xff]  ;;  %v162_v1 = vld [vmem:[%s2348_s1 + $0x88] sm:$0xff]  ;;  %v163_v11 = vld [vmem:[%s2348_s1 + $0x90] sm:$0xff] }
   0x2   :  { %v193_v2 = vld [vmem:[%s2348_s1 + $0x180] sm:$0xff]  ;;  %v1289_v3 = vpack.c.bf16 %v162_v1, %v161_v0  ;;  %v194_v4 = vld [vmem:[%s2348_s1 + $0x188] sm:$0xff]  ;;  %v164_v13 = vld [vmem:[%s2348_s1 + $0x98] sm:$0xff] }
   0x3   :  { %v145_v5 = vld [vmem:[%s2348_s1] sm:$0xff]  ;;  %v146_v6 = vld [vmem:[%s2348_s1 + $0x8] sm:$0xff]  ;;  %v1321_v7 = vpack.c.bf16 %v194_v4, %v193_v2  ;;  %v195_v14 = vld [vmem:[%s2348_s1 + $0x190] sm:$0xff]  ;;  %v1293_v16 = vpack.c.bf16 %v164_v13, %v163_v11 }
   0x4   :  { %v1291_v8 = vpack.c.bf16 %v146_v6, %v145_v5  ;;  %v177_v9 = vld [vmem:[%s2348_s1 + $0x100] sm:$0xff]  ;;  %v178_v10 = vld [vmem:[%s2348_s1 + $0x108] sm:$0xff]  ;;  %1290 = vmatprep.subr.bf16.mxu0 %v1289_v3  ;;  %v196_v15 = vld [vmem:[%s2348_s1 + $0x198] sm:$0xff] }
   0x5   :  { %v1323_v12 = vpack.c.bf16 %v178_v10, %v177_v9  ;;  %1322 = vmatprep.subr.bf16.mxu1 %v1321_v7  ;;  %v1325_v17 = vpack.c.bf16 %v196_v15, %v195_v14  ;;  %v147_v18 = vld [vmem:[%s2348_s1 + $0x10] sm:$0xff]  ;;  %v148_v19 = vld [vmem:[%s2348_s1 + $0x18] sm:$0xff]  ;;  %v165_v23 = vld [vmem:[%s2348_s1 + $0xa0] sm:$0xff] }
   0x6   :  { %1292 = vmatpush3.bf16.msra.mxu0 %v1291_v8  ;;  %v179_v20 = vld [vmem:[%s2348_s1 + $0x110] sm:$0xff]  ;;  %v1295_v21 = vpack.c.bf16 %v148_v19, %v147_v18  ;;  %v180_v22 = vld [vmem:[%s2348_s1 + $0x118] sm:$0xff]  ;;  %v166_v24 = vld [vmem:[%s2348_s1 + $0xa8] sm:$0xff] }
   0x7   :  { %1324 = vmatpush3.bf16.msra.mxu1 %v1323_v12  ;;  %1294 = vmatprep.subr.bf16.mxu0 %v1293_v16  ;;  %v1327_v25 = vpack.c.bf16 %v180_v22, %v179_v20  ;;  %v1297_v26 = vpack.c.bf16 %v166_v24, %v165_v23  ;;  %v197_v27 = vld [vmem:[%s2348_s1 + $0x1a0] sm:$0xff]  ;;  %v198_v28 = vld [vmem:[%s2348_s1 + $0x1a8] sm:$0xff]  ;;  %v167_v35 = vld [vmem:[%s2348_s1 + $0xb0] sm:$0xff] }
   0x8   :  { %1326 = vmatprep.subr.bf16.mxu1 %v1325_v17  ;;  %v149_v29 = vld [vmem:[%s2348_s1 + $0x20] sm:$0xff]  ;;  %v1329_v30 = vpack.c.bf16 %v198_v28, %v197_v27  ;;  %v150_v31 = vld [vmem:[%s2348_s1 + $0x28] sm:$0xff]  ;;  %v168_v36 = vld [vmem:[%s2348_s1 + $0xb8] sm:$0xff] }
   0x9   :  { %v181_v32 = vld [vmem:[%s2348_s1 + $0x120] sm:$0xff]  ;;  %v182_v33 = vld [vmem:[%s2348_s1 + $0x128] sm:$0xff]  ;;  %v1299_v34 = vpack.c.bf16 %v150_v31, %v149_v29  ;;  %v199_v37 = vld [vmem:[%s2348_s1 + $0x1b0] sm:$0xff]  ;;  %v1301_v39 = vpack.c.bf16 %v168_v36, %v167_v35 }
   0xa   :  { %1296 = vmatpush3.bf16.msra.mxu0 %v1295_v21  ;;  %v1331_v38 = vpack.c.bf16 %v182_v33, %v181_v32  ;;  %v200_v40 = vld [vmem:[%s2348_s1 + $0x1b8] sm:$0xff]  ;;  %v151_v41 = vld [vmem:[%s2348_s1 + $0x30] sm:$0xff]  ;;  %v169_v46 = vld [vmem:[%s2348_s1 + $0xc0] sm:$0xff] }
   0xb   :  { %1328 = vmatpush3.bf16.msra.mxu1 %v1327_v25  ;;  %1298 = vmatprep.subr.bf16.mxu0 %v1297_v26  ;;  %v152_v42 = vld [vmem:[%s2348_s1 + $0x38] sm:$0xff]  ;;  %v1333_v43 = vpack.c.bf16 %v200_v40, %v199_v37  ;;  %v183_v44 = vld [vmem:[%s2348_s1 + $0x130] sm:$0xff]  ;;  %v170_v47 = vld [vmem:[%s2348_s1 + $0xc8] sm:$0xff] }
   0xc   :  { %1330 = vmatprep.subr.bf16.mxu1 %v1329_v30  ;;  %v184_v45 = vld [vmem:[%s2348_s1 + $0x138] sm:$0xff]  ;;  %v201_v48 = vld [vmem:[%s2348_s1 + $0x1c0] sm:$0xff]  ;;  %v202_v49 = vld [vmem:[%s2348_s1 + $0x1c8] sm:$0xff]  ;;  %v1303_v50 = vpack.c.bf16 %v152_v42, %v151_v41  ;;  %v1305_v52 = vpack.c.bf16 %v170_v47, %v169_v46 }
   0xd   :  { %v1335_v51 = vpack.c.bf16 %v184_v45, %v183_v44  ;;  %v153_v53 = vld [vmem:[%s2348_s1 + $0x40] sm:$0xff]  ;;  %v154_v54 = vld [vmem:[%s2348_s1 + $0x48] sm:$0xff]  ;;  %v1337_v56 = vpack.c.bf16 %v202_v49, %v201_v48  ;;  %v171_v58 = vld [vmem:[%s2348_s1 + $0xd0] sm:$0xff] }
   0xe   :  { %1300 = vmatpush3.bf16.msra.mxu0 %v1299_v34  ;;  %v185_v55 = vld [vmem:[%s2348_s1 + $0x140] sm:$0xff]  ;;  %v186_v57 = vld [vmem:[%s2348_s1 + $0x148] sm:$0xff]  ;;  %v172_v59 = vld [vmem:[%s2348_s1 + $0xd8] sm:$0xff]  ;;  %v1307_v62 = vpack.c.bf16 %v154_v54, %v153_v53 }
   0xf   :  { %1332 = vmatpush3.bf16.msra.mxu1 %v1331_v38  ;;  %1302 = vmatprep.subr.bf16.mxu0 %v1301_v39  ;;  %v203_v60 = vld [vmem:[%s2348_s1 + $0x1d0] sm:$0xff]  ;;  %v204_v61 = vld [vmem:[%s2348_s1 + $0x1d8] sm:$0xff]  ;;  %v1339_v63 = vpack.c.bf16 %v186_v57, %v185_v55  ;;  %v1309_v0 = vpack.c.bf16 %v172_v59, %v171_v58  ;;  %v173_v6 = vld [vmem:[%s2348_s1 + $0xe0] sm:$0xff] }
  0x10   :  { %1334 = vmatprep.subr.bf16.mxu1 %v1333_v43  ;;  %v155_v1 = vld [vmem:[%s2348_s1 + $0x50] sm:$0xff]  ;;  %v156_v2 = vld [vmem:[%s2348_s1 + $0x58] sm:$0xff]  ;;  %v1341_v4 = vpack.c.bf16 %v204_v61, %v203_v60  ;;  %v174_v7 = vld [vmem:[%s2348_s1 + $0xe8] sm:$0xff] }
  0x11   :  { %v187_v3 = vld [vmem:[%s2348_s1 + $0x150] sm:$0xff]  ;;  %v188_v5 = vld [vmem:[%s2348_s1 + $0x158] sm:$0xff]  ;;  %v205_v8 = vld [vmem:[%s2348_s1 + $0x1e0] sm:$0xff]  ;;  %v1311_v10 = vpack.c.bf16 %v156_v2, %v155_v1  ;;  %v1313_v14 = vpack.c.bf16 %v174_v7, %v173_v6 }
  0x12   :  { %1304 = vmatpush3.bf16.msra.mxu0 %v1303_v50  ;;  %v206_v9 = vld [vmem:[%s2348_s1 + $0x1e8] sm:$0xff]  ;;  %v157_v11 = vld [vmem:[%s2348_s1 + $0x60] sm:$0xff]  ;;  %v1343_v13 = vpack.c.bf16 %v188_v5, %v187_v3  ;;  %v20_v17 = vld [vmem:[%s2349_s0 + $0x18] sm:$0xff] }
  0x13   :  { %1336 = vmatpush3.bf16.msra.mxu1 %v1335_v51  ;;  %1306 = vmatprep.subr.bf16.mxu0 %v1305_v52  ;;  %v158_v12 = vld [vmem:[%s2348_s1 + $0x68] sm:$0xff]  ;;  %v189_v15 = vld [vmem:[%s2348_s1 + $0x160] sm:$0xff]  ;;  %v1345_v18 = vpack.c.bf16 %v206_v9, %v205_v8  ;;  %v175_v20 = vld [vmem:[%s2348_s1 + $0xf0] sm:$0xff] }
  0x14   :  { %1338 = vmatprep.subr.bf16.mxu1 %v1337_v56  ;;  %v18_v16 = vld [vmem:[%s2349_s0 + $0x8] sm:$0xff]  ;;  %v176_v21 = vld [vmem:[%s2348_s1 + $0xf8] sm:$0xff]  ;;  %v207_v22 = vld [vmem:[%s2348_s1 + $0x1f0] sm:$0xff]  ;;  %482 = vmatprep.mubr.f32.mxu1 %v20_v17  ;;  %v1315_v24 = vpack.c.bf16 %v158_v12, %v157_v11 }
  0x15   :  { %v190_v19 = vld [vmem:[%s2348_s1 + $0x168] sm:$0xff]  ;;  %337 = vmatprep.mubr.f32.mxu0 %v18_v16  ;;  %v208_v23 = vld [vmem:[%s2348_s1 + $0x1f8] sm:$0xff]  ;;  %v1317_v26 = vpack.c.bf16 %v176_v21, %v175_v20  ;;  %v159_v27 = vld [vmem:[%s2348_s1 + $0x70] sm:$0xff] }
  0x16   :  { %1308 = vmatpush3.bf16.msra.mxu0 %v1307_v62  ;;  %v1347_v25 = vpack.c.bf16 %v190_v19, %v189_v15  ;;  %v160_v28 = vld [vmem:[%s2348_s1 + $0x78] sm:$0xff]  ;;  %v191_v29 = vld [vmem:[%s2348_s1 + $0x170] sm:$0xff]  ;;  %v1349_v30 = vpack.c.bf16 %v208_v23, %v207_v22  ;;  %v225_v32 = vld [vmem:[%s2348_s1 + $0x280] sm:$0xff] }
  0x17   :  { %1340 = vmatpush3.bf16.msra.mxu1 %v1339_v63  ;;  %1310 = vmatprep.subr.bf16.mxu0 %v1309_v0  ;;  %v192_v31 = vld [vmem:[%s2348_s1 + $0x178] sm:$0xff]  ;;  %v226_v33 = vld [vmem:[%s2348_s1 + $0x288] sm:$0xff]  ;;  %v257_v34 = vld [vmem:[%s2348_s1 + $0x380] sm:$0xff]  ;;  %v1319_v36 = vpack.c.bf16 %v160_v28, %v159_v27 }
  0x18   :  { %1342 = vmatprep.subr.bf16.mxu1 %v1341_v4  ;;  %v258_v35 = vld [vmem:[%s2348_s1 + $0x388] sm:$0xff]  ;;  %v1351_v37 = vpack.c.bf16 %v192_v31, %v191_v29  ;;  %v1353_v38 = vpack.c.bf16 %v226_v33, %v225_v32  ;;  %v209_v39 = vld [vmem:[%s2348_s1 + $0x200] sm:$0xff]  ;;  %v227_v44 = vld [vmem:[%s2348_s1 + $0x290] sm:$0xff] }
  0x19   :  { %v210_v40 = vld [vmem:[%s2348_s1 + $0x208] sm:$0xff]  ;;  %v1385_v41 = vpack.c.bf16 %v258_v35, %v257_v34  ;;  %v241_v42 = vld [vmem:[%s2348_s1 + $0x300] sm:$0xff]  ;;  %v228_v45 = vld [vmem:[%s2348_s1 + $0x298] sm:$0xff] }
  0x1a   :  { %1312 = vmatpush3.bf16.msra.mxu0 %v1311_v10  ;;  %v242_v43 = vld [vmem:[%s2348_s1 + $0x308] sm:$0xff]  ;;  %v17_v46 = vld [vmem:[%s2349_s0] sm:$0xff]  ;;  %v1355_v47 = vpack.c.bf16 %v210_v40, %v209_v39  ;;  %v259_v48 = vld [vmem:[%s2348_s1 + $0x390] sm:$0xff]  ;;  %v1357_v54 = vpack.c.bf16 %v228_v45, %v227_v44 }
  0x1b   :  { %1344 = vmatpush3.bf16.msra.mxu1 %v1343_v13  ;;  %1314 = vmatprep.subr.bf16.mxu0 %v1313_v14  ;;  %v260_v49 = vld [vmem:[%s2348_s1 + $0x398] sm:$0xff]  ;;  %v19_v50 = vld [vmem:[%s2349_s0 + $0x10] sm:$0xff]  ;;  %v26_v51 = vld [vmem:[%s2349_s0 + $0x48] sm:$0xff]  ;;  %v1387_v53 = vpack.c.bf16 %v242_v43, %v241_v42 }
  0x1c   :  { %1346 = vmatprep.subr.bf16.mxu1 %v1345_v18  ;;  %v28_v52 = vld [vmem:[%s2349_s0 + $0x58] sm:$0xff]  ;;  %v211_v55 = vld [vmem:[%s2348_s1 + $0x210] sm:$0xff]  ;;  %v1389_v58 = vpack.c.bf16 %v260_v49, %v259_v48  ;;  %v229_v60 = vld [vmem:[%s2348_s1 + $0x2a0] sm:$0xff] }
  0x1d   :  { %v212_v56 = vld [vmem:[%s2348_s1 + $0x218] sm:$0xff]  ;;  %v243_v57 = vld [vmem:[%s2348_s1 + $0x310] sm:$0xff]  ;;  %v230_v61 = vld [vmem:[%s2348_s1 + $0x2a8] sm:$0xff] }
  0x1e   :  { %1316 = vmatpush3.bf16.msra.mxu0 %v1315_v24  ;;  %v244_v59 = vld [vmem:[%s2348_s1 + $0x318] sm:$0xff]  ;;  %v25_v62 = vld [vmem:[%s2349_s0 + $0x40] sm:$0xff]  ;;  %v262_v0 = vld [vmem:[%s2348_s1 + $0x3a8] sm:$0xff]  ;;  %v1359_v4 = vpack.c.bf16 %v212_v56, %v211_v55  ;;  %v1361_v6 = vpack.c.bf16 %v230_v61, %v229_v60 }
  0x1f   :  { %1348 = vmatpush3.bf16.msra.mxu1 %v1347_v25  ;;  %1318 = vmatprep.subr.bf16.mxu0 %v1317_v26  ;;  %v261_v63 = vld [vmem:[%s2348_s1 + $0x3a0] sm:$0xff]  ;;  %v27_v1 = vld [vmem:[%s2349_s0 + $0x50] sm:$0xff]  ;;  %v34_v2 = vld [vmem:[%s2349_s0 + $0x88] sm:$0xff]  ;;  %v1391_v5 = vpack.c.bf16 %v244_v59, %v243_v57 }
  0x20   :  { %1350 = vmatprep.subr.bf16.mxu1 %v1349_v30  ;;  %v36_v3 = vld [vmem:[%s2349_s0 + $0x98] sm:$0xff]  ;;  %v213_v7 = vld [vmem:[%s2348_s1 + $0x220] sm:$0xff]  ;;  %v214_v8 = vld [vmem:[%s2348_s1 + $0x228] sm:$0xff]  ;;  %v1393_v10 = vpack.c.bf16 %v262_v0, %v261_v63 }
  0x21   :  { %v245_v9 = vld [vmem:[%s2348_s1 + $0x320] sm:$0xff]  ;;  %v246_v11 = vld [vmem:[%s2348_s1 + $0x328] sm:$0xff]  ;;  %v231_v12 = vld [vmem:[%s2348_s1 + $0x2b0] sm:$0xff]  ;;  %v1363_v19 = vpack.c.bf16 %v214_v8, %v213_v7 }
  0x22   :  { %1320 = vmatpush3.bf16.msra.mxu0 %v1319_v36  ;;  %v232_v13 = vld [vmem:[%s2348_s1 + $0x2b8] sm:$0xff]  ;;  %v33_v14 = vld [vmem:[%s2349_s0 + $0x80] sm:$0xff]  ;;  %v263_v15 = vld [vmem:[%s2348_s1 + $0x3b0] sm:$0xff]  ;;  %v1395_v21 = vpack.c.bf16 %v246_v11, %v245_v9 }
  0x23   :  { %1352 = vmatpush3.bf16.msra.mxu1 %v1351_v37  ;;  %1354 = vmatprep.subr.bf16.mxu0 %v1353_v38  ;;  %v264_v16 = vld [vmem:[%s2348_s1 + $0x3b8] sm:$0xff]  ;;  %v35_v17 = vld [vmem:[%s2349_s0 + $0x90] sm:$0xff]  ;;  %v42_v18 = vld [vmem:[%s2349_s0 + $0xc8] sm:$0xff]  ;;  %v1365_v22 = vpack.c.bf16 %v232_v13, %v231_v12 }
  0x24   :  { %1386 = vmatprep.subr.bf16.mxu1 %v1385_v41  ;;  %v44_v20 = vld [vmem:[%s2349_s0 + $0xd8] sm:$0xff]  ;;  %v215_v23 = vld [vmem:[%s2348_s1 + $0x230] sm:$0xff]  ;;  %v41_v25 = vld [vmem:[%s2349_s0 + $0xc0] sm:$0xff]  ;;  %v1397_v26 = vpack.c.bf16 %v264_v16, %v263_v15 }
  0x25   :  { %338 = vmatmul.mubr.f32.vlgmr.msra.gmra.mrb[0].mxu0 %v17_v46  ;;  %v216_v24 = vld [vmem:[%s2348_s1 + $0x238] sm:$0xff]  ;;  %v247_v27 = vld [vmem:[%s2348_s1 + $0x330] sm:$0xff]  ;;  %v233_v30 = vld [vmem:[%s2348_s1 + $0x2c0] sm:$0xff] }
  0x26   :  { %483 = vmatmul.mubr.f32.vlgmr.msra.gmra.mrb[0].mxu1 %v19_v50  ;;  %1356 = vmatpush3.bf16.msra.mxu0 %v1355_v47  ;;  %v248_v28 = vld [vmem:[%s2348_s1 + $0x338] sm:$0xff]  ;;  %v43_v29 = vld [vmem:[%s2349_s0 + $0xd0] sm:$0xff]  ;;  %v234_v31 = vld [vmem:[%s2348_s1 + $0x2c8] sm:$0xff]  ;;  %v1367_v33 = vpack.c.bf16 %v216_v24, %v215_v23 }
  0x27   :  { %342 = vmatprep.mubr.f32.mxu0 %v26_v51  ;;  %487 = vmatprep.mubr.f32.mxu1 %v28_v52  ;;  %v50_v32 = vld [vmem:[%s2349_s0 + $0x108] sm:$0xff]  ;;  %v265_v34 = vld [vmem:[%s2348_s1 + $0x3c0] sm:$0xff]  ;;  %v52_v36 = vld [vmem:[%s2349_s0 + $0x118] sm:$0xff]  ;;  %v1399_v37 = vpack.c.bf16 %v248_v28, %v247_v27  ;;  %v1369_v38 = vpack.c.bf16 %v234_v31, %v233_v30 }
  0x28   :  { %1388 = vmatpush3.bf16.msra.mxu1 %v1387_v53  ;;  %1358 = vmatprep.subr.bf16.mxu0 %v1357_v54  ;;  %v266_v35 = vld [vmem:[%s2348_s1 + $0x3c8] sm:$0xff]  ;;  %v217_v39 = vld [vmem:[%s2348_s1 + $0x240] sm:$0xff]  ;;  %v51_v45 = vld [vmem:[%s2349_s0 + $0x110] sm:$0xff] }
  0x29   :  { %343 = vmatmul.mubr.f32.gmra.mrb[2].mxu0 %v25_v62  ;;  %1390 = vmatprep.subr.bf16.mxu1 %v1389_v58  ;;  %v218_v40 = vld [vmem:[%s2348_s1 + $0x248] sm:$0xff]  ;;  %v1401_v41 = vpack.c.bf16 %v266_v35, %v265_v34  ;;  %v249_v42 = vld [vmem:[%s2348_s1 + $0x340] sm:$0xff]  ;;  %v60_v47 = vld [vmem:[%s2349_s0 + $0x158] sm:$0xff] }
  0x2a   :  { %488 = vmatmul.mubr.f32.gmra.mrb[2].mxu1 %v27_v1  ;;  %347 = vmatprep.mubr.f32.mxu0 %v34_v2  ;;  %v250_v43 = vld [vmem:[%s2348_s1 + $0x348] sm:$0xff]  ;;  %v49_v44 = vld [vmem:[%s2349_s0 + $0x100] sm:$0xff]  ;;  %v1371_v48 = vpack.c.bf16 %v218_v40, %v217_v39  ;;  %v235_v49 = vld [vmem:[%s2348_s1 + $0x2d0] sm:$0xff] }
  0x2b   :  { %492 = vmatprep.mubr.f32.mxu1 %v36_v3  ;;  %1360 = vmatpush3.bf16.msra.mxu0 %v1359_v4  ;;  %v58_v46 = vld [vmem:[%s2349_s0 + $0x148] sm:$0xff]  ;;  %v236_v50 = vld [vmem:[%s2348_s1 + $0x2d8] sm:$0xff]  ;;  %v1403_v51 = vpack.c.bf16 %v250_v43, %v249_v42  ;;  %v219_v53 = vld [vmem:[%s2348_s1 + $0x250] sm:$0xff] }
  0x2c   :  { %1392 = vmatpush3.bf16.msra.mxu1 %v1391_v5  ;;  %1362 = vmatprep.subr.bf16.mxu0 %v1361_v6  ;;  %v1373_v52 = vpack.c.bf16 %v236_v50, %v235_v49  ;;  %v220_v54 = vld [vmem:[%s2348_s1 + $0x258] sm:$0xff]  ;;  %v267_v55 = vld [vmem:[%s2348_s1 + $0x3d0] sm:$0xff]  ;;  %v57_v57 = vld [vmem:[%s2349_s0 + $0x140] sm:$0xff] }
  0x2d   :  { %348 = vmatmul.mubr.f32.gmra.mrb[4].mxu0 %v33_v14  ;;  %1394 = vmatprep.subr.bf16.mxu1 %v1393_v10  ;;  %v268_v56 = vld [vmem:[%s2348_s1 + $0x3d8] sm:$0xff]  ;;  %v251_v59 = vld [vmem:[%s2348_s1 + $0x350] sm:$0xff]  ;;  %v66_v62 = vld [vmem:[%s2349_s0 + $0x188] sm:$0xff]  ;;  %v1375_v63 = vpack.c.bf16 %v220_v54, %v219_v53 }
  0x2e   :  { %493 = vmatmul.mubr.f32.gmra.mrb[4].mxu1 %v35_v17  ;;  %352 = vmatprep.mubr.f32.mxu0 %v42_v18  ;;  %v1405_v58 = vpack.c.bf16 %v268_v56, %v267_v55  ;;  %v252_v60 = vld [vmem:[%s2348_s1 + $0x358] sm:$0xff]  ;;  %v59_v61 = vld [vmem:[%s2349_s0 + $0x150] sm:$0xff]  ;;  %v65_v1 = vld [vmem:[%s2349_s0 + $0x180] sm:$0xff] }
  0x2f   :  { %497 = vmatprep.mubr.f32.mxu1 %v44_v20  ;;  %1364 = vmatpush3.bf16.msra.mxu0 %v1363_v19  ;;  %v68_v0 = vld [vmem:[%s2349_s0 + $0x198] sm:$0xff]  ;;  %v1407_v2 = vpack.c.bf16 %v252_v60, %v251_v59  ;;  %v237_v3 = vld [vmem:[%s2348_s1 + $0x2e0] sm:$0xff]  ;;  %v238_v4 = vld [vmem:[%s2348_s1 + $0x2e8] sm:$0xff] }
  0x30   :  { %1396 = vmatpush3.bf16.msra.mxu1 %v1395_v21  ;;  %1366 = vmatprep.subr.bf16.mxu0 %v1365_v22  ;;  %v221_v5 = vld [vmem:[%s2348_s1 + $0x260] sm:$0xff]  ;;  %v222_v6 = vld [vmem:[%s2348_s1 + $0x268] sm:$0xff]  ;;  %v67_v7 = vld [vmem:[%s2349_s0 + $0x190] sm:$0xff]  ;;  %v1377_v8 = vpack.c.bf16 %v238_v4, %v237_v3 }
  0x31   :  { %353 = vmatmul.mubr.f32.gmra.mrb[6].mxu0 %v41_v25  ;;  %1398 = vmatprep.subr.bf16.mxu1 %v1397_v26  ;;  %v269_v9 = vld [vmem:[%s2348_s1 + $0x3e0] sm:$0xff]  ;;  %v270_v10 = vld [vmem:[%s2348_s1 + $0x3e8] sm:$0xff]  ;;  %v1379_v12 = vpack.c.bf16 %v222_v6, %v221_v5  ;;  %v76_v16 = vld [vmem:[%s2349_s0 + $0x1d8] sm:$0xff] }
  0x32   :  { %498 = vmatmul.mubr.f32.gmra.mrb[6].mxu1 %v43_v29  ;;  %357 = vmatprep.mubr.f32.mxu0 %v50_v32  ;;  %v74_v11 = vld [vmem:[%s2349_s0 + $0x1c8] sm:$0xff]  ;;  %v1409_v13 = vpack.c.bf16 %v270_v10, %v269_v9  ;;  %v253_v14 = vld [vmem:[%s2348_s1 + $0x360] sm:$0xff]  ;;  %v75_v19 = vld [vmem:[%s2349_s0 + $0x1d0] sm:$0xff] }
  0x33   :  { %502 = vmatprep.mubr.f32.mxu1 %v52_v36  ;;  %1368 = vmatpush3.bf16.msra.mxu0 %v1367_v33  ;;  %v254_v15 = vld [vmem:[%s2348_s1 + $0x368] sm:$0xff]  ;;  %v73_v18 = vld [vmem:[%s2349_s0 + $0x1c0] sm:$0xff]  ;;  %v239_v21 = vld [vmem:[%s2348_s1 + $0x2f0] sm:$0xff] }
  0x34   :  { %1400 = vmatpush3.bf16.msra.mxu1 %v1399_v37  ;;  %1370 = vmatprep.subr.bf16.mxu0 %v1369_v38  ;;  %v1411_v17 = vpack.c.bf16 %v254_v15, %v253_v14  ;;  %v82_v20 = vld [vmem:[%s2349_s0 + $0x208] sm:$0xff]  ;;  %v240_v22 = vld [vmem:[%s2348_s1 + $0x2f8] sm:$0xff]  ;;  %v223_v23 = vld [vmem:[%s2348_s1 + $0x270] sm:$0xff] }
  0x35   :  { %358 = vmatmul.mubr.f32.gmra.mrb[8].mxu0 %v49_v44  ;;  %1402 = vmatprep.subr.bf16.mxu1 %v1401_v41  ;;  %v1381_v24 = vpack.c.bf16 %v240_v22, %v239_v21  ;;  %v224_v25 = vld [vmem:[%s2348_s1 + $0x278] sm:$0xff]  ;;  %v271_v26 = vld [vmem:[%s2348_s1 + $0x3f0] sm:$0xff]  ;;  %v81_v33 = vld [vmem:[%s2349_s0 + $0x200] sm:$0xff] }
  0x36   :  { %503 = vmatmul.mubr.f32.gmra.mrb[8].mxu1 %v51_v45  ;;  %362 = vmatprep.mubr.f32.mxu0 %v58_v46  ;;  %v272_v27 = vld [vmem:[%s2348_s1 + $0x3f8] sm:$0xff]  ;;  %v1383_v29 = vpack.c.bf16 %v224_v25, %v223_v23  ;;  %v255_v31 = vld [vmem:[%s2348_s1 + $0x370] sm:$0xff]  ;;  %v90_v36 = vld [vmem:[%s2349_s0 + $0x248] sm:$0xff] }
  0x37   :  { %507 = vmatprep.mubr.f32.mxu1 %v60_v47  ;;  %1372 = vmatpush3.bf16.msra.mxu0 %v1371_v48  ;;  %v84_v28 = vld [vmem:[%s2349_s0 + $0x218] sm:$0xff]  ;;  %v1413_v30 = vpack.c.bf16 %v272_v27, %v271_v26  ;;  %v83_v35 = vld [vmem:[%s2349_s0 + $0x210] sm:$0xff]  ;;  %v89_v38 = vld [vmem:[%s2349_s0 + $0x240] sm:$0xff] }
  0x38   :  { %1404 = vmatpush3.bf16.msra.mxu1 %v1403_v51  ;;  %1374 = vmatprep.subr.bf16.mxu0 %v1373_v52  ;;  %v256_v32 = vld [vmem:[%s2348_s1 + $0x378] sm:$0xff]  ;;  %v91_v39 = vld [vmem:[%s2349_s0 + $0x250] sm:$0xff]  ;;  %v98_v40 = vld [vmem:[%s2349_s0 + $0x288] sm:$0xff] }
  0x39   :  { %363 = vmatmul.mubr.f32.gmra.mrb[10].mxu0 %v57_v57  ;;  %1406 = vmatprep.subr.bf16.mxu1 %v1405_v58  ;;  %v1415_v34 = vpack.c.bf16 %v256_v32, %v255_v31  ;;  %v92_v37 = vld [vmem:[%s2349_s0 + $0x258] sm:$0xff]  ;;  %v97_v42 = vld [vmem:[%s2349_s0 + $0x280] sm:$0xff]  ;;  %v99_v43 = vld [vmem:[%s2349_s0 + $0x290] sm:$0xff] }
  0x3a   :  { %508 = vmatmul.mubr.f32.gmra.mrb[10].mxu1 %v59_v61  ;;  %367 = vmatprep.mubr.f32.mxu0 %v66_v62  ;;  %v100_v41 = vld [vmem:[%s2349_s0 + $0x298] sm:$0xff]  ;;  %v106_v44 = vld [vmem:[%s2349_s0 + $0x2c8] sm:$0xff]  ;;  %v105_v46 = vld [vmem:[%s2349_s0 + $0x2c0] sm:$0xff] }
  0x3b   :  { %512 = vmatprep.mubr.f32.mxu1 %v68_v0  ;;  %1376 = vmatpush3.bf16.msra.mxu0 %v1375_v63  ;;  %v108_v45 = vld [vmem:[%s2349_s0 + $0x2d8] sm:$0xff]  ;;  %v107_v47 = vld [vmem:[%s2349_s0 + $0x2d0] sm:$0xff]  ;;  %v114_v48 = vld [vmem:[%s2349_s0 + $0x308] sm:$0xff] }
  0x3c   :  { %1408 = vmatpush3.bf16.msra.mxu1 %v1407_v2  ;;  %1378 = vmatprep.subr.bf16.mxu0 %v1377_v8  ;;  %v116_v49 = vld [vmem:[%s2349_s0 + $0x318] sm:$0xff]  ;;  %v113_v50 = vld [vmem:[%s2349_s0 + $0x300] sm:$0xff]  ;;  %v115_v51 = vld [vmem:[%s2349_s0 + $0x310] sm:$0xff] }
  0x3d   :  { %368 = vmatmul.mubr.f32.gmra.mrb[12].mxu0 %v65_v1  ;;  %1410 = vmatprep.subr.bf16.mxu1 %v1409_v13  ;;  %v122_v52 = vld [vmem:[%s2349_s0 + $0x348] sm:$0xff]  ;;  %v124_v53 = vld [vmem:[%s2349_s0 + $0x358] sm:$0xff]  ;;  %v121_v54 = vld [vmem:[%s2349_s0 + $0x340] sm:$0xff] }
  0x3e   :  { %513 = vmatmul.mubr.f32.gmra.mrb[12].mxu1 %v67_v7  ;;  %372 = vmatprep.mubr.f32.mxu0 %v74_v11  ;;  %v123_v55 = vld [vmem:[%s2349_s0 + $0x350] sm:$0xff]  ;;  %v130_v56 = vld [vmem:[%s2349_s0 + $0x388] sm:$0xff]  ;;  %v132_v57 = vld [vmem:[%s2349_s0 + $0x398] sm:$0xff] }
  0x3f   :  { %517 = vmatprep.mubr.f32.mxu1 %v76_v16  ;;  %1380 = vmatpush3.bf16.msra.mxu0 %v1379_v12  ;;  %v129_v58 = vld [vmem:[%s2349_s0 + $0x380] sm:$0xff]  ;;  %v131_v59 = vld [vmem:[%s2349_s0 + $0x390] sm:$0xff]  ;;  %v138_v60 = vld [vmem:[%s2349_s0 + $0x3c8] sm:$0xff] }
  0x40   :  { %1412 = vmatpush3.bf16.msra.mxu1 %v1411_v17  ;;  %1382 = vmatprep.subr.bf16.mxu0 %v1381_v24  ;;  %v140_v61 = vld [vmem:[%s2349_s0 + $0x3d8] sm:$0xff]  ;;  %v137_v62 = vld [vmem:[%s2349_s0 + $0x3c0] sm:$0xff]  ;;  %v139_v63 = vld [vmem:[%s2349_s0 + $0x3d0] sm:$0xff] }
  0x41   :  { %373 = vmatmul.mubr.f32.gmra.mrb[14].mxu0 %v73_v18  ;;  %1414 = vmatprep.subr.bf16.mxu1 %v1413_v30  ;;  %v22_v0 = vld [vmem:[%s2349_s0 + $0x28] sm:$0xff]  ;;  %v24_v1 = vld [vmem:[%s2349_s0 + $0x38] sm:$0xff]  ;;  %v21_v2 = vld [vmem:[%s2349_s0 + $0x20] sm:$0xff] }
  0x42   :  { %518 = vmatmul.mubr.f32.gmra.mrb[14].mxu1 %v75_v19  ;;  %377 = vmatprep.mubr.f32.mxu0 %v82_v20  ;;  %v23_v3 = vld [vmem:[%s2349_s0 + $0x30] sm:$0xff]  ;;  %v30_v4 = vld [vmem:[%s2349_s0 + $0x68] sm:$0xff]  ;;  %v32_v5 = vld [vmem:[%s2349_s0 + $0x78] sm:$0xff] }
  0x43   :  { %522 = vmatprep.mubr.f32.mxu1 %v84_v28  ;;  %1384 = vmatpush3.bf16.msra.mxu0 %v1383_v29  ;;  %v29_v6 = vld [vmem:[%s2349_s0 + $0x60] sm:$0xff]  ;;  %v31_v7 = vld [vmem:[%s2349_s0 + $0x70] sm:$0xff]  ;;  %v38_v8 = vld [vmem:[%s2349_s0 + $0xa8] sm:$0xff] }
  0x44   :  { %1416 = vmatpush3.bf16.msra.mxu1 %v1415_v34  ;;  %v40_v9 = vld [vmem:[%s2349_s0 + $0xb8] sm:$0xff]  ;;  %v37_v10 = vld [vmem:[%s2349_s0 + $0xa0] sm:$0xff]  ;;  %v39_v11 = vld [vmem:[%s2349_s0 + $0xb0] sm:$0xff] }
  0x45   :  { %378 = vmatmul.mubr.f32.gmra.mrb[16].mxu0 %v81_v33  ;;  %v46_v12 = vld [vmem:[%s2349_s0 + $0xe8] sm:$0xff]  ;;  %v48_v13 = vld [vmem:[%s2349_s0 + $0xf8] sm:$0xff]  ;;  %v45_v14 = vld [vmem:[%s2349_s0 + $0xe0] sm:$0xff] }
  0x46   :  { %523 = vmatmul.mubr.f32.gmra.mrb[16].mxu1 %v83_v35  ;;  %382 = vmatprep.mubr.f32.mxu0 %v90_v36  ;;  %v47_v15 = vld [vmem:[%s2349_s0 + $0xf0] sm:$0xff]  ;;  %v54_v16 = vld [vmem:[%s2349_s0 + $0x128] sm:$0xff]  ;;  %v56_v17 = vld [vmem:[%s2349_s0 + $0x138] sm:$0xff] }
  0x47   :  { %527 = vmatprep.mubr.f32.mxu1 %v92_v37  ;;  %v53_v18 = vld [vmem:[%s2349_s0 + $0x120] sm:$0xff]  ;;  %v55_v19 = vld [vmem:[%s2349_s0 + $0x130] sm:$0xff]  ;;  %v62_v20 = vld [vmem:[%s2349_s0 + $0x168] sm:$0xff] }
  0x48   :  { %v64_v21 = vld [vmem:[%s2349_s0 + $0x178] sm:$0xff]  ;;  %v61_v22 = vld [vmem:[%s2349_s0 + $0x160] sm:$0xff]  ;;  %v63_v23 = vld [vmem:[%s2349_s0 + $0x170] sm:$0xff] }
  0x49   :  { %383 = vmatmul.mubr.f32.gmra.mrb[18].mxu0 %v89_v38  ;;  %v70_v24 = vld [vmem:[%s2349_s0 + $0x1a8] sm:$0xff]  ;;  %v72_v25 = vld [vmem:[%s2349_s0 + $0x1b8] sm:$0xff]  ;;  %v69_v26 = vld [vmem:[%s2349_s0 + $0x1a0] sm:$0xff] }
  0x4a   :  { %528 = vmatmul.mubr.f32.gmra.mrb[18].mxu1 %v91_v39  ;;  %387 = vmatprep.mubr.f32.mxu0 %v98_v40  ;;  %v71_v27 = vld [vmem:[%s2349_s0 + $0x1b0] sm:$0xff]  ;;  %v78_v28 = vld [vmem:[%s2349_s0 + $0x1e8] sm:$0xff]  ;;  %v80_v29 = vld [vmem:[%s2349_s0 + $0x1f8] sm:$0xff] }
  0x4b   :  { %532 = vmatprep.mubr.f32.mxu1 %v100_v41  ;;  %v77_v30 = vld [vmem:[%s2349_s0 + $0x1e0] sm:$0xff]  ;;  %v79_v31 = vld [vmem:[%s2349_s0 + $0x1f0] sm:$0xff]  ;;  %v86_v32 = vld [vmem:[%s2349_s0 + $0x228] sm:$0xff] }
  0x4c   :  { %v88_v33 = vld [vmem:[%s2349_s0 + $0x238] sm:$0xff]  ;;  %v85_v34 = vld [vmem:[%s2349_s0 + $0x220] sm:$0xff]  ;;  %v87_v35 = vld [vmem:[%s2349_s0 + $0x230] sm:$0xff] }
  0x4d   :  { %388 = vmatmul.mubr.f32.gmra.mrb[20].mxu0 %v97_v42  ;;  %v94_v36 = vld [vmem:[%s2349_s0 + $0x268] sm:$0xff]  ;;  %v96_v37 = vld [vmem:[%s2349_s0 + $0x278] sm:$0xff]  ;;  %v93_v38 = vld [vmem:[%s2349_s0 + $0x260] sm:$0xff] }
  0x4e   :  { %533 = vmatmul.mubr.f32.gmra.mrb[20].mxu1 %v99_v43  ;;  %392 = vmatprep.mubr.f32.mxu0 %v106_v44  ;;  %v95_v39 = vld [vmem:[%s2349_s0 + $0x270] sm:$0xff]  ;;  %v102_v40 = vld [vmem:[%s2349_s0 + $0x2a8] sm:$0xff]  ;;  %v104_v41 = vld [vmem:[%s2349_s0 + $0x2b8] sm:$0xff] }
  0x4f   :  { %537 = vmatprep.mubr.f32.mxu1 %v108_v45  ;;  %v101_v42 = vld [vmem:[%s2349_s0 + $0x2a0] sm:$0xff]  ;;  %v103_v43 = vld [vmem:[%s2349_s0 + $0x2b0] sm:$0xff]  ;;  %v110_v44 = vld [vmem:[%s2349_s0 + $0x2e8] sm:$0xff] }
  0x50   :  { %v112_v45 = vld [vmem:[%s2349_s0 + $0x2f8] sm:$0xff] }
  0x51   :  { %393 = vmatmul.mubr.f32.gmra.mrb[22].mxu0 %v105_v46  ;;  %v109_v46 = vld [vmem:[%s2349_s0 + $0x2e0] sm:$0xff] }
  0x52   :  { %538 = vmatmul.mubr.f32.gmra.mrb[22].mxu1 %v107_v47  ;;  %397 = vmatprep.mubr.f32.mxu0 %v114_v48  ;;  %v111_v47 = vld [vmem:[%s2349_s0 + $0x2f0] sm:$0xff]  ;;  %v118_v48 = vld [vmem:[%s2349_s0 + $0x328] sm:$0xff] }
  0x53   :  { %542 = vmatprep.mubr.f32.mxu1 %v116_v49  ;;  %v120_v49 = vld [vmem:[%s2349_s0 + $0x338] sm:$0xff] }
  0x55   :  { %398 = vmatmul.mubr.f32.gmra.mrb[24].mxu0 %v113_v50  ;;  %v117_v50 = vld [vmem:[%s2349_s0 + $0x320] sm:$0xff] }
  0x56   :  { %543 = vmatmul.mubr.f32.gmra.mrb[24].mxu1 %v115_v51  ;;  %402 = vmatprep.mubr.f32.mxu0 %v122_v52  ;;  %v119_v51 = vld [vmem:[%s2349_s0 + $0x330] sm:$0xff]  ;;  %v126_v52 = vld [vmem:[%s2349_s0 + $0x368] sm:$0xff] }
  0x57   :  { %547 = vmatprep.mubr.f32.mxu1 %v124_v53  ;;  %v128_v53 = vld [vmem:[%s2349_s0 + $0x378] sm:$0xff] }
  0x59   :  { %403 = vmatmul.mubr.f32.gmra.mrb[26].mxu0 %v121_v54  ;;  %v125_v54 = vld [vmem:[%s2349_s0 + $0x360] sm:$0xff] }
  0x5a   :  { %548 = vmatmul.mubr.f32.gmra.mrb[26].mxu1 %v123_v55  ;;  %407 = vmatprep.mubr.f32.mxu0 %v130_v56  ;;  %v127_v55 = vld [vmem:[%s2349_s0 + $0x370] sm:$0xff]  ;;  %v134_v56 = vld [vmem:[%s2349_s0 + $0x3a8] sm:$0xff] }
  0x5b   :  { %552 = vmatprep.mubr.f32.mxu1 %v132_v57  ;;  %v136_v57 = vld [vmem:[%s2349_s0 + $0x3b8] sm:$0xff] }
  0x5d   :  { %408 = vmatmul.mubr.f32.gmra.mrb[28].mxu0 %v129_v58  ;;  %v133_v58 = vld [vmem:[%s2349_s0 + $0x3a0] sm:$0xff] }
  0x5e   :  { %553 = vmatmul.mubr.f32.gmra.mrb[28].mxu1 %v131_v59  ;;  %412 = vmatprep.mubr.f32.mxu0 %v138_v60  ;;  %v135_v59 = vld [vmem:[%s2349_s0 + $0x3b0] sm:$0xff]  ;;  %v142_v60 = vld [vmem:[%s2349_s0 + $0x3e8] sm:$0xff] }
  0x5f   :  { %557 = vmatprep.mubr.f32.mxu1 %v140_v61  ;;  %v144_v61 = vld [vmem:[%s2349_s0 + $0x3f8] sm:$0xff] }
  0x61   :  { %413 = vmatmul.mubr.f32.gmra.mrb[30].mxu0 %v137_v62  ;;  %v141_v62 = vld [vmem:[%s2349_s0 + $0x3e0] sm:$0xff] }
  0x62   :  { %558 = vmatmul.mubr.f32.gmra.mrb[30].mxu1 %v139_v63  ;;  %627 = vmatprep.mubr.f32.mxu0 %v22_v0  ;;  %v143_v63 = vld [vmem:[%s2349_s0 + $0x3f0] sm:$0xff] }
  0x63   :  { %772 = vmatprep.mubr.f32.mxu1 %v24_v1 }
  0x65   :  { %628 = vmatmul.mubr.f32.vlgmr.msra.gmra.mrb[32].mxu0 %v21_v2 }
  0x66   :  { %773 = vmatmul.mubr.f32.vlgmr.msra.gmra.mrb[32].mxu1 %v23_v3  ;;  %632 = vmatprep.mubr.f32.mxu0 %v30_v4 }
  0x67   :  { %777 = vmatprep.mubr.f32.mxu1 %v32_v5 }
  0x69   :  { %633 = vmatmul.mubr.f32.gmra.mrb[34].mxu0 %v29_v6 }
  0x6a   :  { %778 = vmatmul.mubr.f32.gmra.mrb[34].mxu1 %v31_v7  ;;  %637 = vmatprep.mubr.f32.mxu0 %v38_v8 }
  0x6b   :  { %782 = vmatprep.mubr.f32.mxu1 %v40_v9 }
  0x6d   :  { %638 = vmatmul.mubr.f32.gmra.mrb[36].mxu0 %v37_v10 }
  0x6e   :  { %783 = vmatmul.mubr.f32.gmra.mrb[36].mxu1 %v39_v11  ;;  %642 = vmatprep.mubr.f32.mxu0 %v46_v12 }
  0x6f   :  { %787 = vmatprep.mubr.f32.mxu1 %v48_v13 }
  0x71   :  { %643 = vmatmul.mubr.f32.gmra.mrb[38].mxu0 %v45_v14 }
  0x72   :  { %788 = vmatmul.mubr.f32.gmra.mrb[38].mxu1 %v47_v15  ;;  %647 = vmatprep.mubr.f32.mxu0 %v54_v16 }
  0x73   :  { %792 = vmatprep.mubr.f32.mxu1 %v56_v17 }
  0x75   :  { %648 = vmatmul.mubr.f32.gmra.mrb[40].mxu0 %v53_v18 }
  0x76   :  { %793 = vmatmul.mubr.f32.gmra.mrb[40].mxu1 %v55_v19  ;;  %652 = vmatprep.mubr.f32.mxu0 %v62_v20 }
  0x77   :  { %797 = vmatprep.mubr.f32.mxu1 %v64_v21 }
  0x79   :  { %653 = vmatmul.mubr.f32.gmra.mrb[42].mxu0 %v61_v22 }
  0x7a   :  { %798 = vmatmul.mubr.f32.gmra.mrb[42].mxu1 %v63_v23  ;;  %657 = vmatprep.mubr.f32.mxu0 %v70_v24 }
  0x7b   :  { %802 = vmatprep.mubr.f32.mxu1 %v72_v25 }
  0x7d   :  { %658 = vmatmul.mubr.f32.gmra.mrb[44].mxu0 %v69_v26 }
  0x7e   :  { %803 = vmatmul.mubr.f32.gmra.mrb[44].mxu1 %v71_v27  ;;  %662 = vmatprep.mubr.f32.mxu0 %v78_v28 }
  0x7f   :  { %807 = vmatprep.mubr.f32.mxu1 %v80_v29 }
  0x81   :  { %663 = vmatmul.mubr.f32.gmra.mrb[46].mxu0 %v77_v30 }
  0x82   :  { %808 = vmatmul.mubr.f32.gmra.mrb[46].mxu1 %v79_v31  ;;  %667 = vmatprep.mubr.f32.mxu0 %v86_v32 }
  0x83   :  { %812 = vmatprep.mubr.f32.mxu1 %v88_v33 }
  0x85   :  { %668 = vmatmul.mubr.f32.gmra.mrb[48].mxu0 %v85_v34 }
  0x86   :  { %813 = vmatmul.mubr.f32.gmra.mrb[48].mxu1 %v87_v35  ;;  %672 = vmatprep.mubr.f32.mxu0 %v94_v36 }
  0x87   :  { %817 = vmatprep.mubr.f32.mxu1 %v96_v37 }
  0x89   :  { %673 = vmatmul.mubr.f32.gmra.mrb[50].mxu0 %v93_v38 }
  0x8a   :  { %818 = vmatmul.mubr.f32.gmra.mrb[50].mxu1 %v95_v39  ;;  %677 = vmatprep.mubr.f32.mxu0 %v102_v40 }
  0x8b   :  { %822 = vmatprep.mubr.f32.mxu1 %v104_v41 }
  0x8d   :  { %678 = vmatmul.mubr.f32.gmra.mrb[52].mxu0 %v101_v42 }
  0x8e   :  { %823 = vmatmul.mubr.f32.gmra.mrb[52].mxu1 %v103_v43  ;;  %682 = vmatprep.mubr.f32.mxu0 %v110_v44 }
  0x8f   :  { %827 = vmatprep.mubr.f32.mxu1 %v112_v45 }
  0x91   :  { %683 = vmatmul.mubr.f32.gmra.mrb[54].mxu0 %v109_v46 }
  0x92   :  { %828 = vmatmul.mubr.f32.gmra.mrb[54].mxu1 %v111_v47  ;;  %687 = vmatprep.mubr.f32.mxu0 %v118_v48 }
  0x93   :  { %832 = vmatprep.mubr.f32.mxu1 %v120_v49 }
  0x95   :  { %688 = vmatmul.mubr.f32.gmra.mrb[56].mxu0 %v117_v50 }
  0x96   :  { %833 = vmatmul.mubr.f32.gmra.mrb[56].mxu1 %v119_v51  ;;  %692 = vmatprep.mubr.f32.mxu0 %v126_v52 }
  0x97   :  { %837 = vmatprep.mubr.f32.mxu1 %v128_v53 }
  0x99   :  { %693 = vmatmul.mubr.f32.gmra.mrb[58].mxu0 %v125_v54 }
  0x9a   :  { %838 = vmatmul.mubr.f32.gmra.mrb[58].mxu1 %v127_v55  ;;  %697 = vmatprep.mubr.f32.mxu0 %v134_v56 }
  0x9b   :  { %842 = vmatprep.mubr.f32.mxu1 %v136_v57 }
  0x9d   :  { %698 = vmatmul.mubr.f32.gmra.mrb[60].mxu0 %v133_v58 }
  0x9e   :  { %843 = vmatmul.mubr.f32.gmra.mrb[60].mxu1 %v135_v59  ;;  %702 = vmatprep.mubr.f32.mxu0 %v142_v60 }
  0x9f   :  { %847 = vmatprep.mubr.f32.mxu1 %v144_v61 }
  0xa1   :  { %703 = vmatmul.mubr.f32.gmra.mrb[62].mxu0 %v141_v62 }
  0xa2   :  { %848 = vmatmul.mubr.f32.gmra.mrb[62].mxu1 %v143_v63 }
  0xf8   :  { %v1001_v0 = vpop.f32.mrb[0].mxu0 }
  0xf9   :  { %v1081_v1 = vpop.f32.mrb[0].mxu1  ;;  %v1002_v2 = vpop.f32.mrb[1].mxu0 }
  0xfa   :  { %v1003_v3 = vadd.f32 %v1002_v2, %v1001_v0  ;;  %v1082_v4 = vpop.f32.mrb[1].mxu1 }
  0xfb   :  { %v1083_v5 = vadd.f32 %v1082_v4, %v1081_v1 }
  0xfc   :  { %v1004_v6 = vpop.f32.mrb[2].mxu0 }
  0xfd   :  { %v2210_v7 = vadd.f32 %v1083_v5, %v1003_v3  ;;  %v1084_v8 = vpop.f32.mrb[2].mxu1  ;;  %v1005_v9 = vpop.f32.mrb[3].mxu0 }
  0xfe   :  { %v1006_v10 = vadd.f32 %v1005_v9, %v1004_v6  ;;  %v1085_v11 = vpop.f32.mrb[3].mxu1 }
  0xff   :  { %v1086_v12 = vadd.f32 %v1085_v11, %v1084_v8 }
 0x100   :  { %v1007_v13 = vpop.f32.mrb[4].mxu0 }
 0x101   :  { %v2212_v14 = vadd.f32 %v1086_v12, %v1006_v10  ;;  %v1087_v15 = vpop.f32.mrb[4].mxu1  ;;  %v1008_v16 = vpop.f32.mrb[5].mxu0 }
 0x102   :  { %v1009_v17 = vadd.f32 %v1008_v16, %v1007_v13  ;;  %v1088_v18 = vpop.f32.mrb[5].mxu1 }
 0x103   :  { %v1089_v19 = vadd.f32 %v1088_v18, %v1087_v15 }
 0x104   :  { %v1010_v20 = vpop.f32.mrb[6].mxu0 }
 0x105   :  { %v2214_v21 = vadd.f32 %v1089_v19, %v1009_v17  ;;  %v1090_v22 = vpop.f32.mrb[6].mxu1  ;;  %v1011_v23 = vpop.f32.mrb[7].mxu0 }
 0x106   :  { %v1012_v24 = vadd.f32 %v1011_v23, %v1010_v20  ;;  %v1091_v25 = vpop.f32.mrb[7].mxu1 }
 0x107   :  { %v1092_v26 = vadd.f32 %v1091_v25, %v1090_v22 }
 0x108   :  { %v1013_v27 = vpop.f32.mrb[8].mxu0 }
 0x109   :  { %v2216_v28 = vadd.f32 %v1092_v26, %v1012_v24  ;;  %v1093_v29 = vpop.f32.mrb[8].mxu1  ;;  %v1014_v30 = vpop.f32.mrb[9].mxu0 }
 0x10a   :  { %v1015_v31 = vadd.f32 %v1014_v30, %v1013_v27  ;;  %v1094_v32 = vpop.f32.mrb[9].mxu1 }
 0x10b   :  { %v1095_v33 = vadd.f32 %v1094_v32, %v1093_v29 }
 0x10c   :  { %v1016_v34 = vpop.f32.mrb[10].mxu0 }
 0x10d   :  { %v2218_v35 = vadd.f32 %v1095_v33, %v1015_v31  ;;  %v1096_v36 = vpop.f32.mrb[10].mxu1  ;;  %v1017_v37 = vpop.f32.mrb[11].mxu0 }
 0x10e   :  { %v1018_v38 = vadd.f32 %v1017_v37, %v1016_v34  ;;  %v1097_v39 = vpop.f32.mrb[11].mxu1 }
 0x10f   :  { %v1098_v40 = vadd.f32 %v1097_v39, %v1096_v36 }
 0x110   :  { %v1019_v41 = vpop.f32.mrb[12].mxu0 }
 0x111   :  { %v2220_v42 = vadd.f32 %v1098_v40, %v1018_v38  ;;  %v1099_v43 = vpop.f32.mrb[12].mxu1  ;;  %v1020_v44 = vpop.f32.mrb[13].mxu0 }
 0x112   :  { %v1021_v45 = vadd.f32 %v1020_v44, %v1019_v41  ;;  %v1100_v46 = vpop.f32.mrb[13].mxu1 }
 0x113   :  { %v1101_v47 = vadd.f32 %v1100_v46, %v1099_v43 }
 0x114   :  { %v1022_v48 = vpop.f32.mrb[14].mxu0 }
 0x115   :  { %v2222_v49 = vadd.f32 %v1101_v47, %v1021_v45  ;;  %v1102_v50 = vpop.f32.mrb[14].mxu1  ;;  %v1023_v51 = vpop.f32.mrb[15].mxu0 }
 0x116   :  { %v1024_v52 = vadd.f32 %v1023_v51, %v1022_v48  ;;  %v1103_v53 = vpop.f32.mrb[15].mxu1 }
 0x117   :  { %v1104_v54 = vadd.f32 %v1103_v53, %v1102_v50 }
 0x118   :  { %v1025_v55 = vpop.f32.mrb[16].mxu0 }
 0x119   :  { %v2224_v56 = vadd.f32 %v1104_v54, %v1024_v52  ;;  %v1105_v57 = vpop.f32.mrb[16].mxu1  ;;  %v1026_v58 = vpop.f32.mrb[17].mxu0 }
 0x11a   :  { %v1027_v59 = vadd.f32 %v1026_v58, %v1025_v55  ;;  %v1106_v60 = vpop.f32.mrb[17].mxu1 }
 0x11b   :  { %v1107_v61 = vadd.f32 %v1106_v60, %v1105_v57 }
 0x11c   :  { %v1028_v62 = vpop.f32.mrb[18].mxu0 }
 0x11d   :  { %v2226_v63 = vadd.f32 %v1107_v61, %v1027_v59  ;;  %v1108_v0 = vpop.f32.mrb[18].mxu1  ;;  %v1029_v1 = vpop.f32.mrb[19].mxu0 }
 0x11e   :  { %v1030_v2 = vadd.f32 %v1029_v1, %v1028_v62  ;;  %v1109_v3 = vpop.f32.mrb[19].mxu1  ;;  %v2246_v1 = vld [vmem:[%s2350_s2] ss:$0 sm:$0xff] }
 0x11f   :  { %v1110_v4 = vadd.f32 %v1109_v3, %v1108_v0 }
 0x120   :  { %v1031_v5 = vpop.f32.mrb[20].mxu0 }
 0x121   :  { %v2228_v6 = vadd.f32 %v1110_v4, %v1030_v2  ;;  %v1111_v8 = vpop.f32.mrb[20].mxu1  ;;  %v1032_v9 = vpop.f32.mrb[21].mxu0 }
 0x122   :  { %v1033_v10 = vadd.f32 %v1032_v9, %v1031_v5  ;;  %v1112_v11 = vpop.f32.mrb[21].mxu1  ;;  %v2251_v9 = vld [vmem:[%s2351_s3] ss:$0 sm:$0xff] }
 0x123   :  { %v1113_v12 = vadd.f32 %v1112_v11, %v1111_v8 }
 0x124   :  { %v1034_v13 = vpop.f32.mrb[22].mxu0 }
 0x125   :  { %v2230_v15 = vadd.f32 %v1113_v12, %v1033_v10  ;;  %v1114_v16 = vpop.f32.mrb[22].mxu1  ;;  %v1035_v17 = vpop.f32.mrb[23].mxu0 }
 0x126   :  { %v1036_v18 = vadd.f32 %v1035_v17, %v1034_v13  ;;  %v1115_v19 = vpop.f32.mrb[23].mxu1 }
 0x127   :  { %v1116_v20 = vadd.f32 %v1115_v19, %v1114_v16 }
 0x128   :  { %v1037_v22 = vpop.f32.mrb[24].mxu0 }
 0x129   :  { %v2232_v23 = vadd.f32 %v1116_v20, %v1036_v18  ;;  %v1117_v24 = vpop.f32.mrb[24].mxu1  ;;  %v1038_v25 = vpop.f32.mrb[25].mxu0 }
 0x12a   :  { %v1039_v26 = vadd.f32 %v1038_v25, %v1037_v22  ;;  %v1118_v27 = vpop.f32.mrb[25].mxu1 }
 0x12b   :  { %v1119_v29 = vadd.f32 %v1118_v27, %v1117_v24 }
 0x12c   :  { %v1040_v30 = vpop.f32.mrb[26].mxu0 }
 0x12d   :  { %v2234_v31 = vadd.f32 %v1119_v29, %v1039_v26  ;;  %v1120_v32 = vpop.f32.mrb[26].mxu1  ;;  %v1041_v33 = vpop.f32.mrb[27].mxu0 }
 0x12e   :  { %v1042_v34 = vadd.f32 %v1041_v33, %v1040_v30  ;;  %v1121_v36 = vpop.f32.mrb[27].mxu1 }
 0x12f   :  { %v1122_v37 = vadd.f32 %v1121_v36, %v1120_v32 }
 0x130   :  { %v1043_v38 = vpop.f32.mrb[28].mxu0 }
 0x131   :  { %v2236_v39 = vadd.f32 %v1122_v37, %v1042_v34  ;;  %v1123_v40 = vpop.f32.mrb[28].mxu1  ;;  %v1044_v41 = vpop.f32.mrb[29].mxu0 }
 0x132   :  { %v1045_v43 = vadd.f32 %v1044_v41, %v1043_v38  ;;  %v1124_v44 = vpop.f32.mrb[29].mxu1 }
 0x133   :  { %v1125_v45 = vadd.f32 %v1124_v44, %v1123_v40 }
 0x134   :  { %v1046_v46 = vpop.f32.mrb[30].mxu0 }
 0x135   :  { %v2238_v47 = vadd.f32 %v1125_v45, %v1045_v43  ;;  %v1126_v48 = vpop.f32.mrb[30].mxu1  ;;  %v1047_v50 = vpop.f32.mrb[31].mxu0 }
 0x136   :  { %v1048_v51 = vadd.f32 %v1047_v50, %v1046_v46  ;;  %v1127_v52 = vpop.f32.mrb[31].mxu1 }
 0x137   :  { %v1128_v53 = vadd.f32 %v1127_v52, %v1126_v48 }
 0x138   :  { %v1161_v54 = vpop.f32.mrb[32].mxu0 }
 0x139   :  { %v2240_v55 = vadd.f32 %v1128_v53, %v1048_v51  ;;  %v1162_v57 = vpop.f32.mrb[33].mxu0  ;;  %v1241_v58 = vpop.f32.mrb[32].mxu1 }
 0x13a   :  { %v1163_v59 = vadd.f32 %v1162_v57, %v1161_v54  ;;  %v1242_v60 = vpop.f32.mrb[33].mxu1 }
 0x13b   :  { %v1243_v61 = vadd.f32 %v1242_v60, %v1241_v58 }
 0x13c   :  { %v630_v62 = vadd.f32 %v1163_v59, %v2210_v7  ;;  %v1164_v0 = vpop.f32.mrb[34].mxu0 }
 0x13d   :  { %v1165_v2 = vpop.f32.mrb[35].mxu0  ;;  %v1244_v3 = vpop.f32.mrb[34].mxu1 }
 0x13e   :  { %v775_v4 = vadd.f32 %v1243_v61, %v630_v62  ;;  %v1166_v5 = vadd.f32 %v1165_v2, %v1164_v0  ;;  %v1245_v8 = vpop.f32.mrb[35].mxu1 }
 0x13f   :  { %v1246_v10 = vadd.f32 %v1245_v8, %v1244_v3 }
 0x140   :  { %v861_v11 = vmul.f32 %v2246_v1, %v775_v4  ;;  %v635_v7 = vadd.f32 %v1166_v5, %v2212_v14  ;;  %v1167_v12 = vpop.f32.mrb[36].mxu0 }
 0x141   :  { %v1168_v13 = vpop.f32.mrb[37].mxu0  ;;  %v1247_v16 = vpop.f32.mrb[36].mxu1 }
 0x142   :  { %v883_v17 = vadd.f32 %v2251_v9, %v861_v11  ;;  %v780_v18 = vadd.f32 %v1246_v10, %v635_v7  ;;  %v1169_v19 = vadd.f32 %v1168_v13, %v1167_v12  ;;  %v1248_v20 = vpop.f32.mrb[37].mxu1 }
 0x143   :  { %v1249_v22 = vadd.f32 %v1248_v20, %v1247_v16 }
 0x144   :  { %vm899_vm0 = vcmp.ge.f32.partialorder %v883_v17, 0.0  ;;  %v915_v24 = vmul.f32 0.2, %v883_v17  ;;  %v862_v25 = vmul.f32 %v2246_v1, %v780_v18  ;;  %v640_v26 = vadd.f32 %v1169_v19, %v2214_v21  ;;  %v1170_v27 = vpop.f32.mrb[38].mxu0 }
 0x145   :  { %v1171_v29 = vpop.f32.mrb[39].mxu0  ;;  %v1250_v30 = vpop.f32.mrb[38].mxu1 }
 0x146   :  { %v931_v32 = vsel %vm899_vm0, %v883_v17, %v915_v24  ;;  %v884_v14 = vadd.f32 %v2251_v9, %v862_v25  ;;  %v785_v33 = vadd.f32 %v1249_v22, %v640_v26  ;;  %v1172_v34 = vadd.f32 %v1171_v29, %v1170_v27  ;;  %v1251_v36 = vpop.f32.mrb[39].mxu1 }
 0x147   :  { %947 = vst [vmem:[%s2352_s4] sm:$0xff] %v931_v32  ;;  %v1252_v37 = vadd.f32 %v1251_v36, %v1250_v30 }
 0x148   :  { %vm900_vm1 = vcmp.ge.f32.partialorder %v884_v14, 0.0  ;;  %v916_v38 = vmul.f32 0.2, %v884_v14  ;;  %v863_v40 = vmul.f32 %v2246_v1, %v785_v33  ;;  %v645_v21 = vadd.f32 %v1172_v34, %v2216_v28  ;;  %v1173_v41 = vpop.f32.mrb[40].mxu0 }
 0x149   :  { %v1174_v43 = vpop.f32.mrb[41].mxu0  ;;  %v1253_v44 = vpop.f32.mrb[40].mxu1 }
 0x14a   :  { %v932_v45 = vsel %vm900_vm1, %v884_v14, %v916_v38  ;;  %v885_v46 = vadd.f32 %v2251_v9, %v863_v40  ;;  %v790_v48 = vadd.f32 %v1252_v37, %v645_v21  ;;  %v1175_v50 = vadd.f32 %v1174_v43, %v1173_v41  ;;  %v1254_v51 = vpop.f32.mrb[41].mxu1 }
 0x14b   :  { %948 = vst [vmem:[%s2352_s4 + $0x8] sm:$0xff] %v932_v45  ;;  %v1255_v52 = vadd.f32 %v1254_v51, %v1253_v44 }
 0x14c   :  { %vm901_vm2 = vcmp.ge.f32.partialorder %v885_v46, 0.0  ;;  %v917_v53 = vmul.f32 0.2, %v885_v46  ;;  %v864_v54 = vmul.f32 %v2246_v1, %v790_v48  ;;  %v650_v28 = vadd.f32 %v1175_v50, %v2218_v35  ;;  %v1176_v57 = vpop.f32.mrb[42].mxu0 }
 0x14d   :  { %v1177_v58 = vpop.f32.mrb[43].mxu0  ;;  %v1256_v59 = vpop.f32.mrb[42].mxu1 }
 0x14e   :  { %v933_v60 = vsel %vm901_vm2, %v885_v46, %v917_v53  ;;  %v886_v61 = vadd.f32 %v2251_v9, %v864_v54  ;;  %v795_v62 = vadd.f32 %v1255_v52, %v650_v28  ;;  %v1178_v0 = vadd.f32 %v1177_v58, %v1176_v57  ;;  %v1257_v2 = vpop.f32.mrb[43].mxu1 }
 0x14f   :  { %949 = vst [vmem:[%s2352_s4 + $0x10] sm:$0xff] %v933_v60  ;;  %v1258_v3 = vadd.f32 %v1257_v2, %v1256_v59 }
 0x150   :  { %vm902_vm3 = vcmp.ge.f32.partialorder %v886_v61, 0.0  ;;  %v918_v4 = vmul.f32 0.2, %v886_v61  ;;  %v865_v5 = vmul.f32 %v2246_v1, %v795_v62  ;;  %v655_v35 = vadd.f32 %v1178_v0, %v2220_v42  ;;  %v1179_v8 = vpop.f32.mrb[44].mxu0 }
 0x151   :  { %v1180_v10 = vpop.f32.mrb[45].mxu0  ;;  %v1259_v11 = vpop.f32.mrb[44].mxu1 }
 0x152   :  { %v934_v7 = vsel %vm902_vm3, %v886_v61, %v918_v4  ;;  %v887_v12 = vadd.f32 %v2251_v9, %v865_v5  ;;  %v800_v13 = vadd.f32 %v1258_v3, %v655_v35  ;;  %v1181_v16 = vadd.f32 %v1180_v10, %v1179_v8  ;;  %v1260_v17 = vpop.f32.mrb[45].mxu1 }
 0x153   :  { %950 = vst [vmem:[%s2352_s4 + $0x18] sm:$0xff] %v934_v7  ;;  %v1261_v18 = vadd.f32 %v1260_v17, %v1259_v11 }
 0x154   :  { %vm903_vm4 = vcmp.ge.f32.partialorder %v887_v12, 0.0  ;;  %v919_v19 = vmul.f32 0.2, %v887_v12  ;;  %v866_v20 = vmul.f32 %v2246_v1, %v800_v13  ;;  %v660_v42 = vadd.f32 %v1181_v16, %v2222_v49  ;;  %v1182_v22 = vpop.f32.mrb[46].mxu0 }
 0x155   :  { %v1183_v24 = vpop.f32.mrb[47].mxu0  ;;  %v1262_v25 = vpop.f32.mrb[46].mxu1 }
 0x156   :  { %v935_v26 = vsel %vm903_vm4, %v887_v12, %v919_v19  ;;  %v888_v27 = vadd.f32 %v2251_v9, %v866_v20  ;;  %v805_v29 = vadd.f32 %v1261_v18, %v660_v42  ;;  %v1184_v30 = vadd.f32 %v1183_v24, %v1182_v22  ;;  %v1263_v32 = vpop.f32.mrb[47].mxu1 }
 0x157   :  { %951 = vst [vmem:[%s2352_s4 + $0x20] sm:$0xff] %v935_v26  ;;  %v1264_v14 = vadd.f32 %v1263_v32, %v1262_v25 }
 0x158   :  { %vm904_vm5 = vcmp.ge.f32.partialorder %v888_v27, 0.0  ;;  %v920_v33 = vmul.f32 0.2, %v888_v27  ;;  %v867_v34 = vmul.f32 %v2246_v1, %v805_v29  ;;  %v665_v49 = vadd.f32 %v1184_v30, %v2224_v56  ;;  %v1185_v36 = vpop.f32.mrb[48].mxu0 }
 0x159   :  { %v1186_v37 = vpop.f32.mrb[49].mxu0  ;;  %v1265_v38 = vpop.f32.mrb[48].mxu1 }
 0x15a   :  { %v936_v40 = vsel %vm904_vm5, %v888_v27, %v920_v33  ;;  %v889_v21 = vadd.f32 %v2251_v9, %v867_v34  ;;  %v810_v41 = vadd.f32 %v1264_v14, %v665_v49  ;;  %v1187_v43 = vadd.f32 %v1186_v37, %v1185_v36  ;;  %v1266_v44 = vpop.f32.mrb[49].mxu1 }
 0x15b   :  { %952 = vst [vmem:[%s2352_s4 + $0x28] sm:$0xff] %v936_v40  ;;  %v1267_v45 = vadd.f32 %v1266_v44, %v1265_v38 }
 0x15c   :  { %vm905_vm6 = vcmp.ge.f32.partialorder %v889_v21, 0.0  ;;  %v921_v46 = vmul.f32 0.2, %v889_v21  ;;  %v868_v48 = vmul.f32 %v2246_v1, %v810_v41  ;;  %v670_v56 = vadd.f32 %v1187_v43, %v2226_v63  ;;  %v1188_v50 = vpop.f32.mrb[50].mxu0 }
 0x15d   :  { %v1189_v51 = vpop.f32.mrb[51].mxu0  ;;  %v1268_v52 = vpop.f32.mrb[50].mxu1 }
 0x15e   :  { %v937_v53 = vsel %vm905_vm6, %v889_v21, %v921_v46  ;;  %v890_v54 = vadd.f32 %v2251_v9, %v868_v48  ;;  %v815_v28 = vadd.f32 %v1267_v45, %v670_v56  ;;  %v1190_v57 = vadd.f32 %v1189_v51, %v1188_v50  ;;  %v1269_v58 = vpop.f32.mrb[51].mxu1 }
 0x15f   :  { %953 = vst [vmem:[%s2352_s4 + $0x30] sm:$0xff] %v937_v53  ;;  %v1270_v59 = vadd.f32 %v1269_v58, %v1268_v52 }
 0x160   :  { %vm906_vm7 = vcmp.ge.f32.partialorder %v890_v54, 0.0  ;;  %v922_v60 = vmul.f32 0.2, %v890_v54  ;;  %v869_v61 = vmul.f32 %v2246_v1, %v815_v28  ;;  %v675_v63 = vadd.f32 %v1190_v57, %v2228_v6  ;;  %v1191_v62 = vpop.f32.mrb[52].mxu0 }
 0x161   :  { %v1192_v0 = vpop.f32.mrb[53].mxu0  ;;  %v1271_v2 = vpop.f32.mrb[52].mxu1 }
 0x162   :  { %v938_v3 = vsel %vm906_vm7, %v890_v54, %v922_v60  ;;  %v891_v4 = vadd.f32 %v2251_v9, %v869_v61  ;;  %v820_v5 = vadd.f32 %v1270_v59, %v675_v63  ;;  %v1193_v35 = vadd.f32 %v1192_v0, %v1191_v62  ;;  %v1272_v8 = vpop.f32.mrb[53].mxu1 }
 0x163   :  { %954 = vst [vmem:[%s2352_s4 + $0x38] sm:$0xff] %v938_v3  ;;  %v1273_v10 = vadd.f32 %v1272_v8, %v1271_v2 }
 0x164   :  { %vm907_vm8 = vcmp.ge.f32.partialorder %v891_v4, 0.0  ;;  %v923_v11 = vmul.f32 0.2, %v891_v4  ;;  %v870_v7 = vmul.f32 %v2246_v1, %v820_v5  ;;  %v680_v6 = vadd.f32 %v1193_v35, %v2230_v15  ;;  %v1194_v12 = vpop.f32.mrb[54].mxu0 }
 0x165   :  { %v1195_v13 = vpop.f32.mrb[55].mxu0  ;;  %v1274_v16 = vpop.f32.mrb[54].mxu1 }
 0x166   :  { %v939_v17 = vsel %vm907_vm8, %v891_v4, %v923_v11  ;;  %v892_v18 = vadd.f32 %v2251_v9, %v870_v7  ;;  %v825_v19 = vadd.f32 %v1273_v10, %v680_v6  ;;  %v1196_v20 = vadd.f32 %v1195_v13, %v1194_v12  ;;  %v1275_v42 = vpop.f32.mrb[55].mxu1 }
 0x167   :  { %955 = vst [vmem:[%s2352_s4 + $0x40] sm:$0xff] %v939_v17  ;;  %v1276_v22 = vadd.f32 %v1275_v42, %v1274_v16 }
 0x168   :  { %vm908_vm9 = vcmp.ge.f32.partialorder %v892_v18, 0.0  ;;  %v924_v24 = vmul.f32 0.2, %v892_v18  ;;  %v871_v25 = vmul.f32 %v2246_v1, %v825_v19  ;;  %v685_v15 = vadd.f32 %v1196_v20, %v2232_v23  ;;  %v1197_v26 = vpop.f32.mrb[56].mxu0 }
 0x169   :  { %v1198_v27 = vpop.f32.mrb[57].mxu0  ;;  %v1277_v29 = vpop.f32.mrb[56].mxu1 }
 0x16a   :  { %v940_v30 = vsel %vm908_vm9, %v892_v18, %v924_v24  ;;  %v893_v32 = vadd.f32 %v2251_v9, %v871_v25  ;;  %v830_v14 = vadd.f32 %v1276_v22, %v685_v15  ;;  %v1199_v33 = vadd.f32 %v1198_v27, %v1197_v26  ;;  %v1278_v34 = vpop.f32.mrb[57].mxu1 }
 0x16b   :  { %956 = vst [vmem:[%s2352_s4 + $0x48] sm:$0xff] %v940_v30  ;;  %v1279_v49 = vadd.f32 %v1278_v34, %v1277_v29 }
 0x16c   :  { %vm909_vm10 = vcmp.ge.f32.partialorder %v893_v32, 0.0  ;;  %v925_v36 = vmul.f32 0.2, %v893_v32  ;;  %v872_v37 = vmul.f32 %v2246_v1, %v830_v14  ;;  %v690_v23 = vadd.f32 %v1199_v33, %v2234_v31  ;;  %v1200_v38 = vpop.f32.mrb[58].mxu0 }
 0x16d   :  { %v1201_v40 = vpop.f32.mrb[59].mxu0  ;;  %v1280_v21 = vpop.f32.mrb[58].mxu1 }
 0x16e   :  { %v941_v41 = vsel %vm909_vm10, %v893_v32, %v925_v36  ;;  %v894_v43 = vadd.f32 %v2251_v9, %v872_v37  ;;  %v835_v44 = vadd.f32 %v1279_v49, %v690_v23  ;;  %v1202_v45 = vadd.f32 %v1201_v40, %v1200_v38  ;;  %v1281_v46 = vpop.f32.mrb[59].mxu1 }
 0x16f   :  { %957 = vst [vmem:[%s2352_s4 + $0x50] sm:$0xff] %v941_v41  ;;  %v1282_v48 = vadd.f32 %v1281_v46, %v1280_v21 }
 0x170   :  { %vm910_vm11 = vcmp.ge.f32.partialorder %v894_v43, 0.0  ;;  %v926_v56 = vmul.f32 0.2, %v894_v43  ;;  %v873_v50 = vmul.f32 %v2246_v1, %v835_v44  ;;  %v695_v31 = vadd.f32 %v1202_v45, %v2236_v39  ;;  %v1203_v51 = vpop.f32.mrb[60].mxu0 }
 0x171   :  { %v1204_v52 = vpop.f32.mrb[61].mxu0  ;;  %v1283_v53 = vpop.f32.mrb[60].mxu1 }
 0x172   :  { %v942_v54 = vsel %vm910_vm11, %v894_v43, %v926_v56  ;;  %v895_v28 = vadd.f32 %v2251_v9, %v873_v50  ;;  %v840_v57 = vadd.f32 %v1282_v48, %v695_v31  ;;  %v1205_v58 = vadd.f32 %v1204_v52, %v1203_v51  ;;  %v1284_v59 = vpop.f32.mrb[61].mxu1 }
 0x173   :  { %958 = vst [vmem:[%s2352_s4 + $0x58] sm:$0xff] %v942_v54  ;;  %v1285_v60 = vadd.f32 %v1284_v59, %v1283_v53 }
 0x174   :  { %vm911_vm12 = vcmp.ge.f32.partialorder %v895_v28, 0.0  ;;  %v927_v61 = vmul.f32 0.2, %v895_v28  ;;  %v874_v63 = vmul.f32 %v2246_v1, %v840_v57  ;;  %v700_v39 = vadd.f32 %v1205_v58, %v2238_v47  ;;  %v1206_v62 = vpop.f32.mrb[62].mxu0 }
 0x175   :  { %v1207_v0 = vpop.f32.mrb[63].mxu0  ;;  %v1286_v2 = vpop.f32.mrb[62].mxu1 }
 0x176   :  { %v943_v3 = vsel %vm911_vm12, %v895_v28, %v927_v61  ;;  %v896_v4 = vadd.f32 %v2251_v9, %v874_v63  ;;  %v845_v5 = vadd.f32 %v1285_v60, %v700_v39  ;;  %v1208_v35 = vadd.f32 %v1207_v0, %v1206_v62  ;;  %v1287_v8 = vpop.f32.mrb[63].mxu1 }
 0x177   :  { %959 = vst [vmem:[%s2352_s4 + $0x60] sm:$0xff] %v943_v3  ;;  %v1288_v10 = vadd.f32 %v1287_v8, %v1286_v2 }
 0x178   :  { %vm912_vm13 = vcmp.ge.f32.partialorder %v896_v4, 0.0  ;;  %v928_v11 = vmul.f32 0.2, %v896_v4  ;;  %v875_v7 = vmul.f32 %v2246_v1, %v845_v5  ;;  %v705_v47 = vadd.f32 %v1208_v35, %v2240_v55 }
 0x17a   :  { %v944_v6 = vsel %vm912_vm13, %v896_v4, %v928_v11  ;;  %v897_v12 = vadd.f32 %v2251_v9, %v875_v7  ;;  %v850_v13 = vadd.f32 %v1288_v10, %v705_v47 }
 0x17b   :  { %960 = vst [vmem:[%s2352_s4 + $0x68] sm:$0xff] %v944_v6 }
 0x17c   :  { %vm913_vm14 = vcmp.ge.f32.partialorder %v897_v12, 0.0  ;;  %v929_v16 = vmul.f32 0.2, %v897_v12  ;;  %v876_v17 = vmul.f32 %v2246_v1, %v850_v13 }
 0x17e   :  { %v945_v18 = vsel %vm913_vm14, %v897_v12, %v929_v16  ;;  %v898_v19 = vadd.f32 %v2251_v9, %v876_v17 }
 0x17f   :  { %961 = vst [vmem:[%s2352_s4 + $0x70] sm:$0xff] %v945_v18 }
 0x180   :  { %vm914_vm15 = vcmp.ge.f32.partialorder %v898_v19, 0.0  ;;  %v930_v55 = vmul.f32 0.2, %v898_v19 }
 0x182   :  { %v946_v20 = vsel %vm914_vm15, %v898_v19, %v930_v55 }
 0x183   :  { %962 = vst [vmem:[%s2352_s4 + $0x78] sm:$0xff] %v946_v20 }

// kernel: cifar_discriminator_forward.6
= control target key start
LH: loop header
LB: loop body
LE: loop exit
PB: predicated region body
PF: predicated region fallthrough
CT: control target
= control target key end

     0   :  { %s3732_s1 = inlined_call_operand.vmem [shape: f32[2048,256], index: 1, kind: input, shape index: {}]   ;;  %s3733_s0 = inlined_call_operand.vmem [shape: f32[32,2048], index: 0, kind: input, shape index: {}]   ;;  %s3734_s2 = inlined_call_operand.vmem [shape: f32[1,256], index: 2, kind: input, shape index: {}]   ;;  %s3735_s3 = inlined_call_operand.vmem [shape: f32[1,256], index: 3, kind: input, shape index: {}]   ;;  %s3736_s4 = inlined_call_operand.vmem [shape: f32[32,256], index: 4, kind: output, shape index: {}]  }
   0x1   :  { %v82_v0 = vld [vmem:[%s3732_s1 + $0x8] sm:$0xff]  ;;  %v84_v1 = vld [vmem:[%s3732_s1 + $0x18] sm:$0xff]  ;;  %v81_v5 = vld [vmem:[%s3732_s1] sm:$0xff] }
   0x2   :  { %v338_v2 = vld [vmem:[%s3732_s1 + $0x808] sm:$0xff]  ;;  %v1381_v3 = vpack.c.bf16 %v84_v1, %v82_v0  ;;  %v340_v4 = vld [vmem:[%s3732_s1 + $0x818] sm:$0xff]  ;;  %v83_v6 = vld [vmem:[%s3732_s1 + $0x10] sm:$0xff] }
   0x3   :  { %v1637_v7 = vpack.c.bf16 %v340_v4, %v338_v2  ;;  %v1383_v8 = vpack.c.bf16 %v83_v6, %v81_v5  ;;  %v337_v9 = vld [vmem:[%s3732_s1 + $0x800] sm:$0xff]  ;;  %v339_v10 = vld [vmem:[%s3732_s1 + $0x810] sm:$0xff]  ;;  %v86_v11 = vld [vmem:[%s3732_s1 + $0x28] sm:$0xff] }
   0x4   :  { %1382 = vmatprep.subr.bf16.mxu1 %v1381_v3  ;;  %v1639_v12 = vpack.c.bf16 %v339_v10, %v337_v9  ;;  %v88_v13 = vld [vmem:[%s3732_s1 + $0x38] sm:$0xff]  ;;  %v342_v14 = vld [vmem:[%s3732_s1 + $0x828] sm:$0xff]  ;;  %v85_v18 = vld [vmem:[%s3732_s1 + $0x20] sm:$0xff] }
   0x5   :  { %v344_v15 = vld [vmem:[%s3732_s1 + $0x838] sm:$0xff]  ;;  %1638 = vmatprep.subr.bf16.mxu0 %v1637_v7  ;;  %1384 = vmatpush1.bf16.msra.mxu1 %v1383_v8  ;;  %v1385_v16 = vpack.c.bf16 %v88_v13, %v86_v11  ;;  %v87_v19 = vld [vmem:[%s3732_s1 + $0x30] sm:$0xff]  ;;  %v341_v20 = vld [vmem:[%s3732_s1 + $0x820] sm:$0xff] }
   0x6   :  { %v1641_v17 = vpack.c.bf16 %v344_v15, %v342_v14  ;;  %1640 = vmatpush1.bf16.msra.mxu0 %v1639_v12  ;;  %v1387_v21 = vpack.c.bf16 %v87_v19, %v85_v18  ;;  %v343_v22 = vld [vmem:[%s3732_s1 + $0x830] sm:$0xff]  ;;  %v90_v23 = vld [vmem:[%s3732_s1 + $0x48] sm:$0xff]  ;;  %v92_v24 = vld [vmem:[%s3732_s1 + $0x58] sm:$0xff] }
   0x7   :  { %1386 = vmatprep.subr.bf16.mxu1 %v1385_v16  ;;  %v1643_v25 = vpack.c.bf16 %v343_v22, %v341_v20  ;;  %v1389_v26 = vpack.c.bf16 %v92_v24, %v90_v23  ;;  %v346_v27 = vld [vmem:[%s3732_s1 + $0x848] sm:$0xff]  ;;  %v348_v28 = vld [vmem:[%s3732_s1 + $0x858] sm:$0xff]  ;;  %v89_v29 = vld [vmem:[%s3732_s1 + $0x40] sm:$0xff] }
   0x8   :  { %1642 = vmatprep.subr.bf16.mxu0 %v1641_v17  ;;  %v1645_v30 = vpack.c.bf16 %v348_v28, %v346_v27  ;;  %v91_v31 = vld [vmem:[%s3732_s1 + $0x50] sm:$0xff]  ;;  %v345_v32 = vld [vmem:[%s3732_s1 + $0x840] sm:$0xff]  ;;  %v94_v35 = vld [vmem:[%s3732_s1 + $0x68] sm:$0xff] }
   0x9   :  { %v347_v33 = vld [vmem:[%s3732_s1 + $0x850] sm:$0xff]  ;;  %1388 = vmatpush1.bf16.msra.mxu1 %v1387_v21  ;;  %v1391_v34 = vpack.c.bf16 %v91_v31, %v89_v29  ;;  %v96_v36 = vld [vmem:[%s3732_s1 + $0x78] sm:$0xff]  ;;  %v350_v37 = vld [vmem:[%s3732_s1 + $0x868] sm:$0xff] }
   0xa   :  { %1644 = vmatpush1.bf16.msra.mxu0 %v1643_v25  ;;  %1390 = vmatprep.subr.bf16.mxu1 %v1389_v26  ;;  %v1647_v38 = vpack.c.bf16 %v347_v33, %v345_v32  ;;  %v1393_v39 = vpack.c.bf16 %v96_v36, %v94_v35  ;;  %v352_v40 = vld [vmem:[%s3732_s1 + $0x878] sm:$0xff]  ;;  %v93_v41 = vld [vmem:[%s3732_s1 + $0x60] sm:$0xff]  ;;  %v95_v42 = vld [vmem:[%s3732_s1 + $0x70] sm:$0xff] }
   0xb   :  { %1646 = vmatprep.subr.bf16.mxu0 %v1645_v30  ;;  %v1649_v43 = vpack.c.bf16 %v352_v40, %v350_v37  ;;  %v349_v44 = vld [vmem:[%s3732_s1 + $0x860] sm:$0xff]  ;;  %v351_v45 = vld [vmem:[%s3732_s1 + $0x870] sm:$0xff]  ;;  %v98_v46 = vld [vmem:[%s3732_s1 + $0x88] sm:$0xff]  ;;  %v1395_v50 = vpack.c.bf16 %v95_v42, %v93_v41 }
   0xc   :  { %v100_v47 = vld [vmem:[%s3732_s1 + $0x98] sm:$0xff]  ;;  %v354_v48 = vld [vmem:[%s3732_s1 + $0x888] sm:$0xff]  ;;  %v1651_v51 = vpack.c.bf16 %v351_v45, %v349_v44  ;;  %v97_v53 = vld [vmem:[%s3732_s1 + $0x80] sm:$0xff] }
   0xd   :  { %v356_v49 = vld [vmem:[%s3732_s1 + $0x898] sm:$0xff]  ;;  %1392 = vmatpush1.bf16.msra.mxu1 %v1391_v34  ;;  %v1397_v52 = vpack.c.bf16 %v100_v47, %v98_v46  ;;  %v99_v54 = vld [vmem:[%s3732_s1 + $0x90] sm:$0xff]  ;;  %v353_v55 = vld [vmem:[%s3732_s1 + $0x880] sm:$0xff] }
   0xe   :  { %1648 = vmatpush1.bf16.msra.mxu0 %v1647_v38  ;;  %1394 = vmatprep.subr.bf16.mxu1 %v1393_v39  ;;  %v1653_v56 = vpack.c.bf16 %v356_v49, %v354_v48  ;;  %v355_v57 = vld [vmem:[%s3732_s1 + $0x890] sm:$0xff]  ;;  %v102_v58 = vld [vmem:[%s3732_s1 + $0xa8] sm:$0xff]  ;;  %v104_v59 = vld [vmem:[%s3732_s1 + $0xb8] sm:$0xff]  ;;  %v1399_v62 = vpack.c.bf16 %v99_v54, %v97_v53 }
   0xf   :  { %1650 = vmatprep.subr.bf16.mxu0 %v1649_v43  ;;  %v358_v60 = vld [vmem:[%s3732_s1 + $0x8a8] sm:$0xff]  ;;  %v360_v61 = vld [vmem:[%s3732_s1 + $0x8b8] sm:$0xff]  ;;  %v1655_v63 = vpack.c.bf16 %v355_v57, %v353_v55  ;;  %v1401_v0 = vpack.c.bf16 %v104_v59, %v102_v58  ;;  %v101_v1 = vld [vmem:[%s3732_s1 + $0xa0] sm:$0xff] }
  0x10   :  { %v103_v2 = vld [vmem:[%s3732_s1 + $0xb0] sm:$0xff]  ;;  %v357_v3 = vld [vmem:[%s3732_s1 + $0x8a0] sm:$0xff]  ;;  %v1657_v4 = vpack.c.bf16 %v360_v61, %v358_v60  ;;  %v106_v6 = vld [vmem:[%s3732_s1 + $0xc8] sm:$0xff] }
  0x11   :  { %1396 = vmatpush1.bf16.msra.mxu1 %v1395_v50  ;;  %v359_v5 = vld [vmem:[%s3732_s1 + $0x8b0] sm:$0xff]  ;;  %v108_v7 = vld [vmem:[%s3732_s1 + $0xd8] sm:$0xff]  ;;  %v362_v8 = vld [vmem:[%s3732_s1 + $0x8c8] sm:$0xff]  ;;  %v1403_v10 = vpack.c.bf16 %v103_v2, %v101_v1 }
  0x12   :  { %1652 = vmatpush1.bf16.msra.mxu0 %v1651_v51  ;;  %1398 = vmatprep.subr.bf16.mxu1 %v1397_v52  ;;  %v364_v9 = vld [vmem:[%s3732_s1 + $0x8d8] sm:$0xff]  ;;  %v1659_v11 = vpack.c.bf16 %v359_v5, %v357_v3  ;;  %v1405_v12 = vpack.c.bf16 %v108_v7, %v106_v6  ;;  %v105_v13 = vld [vmem:[%s3732_s1 + $0xc0] sm:$0xff]  ;;  %v107_v14 = vld [vmem:[%s3732_s1 + $0xd0] sm:$0xff] }
  0x13   :  { %1654 = vmatprep.subr.bf16.mxu0 %v1653_v56  ;;  %v361_v15 = vld [vmem:[%s3732_s1 + $0x8c0] sm:$0xff]  ;;  %v1661_v16 = vpack.c.bf16 %v364_v9, %v362_v8  ;;  %v363_v17 = vld [vmem:[%s3732_s1 + $0x8d0] sm:$0xff]  ;;  %v110_v18 = vld [vmem:[%s3732_s1 + $0xe8] sm:$0xff]  ;;  %v1407_v22 = vpack.c.bf16 %v107_v14, %v105_v13 }
  0x14   :  { %v112_v19 = vld [vmem:[%s3732_s1 + $0xf8] sm:$0xff]  ;;  %v366_v20 = vld [vmem:[%s3732_s1 + $0x8e8] sm:$0xff]  ;;  %v1663_v23 = vpack.c.bf16 %v363_v17, %v361_v15  ;;  %v109_v25 = vld [vmem:[%s3732_s1 + $0xe0] sm:$0xff] }
  0x15   :  { %1400 = vmatpush1.bf16.msra.mxu1 %v1399_v62  ;;  %v368_v21 = vld [vmem:[%s3732_s1 + $0x8f8] sm:$0xff]  ;;  %v1409_v24 = vpack.c.bf16 %v112_v19, %v110_v18  ;;  %v111_v26 = vld [vmem:[%s3732_s1 + $0xf0] sm:$0xff]  ;;  %v365_v27 = vld [vmem:[%s3732_s1 + $0x8e0] sm:$0xff] }
  0x16   :  { %1656 = vmatpush1.bf16.msra.mxu0 %v1655_v63  ;;  %1402 = vmatprep.subr.bf16.mxu1 %v1401_v0  ;;  %v1665_v28 = vpack.c.bf16 %v368_v21, %v366_v20  ;;  %v367_v29 = vld [vmem:[%s3732_s1 + $0x8f0] sm:$0xff]  ;;  %v114_v30 = vld [vmem:[%s3732_s1 + $0x108] sm:$0xff]  ;;  %v116_v31 = vld [vmem:[%s3732_s1 + $0x118] sm:$0xff]  ;;  %v1411_v34 = vpack.c.bf16 %v111_v26, %v109_v25 }
  0x17   :  { %1658 = vmatprep.subr.bf16.mxu0 %v1657_v4  ;;  %v370_v32 = vld [vmem:[%s3732_s1 + $0x908] sm:$0xff]  ;;  %v372_v33 = vld [vmem:[%s3732_s1 + $0x918] sm:$0xff]  ;;  %v1667_v35 = vpack.c.bf16 %v367_v29, %v365_v27  ;;  %v1413_v36 = vpack.c.bf16 %v116_v31, %v114_v30  ;;  %v113_v37 = vld [vmem:[%s3732_s1 + $0x100] sm:$0xff] }
  0x18   :  { %v115_v38 = vld [vmem:[%s3732_s1 + $0x110] sm:$0xff]  ;;  %v369_v39 = vld [vmem:[%s3732_s1 + $0x900] sm:$0xff]  ;;  %v1669_v40 = vpack.c.bf16 %v372_v33, %v370_v32  ;;  %v118_v42 = vld [vmem:[%s3732_s1 + $0x128] sm:$0xff] }
  0x19   :  { %1404 = vmatpush1.bf16.msra.mxu1 %v1403_v10  ;;  %v371_v41 = vld [vmem:[%s3732_s1 + $0x910] sm:$0xff]  ;;  %v120_v43 = vld [vmem:[%s3732_s1 + $0x138] sm:$0xff]  ;;  %v374_v44 = vld [vmem:[%s3732_s1 + $0x928] sm:$0xff]  ;;  %v1415_v46 = vpack.c.bf16 %v115_v38, %v113_v37 }
  0x1a   :  { %1660 = vmatpush1.bf16.msra.mxu0 %v1659_v11  ;;  %1406 = vmatprep.subr.bf16.mxu1 %v1405_v12  ;;  %v376_v45 = vld [vmem:[%s3732_s1 + $0x938] sm:$0xff]  ;;  %v1671_v47 = vpack.c.bf16 %v371_v41, %v369_v39  ;;  %v1417_v48 = vpack.c.bf16 %v120_v43, %v118_v42  ;;  %v117_v49 = vld [vmem:[%s3732_s1 + $0x120] sm:$0xff]  ;;  %v119_v50 = vld [vmem:[%s3732_s1 + $0x130] sm:$0xff] }
  0x1b   :  { %1662 = vmatprep.subr.bf16.mxu0 %v1661_v16  ;;  %v373_v51 = vld [vmem:[%s3732_s1 + $0x920] sm:$0xff]  ;;  %v1673_v52 = vpack.c.bf16 %v376_v45, %v374_v44  ;;  %v375_v53 = vld [vmem:[%s3732_s1 + $0x930] sm:$0xff]  ;;  %v122_v54 = vld [vmem:[%s3732_s1 + $0x148] sm:$0xff]  ;;  %v1419_v58 = vpack.c.bf16 %v119_v50, %v117_v49 }
  0x1c   :  { %v124_v55 = vld [vmem:[%s3732_s1 + $0x158] sm:$0xff]  ;;  %v378_v56 = vld [vmem:[%s3732_s1 + $0x948] sm:$0xff]  ;;  %v1675_v59 = vpack.c.bf16 %v375_v53, %v373_v51  ;;  %v121_v61 = vld [vmem:[%s3732_s1 + $0x140] sm:$0xff] }
  0x1d   :  { %1408 = vmatpush1.bf16.msra.mxu1 %v1407_v22  ;;  %v380_v57 = vld [vmem:[%s3732_s1 + $0x958] sm:$0xff]  ;;  %v1421_v60 = vpack.c.bf16 %v124_v55, %v122_v54  ;;  %v123_v62 = vld [vmem:[%s3732_s1 + $0x150] sm:$0xff]  ;;  %v377_v63 = vld [vmem:[%s3732_s1 + $0x940] sm:$0xff] }
  0x1e   :  { %1664 = vmatpush1.bf16.msra.mxu0 %v1663_v23  ;;  %1410 = vmatprep.subr.bf16.mxu1 %v1409_v24  ;;  %v1677_v0 = vpack.c.bf16 %v380_v57, %v378_v56  ;;  %v379_v1 = vld [vmem:[%s3732_s1 + $0x950] sm:$0xff]  ;;  %v126_v2 = vld [vmem:[%s3732_s1 + $0x168] sm:$0xff]  ;;  %v128_v3 = vld [vmem:[%s3732_s1 + $0x178] sm:$0xff]  ;;  %v1423_v6 = vpack.c.bf16 %v123_v62, %v121_v61 }
  0x1f   :  { %1666 = vmatprep.subr.bf16.mxu0 %v1665_v28  ;;  %v382_v4 = vld [vmem:[%s3732_s1 + $0x968] sm:$0xff]  ;;  %v384_v5 = vld [vmem:[%s3732_s1 + $0x978] sm:$0xff]  ;;  %v125_v7 = vld [vmem:[%s3732_s1 + $0x160] sm:$0xff]  ;;  %v1679_v8 = vpack.c.bf16 %v379_v1, %v377_v63  ;;  %v1425_v9 = vpack.c.bf16 %v128_v3, %v126_v2 }
  0x20   :  { %v127_v10 = vld [vmem:[%s3732_s1 + $0x170] sm:$0xff]  ;;  %v381_v11 = vld [vmem:[%s3732_s1 + $0x960] sm:$0xff]  ;;  %v1681_v13 = vpack.c.bf16 %v384_v5, %v382_v4  ;;  %v130_v14 = vld [vmem:[%s3732_s1 + $0x188] sm:$0xff] }
  0x21   :  { %1412 = vmatpush1.bf16.msra.mxu1 %v1411_v34  ;;  %v383_v12 = vld [vmem:[%s3732_s1 + $0x970] sm:$0xff]  ;;  %v132_v15 = vld [vmem:[%s3732_s1 + $0x198] sm:$0xff]  ;;  %v18_v16 = vld [vmem:[%s3733_s0 + $0x8] sm:$0xff]  ;;  %v1427_v20 = vpack.c.bf16 %v127_v10, %v125_v7 }
  0x22   :  { %1668 = vmatpush1.bf16.msra.mxu0 %v1667_v35  ;;  %1414 = vmatprep.subr.bf16.mxu1 %v1413_v36  ;;  %v386_v17 = vld [vmem:[%s3732_s1 + $0x988] sm:$0xff]  ;;  %v388_v18 = vld [vmem:[%s3732_s1 + $0x998] sm:$0xff]  ;;  %v1683_v21 = vpack.c.bf16 %v383_v12, %v381_v11  ;;  %v1429_v22 = vpack.c.bf16 %v132_v15, %v130_v14  ;;  %v129_v23 = vld [vmem:[%s3732_s1 + $0x180] sm:$0xff] }
  0x23   :  { %1670 = vmatprep.subr.bf16.mxu0 %v1669_v40  ;;  %657 = vmatprep.mubr.f32.mxu1 %v18_v16  ;;  %v26_v19 = vld [vmem:[%s3733_s0 + $0x48] sm:$0xff]  ;;  %v131_v24 = vld [vmem:[%s3732_s1 + $0x190] sm:$0xff]  ;;  %v385_v25 = vld [vmem:[%s3732_s1 + $0x980] sm:$0xff]  ;;  %v1685_v26 = vpack.c.bf16 %v388_v18, %v386_v17 }
  0x24   :  { %1013 = vmatprep.mubr.f32.mxu0 %v26_v19  ;;  %v387_v27 = vld [vmem:[%s3732_s1 + $0x990] sm:$0xff]  ;;  %v134_v28 = vld [vmem:[%s3732_s1 + $0x1a8] sm:$0xff]  ;;  %v136_v29 = vld [vmem:[%s3732_s1 + $0x1b8] sm:$0xff]  ;;  %v1431_v32 = vpack.c.bf16 %v131_v24, %v129_v23 }
  0x25   :  { %1416 = vmatpush1.bf16.msra.mxu1 %v1415_v46  ;;  %v390_v30 = vld [vmem:[%s3732_s1 + $0x9a8] sm:$0xff]  ;;  %v392_v31 = vld [vmem:[%s3732_s1 + $0x9b8] sm:$0xff]  ;;  %v1687_v33 = vpack.c.bf16 %v387_v27, %v385_v25  ;;  %v1433_v34 = vpack.c.bf16 %v136_v29, %v134_v28  ;;  %v133_v35 = vld [vmem:[%s3732_s1 + $0x1a0] sm:$0xff] }
  0x26   :  { %1672 = vmatpush1.bf16.msra.mxu0 %v1671_v47  ;;  %1418 = vmatprep.subr.bf16.mxu1 %v1417_v48  ;;  %v135_v36 = vld [vmem:[%s3732_s1 + $0x1b0] sm:$0xff]  ;;  %v389_v37 = vld [vmem:[%s3732_s1 + $0x9a0] sm:$0xff]  ;;  %v1689_v38 = vpack.c.bf16 %v392_v31, %v390_v30  ;;  %v138_v40 = vld [vmem:[%s3732_s1 + $0x1c8] sm:$0xff] }
  0x27   :  { %1674 = vmatprep.subr.bf16.mxu0 %v1673_v52  ;;  %v391_v39 = vld [vmem:[%s3732_s1 + $0x9b0] sm:$0xff]  ;;  %v140_v41 = vld [vmem:[%s3732_s1 + $0x1d8] sm:$0xff]  ;;  %v394_v42 = vld [vmem:[%s3732_s1 + $0x9c8] sm:$0xff]  ;;  %v1435_v44 = vpack.c.bf16 %v135_v36, %v133_v35 }
  0x28   :  { %v396_v43 = vld [vmem:[%s3732_s1 + $0x9d8] sm:$0xff]  ;;  %v1691_v45 = vpack.c.bf16 %v391_v39, %v389_v37  ;;  %v1437_v46 = vpack.c.bf16 %v140_v41, %v138_v40  ;;  %v137_v47 = vld [vmem:[%s3732_s1 + $0x1c0] sm:$0xff]  ;;  %v139_v48 = vld [vmem:[%s3732_s1 + $0x1d0] sm:$0xff] }
  0x29   :  { %1420 = vmatpush1.bf16.msra.mxu1 %v1419_v58  ;;  %v393_v49 = vld [vmem:[%s3732_s1 + $0x9c0] sm:$0xff]  ;;  %v1693_v50 = vpack.c.bf16 %v396_v43, %v394_v42  ;;  %v395_v51 = vld [vmem:[%s3732_s1 + $0x9d0] sm:$0xff]  ;;  %v142_v52 = vld [vmem:[%s3732_s1 + $0x1e8] sm:$0xff]  ;;  %v1439_v56 = vpack.c.bf16 %v139_v48, %v137_v47 }
  0x2a   :  { %1676 = vmatpush1.bf16.msra.mxu0 %v1675_v59  ;;  %1422 = vmatprep.subr.bf16.mxu1 %v1421_v60  ;;  %v144_v53 = vld [vmem:[%s3732_s1 + $0x1f8] sm:$0xff]  ;;  %v398_v54 = vld [vmem:[%s3732_s1 + $0x9e8] sm:$0xff]  ;;  %v1695_v57 = vpack.c.bf16 %v395_v51, %v393_v49  ;;  %v141_v59 = vld [vmem:[%s3732_s1 + $0x1e0] sm:$0xff] }
  0x2b   :  { %1678 = vmatprep.subr.bf16.mxu0 %v1677_v0  ;;  %v400_v55 = vld [vmem:[%s3732_s1 + $0x9f8] sm:$0xff]  ;;  %v1441_v58 = vpack.c.bf16 %v144_v53, %v142_v52  ;;  %v143_v60 = vld [vmem:[%s3732_s1 + $0x1f0] sm:$0xff]  ;;  %v397_v61 = vld [vmem:[%s3732_s1 + $0x9e0] sm:$0xff] }
  0x2c   :  { %v1697_v62 = vpack.c.bf16 %v400_v55, %v398_v54  ;;  %v399_v63 = vld [vmem:[%s3732_s1 + $0x9f0] sm:$0xff]  ;;  %v146_v0 = vld [vmem:[%s3732_s1 + $0x208] sm:$0xff]  ;;  %v148_v1 = vld [vmem:[%s3732_s1 + $0x218] sm:$0xff]  ;;  %v1443_v4 = vpack.c.bf16 %v143_v60, %v141_v59 }
  0x2d   :  { %1424 = vmatpush1.bf16.msra.mxu1 %v1423_v6  ;;  %v402_v2 = vld [vmem:[%s3732_s1 + $0xa08] sm:$0xff]  ;;  %v404_v3 = vld [vmem:[%s3732_s1 + $0xa18] sm:$0xff]  ;;  %v1699_v5 = vpack.c.bf16 %v399_v63, %v397_v61  ;;  %v1445_v6 = vpack.c.bf16 %v148_v1, %v146_v0  ;;  %v145_v7 = vld [vmem:[%s3732_s1 + $0x200] sm:$0xff] }
  0x2e   :  { %1680 = vmatpush1.bf16.msra.mxu0 %v1679_v8  ;;  %1426 = vmatprep.subr.bf16.mxu1 %v1425_v9  ;;  %v147_v8 = vld [vmem:[%s3732_s1 + $0x210] sm:$0xff]  ;;  %v401_v9 = vld [vmem:[%s3732_s1 + $0xa00] sm:$0xff]  ;;  %v1701_v10 = vpack.c.bf16 %v404_v3, %v402_v2  ;;  %v150_v12 = vld [vmem:[%s3732_s1 + $0x228] sm:$0xff] }
  0x2f   :  { %1682 = vmatprep.subr.bf16.mxu0 %v1681_v13  ;;  %v403_v11 = vld [vmem:[%s3732_s1 + $0xa10] sm:$0xff]  ;;  %v152_v13 = vld [vmem:[%s3732_s1 + $0x238] sm:$0xff]  ;;  %v406_v14 = vld [vmem:[%s3732_s1 + $0xa28] sm:$0xff]  ;;  %v1447_v17 = vpack.c.bf16 %v147_v8, %v145_v7 }
  0x30   :  { %v408_v15 = vld [vmem:[%s3732_s1 + $0xa38] sm:$0xff]  ;;  %v17_v16 = vld [vmem:[%s3733_s0] sm:$0xff]  ;;  %v1703_v19 = vpack.c.bf16 %v403_v11, %v401_v9  ;;  %v407_v25 = vld [vmem:[%s3732_s1 + $0xa30] sm:$0xff] }
  0x31   :  { %1428 = vmatpush1.bf16.msra.mxu1 %v1427_v20  ;;  %v25_v18 = vld [vmem:[%s3733_s0 + $0x40] sm:$0xff]  ;;  %v1449_v20 = vpack.c.bf16 %v152_v13, %v150_v12  ;;  %v1705_v24 = vpack.c.bf16 %v408_v15, %v406_v14  ;;  %v156_v27 = vld [vmem:[%s3732_s1 + $0x258] sm:$0xff]  ;;  %v410_v28 = vld [vmem:[%s3732_s1 + $0xa48] sm:$0xff] }
  0x32   :  { %1684 = vmatpush1.bf16.msra.mxu0 %v1683_v21  ;;  %1430 = vmatprep.subr.bf16.mxu1 %v1429_v22  ;;  %v149_v21 = vld [vmem:[%s3732_s1 + $0x220] sm:$0xff]  ;;  %v151_v22 = vld [vmem:[%s3732_s1 + $0x230] sm:$0xff]  ;;  %v412_v29 = vld [vmem:[%s3732_s1 + $0xa58] sm:$0xff] }
  0x33   :  { %1686 = vmatprep.subr.bf16.mxu0 %v1685_v26  ;;  %v405_v23 = vld [vmem:[%s3732_s1 + $0xa20] sm:$0xff]  ;;  %v154_v26 = vld [vmem:[%s3732_s1 + $0x248] sm:$0xff]  ;;  %v1451_v30 = vpack.c.bf16 %v151_v22, %v149_v21  ;;  %v1709_v36 = vpack.c.bf16 %v412_v29, %v410_v28  ;;  %v411_v37 = vld [vmem:[%s3732_s1 + $0xa50] sm:$0xff] }
  0x34   :  { %v1707_v31 = vpack.c.bf16 %v407_v25, %v405_v23  ;;  %v409_v35 = vld [vmem:[%s3732_s1 + $0xa40] sm:$0xff]  ;;  %v160_v39 = vld [vmem:[%s3732_s1 + $0x278] sm:$0xff]  ;;  %v414_v40 = vld [vmem:[%s3732_s1 + $0xa68] sm:$0xff] }
  0x35   :  { %1432 = vmatpush1.bf16.msra.mxu1 %v1431_v32  ;;  %v1453_v32 = vpack.c.bf16 %v156_v27, %v154_v26  ;;  %v416_v41 = vld [vmem:[%s3732_s1 + $0xa78] sm:$0xff]  ;;  %v1711_v43 = vpack.c.bf16 %v411_v37, %v409_v35  ;;  %v413_v47 = vld [vmem:[%s3732_s1 + $0xa60] sm:$0xff]  ;;  %v415_v49 = vld [vmem:[%s3732_s1 + $0xa70] sm:$0xff] }
  0x36   :  { %1688 = vmatpush1.bf16.msra.mxu0 %v1687_v33  ;;  %1434 = vmatprep.subr.bf16.mxu1 %v1433_v34  ;;  %v153_v33 = vld [vmem:[%s3732_s1 + $0x240] sm:$0xff]  ;;  %v155_v34 = vld [vmem:[%s3732_s1 + $0x250] sm:$0xff]  ;;  %v1713_v48 = vpack.c.bf16 %v416_v41, %v414_v40  ;;  %v164_v51 = vld [vmem:[%s3732_s1 + $0x298] sm:$0xff] }
  0x37   :  { %1690 = vmatprep.subr.bf16.mxu0 %v1689_v38  ;;  %v158_v38 = vld [vmem:[%s3732_s1 + $0x268] sm:$0xff]  ;;  %v1455_v42 = vpack.c.bf16 %v155_v34, %v153_v33  ;;  %v420_v53 = vld [vmem:[%s3732_s1 + $0xa98] sm:$0xff]  ;;  %v161_v55 = vld [vmem:[%s3732_s1 + $0x280] sm:$0xff] }
  0x38   :  { %v418_v52 = vld [vmem:[%s3732_s1 + $0xa88] sm:$0xff]  ;;  %v417_v59 = vld [vmem:[%s3732_s1 + $0xa80] sm:$0xff]  ;;  %v419_v60 = vld [vmem:[%s3732_s1 + $0xa90] sm:$0xff] }
  0x39   :  { %1436 = vmatpush1.bf16.msra.mxu1 %v1435_v44  ;;  %v1457_v44 = vpack.c.bf16 %v160_v39, %v158_v38  ;;  %v1717_v61 = vpack.c.bf16 %v420_v53, %v418_v52  ;;  %v168_v63 = vld [vmem:[%s3732_s1 + $0x2b8] sm:$0xff]  ;;  %v34_v0 = vld [vmem:[%s3733_s0 + $0x88] sm:$0xff]  ;;  %v33_v7 = vld [vmem:[%s3733_s0 + $0x80] sm:$0xff]  ;;  %v1719_v8 = vpack.c.bf16 %v419_v60, %v417_v59 }
  0x3a   :  { %1692 = vmatpush1.bf16.msra.mxu0 %v1691_v45  ;;  %1438 = vmatprep.subr.bf16.mxu1 %v1437_v46  ;;  %v157_v45 = vld [vmem:[%s3732_s1 + $0x260] sm:$0xff]  ;;  %v159_v46 = vld [vmem:[%s3732_s1 + $0x270] sm:$0xff]  ;;  %v422_v1 = vld [vmem:[%s3732_s1 + $0xaa8] sm:$0xff] }
  0x3b   :  { %1694 = vmatprep.subr.bf16.mxu0 %v1693_v50  ;;  %v162_v50 = vld [vmem:[%s3732_s1 + $0x288] sm:$0xff]  ;;  %v1459_v54 = vpack.c.bf16 %v159_v46, %v157_v45  ;;  %v424_v2 = vld [vmem:[%s3732_s1 + $0xab8] sm:$0xff]  ;;  %v423_v11 = vld [vmem:[%s3732_s1 + $0xab0] sm:$0xff] }
  0x3c   :  { %v42_v3 = vld [vmem:[%s3733_s0 + $0xc8] sm:$0xff]  ;;  %v41_v12 = vld [vmem:[%s3733_s0 + $0xc0] sm:$0xff]  ;;  %v1721_v13 = vpack.c.bf16 %v424_v2, %v422_v1  ;;  %v172_v15 = vld [vmem:[%s3732_s1 + $0x2d8] sm:$0xff] }
  0x3d   :  { %1440 = vmatpush1.bf16.msra.mxu1 %v1439_v56  ;;  %v1715_v56 = vpack.c.bf16 %v415_v49, %v413_v47  ;;  %v170_v14 = vld [vmem:[%s3732_s1 + $0x2c8] sm:$0xff]  ;;  %v169_v21 = vld [vmem:[%s3732_s1 + $0x2c0] sm:$0xff]  ;;  %v171_v22 = vld [vmem:[%s3732_s1 + $0x2d0] sm:$0xff] }
  0x3e   :  { %1696 = vmatpush1.bf16.msra.mxu0 %v1695_v57  ;;  %1442 = vmatprep.subr.bf16.mxu1 %v1441_v58  ;;  %v1461_v57 = vpack.c.bf16 %v164_v51, %v162_v50  ;;  %v163_v58 = vld [vmem:[%s3732_s1 + $0x290] sm:$0xff]  ;;  %v49_v23 = vld [vmem:[%s3733_s0 + $0x100] sm:$0xff]  ;;  %v1469_v25 = vpack.c.bf16 %v172_v15, %v170_v14  ;;  %v430_v33 = vld [vmem:[%s3732_s1 + $0xae8] sm:$0xff] }
  0x3f   :  { %1698 = vmatprep.subr.bf16.mxu0 %v1697_v62  ;;  %v166_v62 = vld [vmem:[%s3732_s1 + $0x2a8] sm:$0xff]  ;;  %v425_v26 = vld [vmem:[%s3732_s1 + $0xac0] sm:$0xff]  ;;  %v427_v27 = vld [vmem:[%s3732_s1 + $0xad0] sm:$0xff] }
  0x40   :  { %v1465_v9 = vpack.c.bf16 %v168_v63, %v166_v62  ;;  %v57_v28 = vld [vmem:[%s3733_s0 + $0x140] sm:$0xff]  ;;  %v432_v34 = vld [vmem:[%s3732_s1 + $0xaf8] sm:$0xff]  ;;  %v74_v35 = vld [vmem:[%s3733_s0 + $0x1c8] sm:$0xff]  ;;  %v1727_v40 = vpack.c.bf16 %v427_v27, %v425_v26 }
  0x41   :  { %1444 = vmatpush1.bf16.msra.mxu1 %v1443_v4  ;;  %v1463_v4 = vpack.c.bf16 %v163_v58, %v161_v55  ;;  %v173_v37 = vld [vmem:[%s3732_s1 + $0x2e0] sm:$0xff]  ;;  %v175_v38 = vld [vmem:[%s3732_s1 + $0x2f0] sm:$0xff]  ;;  %v1729_v45 = vpack.c.bf16 %v432_v34, %v430_v33  ;;  %v178_v46 = vld [vmem:[%s3732_s1 + $0x308] sm:$0xff] }
  0x42   :  { %1700 = vmatpush1.bf16.msra.mxu0 %v1699_v5  ;;  %1446 = vmatprep.subr.bf16.mxu1 %v1445_v6  ;;  %v165_v5 = vld [vmem:[%s3732_s1 + $0x2a0] sm:$0xff]  ;;  %v167_v6 = vld [vmem:[%s3732_s1 + $0x2b0] sm:$0xff]  ;;  %v180_v47 = vld [vmem:[%s3732_s1 + $0x318] sm:$0xff]  ;;  %v1475_v52 = vpack.c.bf16 %v175_v38, %v173_v37 }
  0x43   :  { %1702 = vmatprep.subr.bf16.mxu0 %v1701_v10  ;;  %v421_v10 = vld [vmem:[%s3732_s1 + $0xaa0] sm:$0xff]  ;;  %v434_v49 = vld [vmem:[%s3732_s1 + $0xb08] sm:$0xff]  ;;  %v436_v50 = vld [vmem:[%s3732_s1 + $0xb18] sm:$0xff] }
  0x44   :  { %658 = vmatmul.mubr.f32.vlgmr.msra.gmra.mrb[0].mxu1 %v17_v16  ;;  %v50_v16 = vld [vmem:[%s3733_s0 + $0x108] sm:$0xff]  ;;  %v65_v39 = vld [vmem:[%s3733_s0 + $0x180] sm:$0xff]  ;;  %v28_v51 = vld [vmem:[%s3733_s0 + $0x58] sm:$0xff]  ;;  %v1733_v58 = vpack.c.bf16 %v436_v50, %v434_v49 }
  0x45   :  { %1448 = vmatpush1.bf16.msra.mxu1 %v1447_v17  ;;  %1014 = vmatmul.mubr.f32.vlgmr.msra.gmra.mrb[0].mxu0 %v25_v18  ;;  %v426_v17 = vld [vmem:[%s3732_s1 + $0xac8] sm:$0xff]  ;;  %v428_v18 = vld [vmem:[%s3732_s1 + $0xad8] sm:$0xff]  ;;  %v177_v55 = vld [vmem:[%s3732_s1 + $0x300] sm:$0xff] }
  0x46   :  { %1704 = vmatpush1.bf16.msra.mxu0 %v1703_v19  ;;  %1450 = vmatprep.subr.bf16.mxu1 %v1449_v20  ;;  %v58_v19 = vld [vmem:[%s3733_s0 + $0x148] sm:$0xff]  ;;  %v1467_v20 = vpack.c.bf16 %v167_v6, %v165_v5  ;;  %v1725_v29 = vpack.c.bf16 %v428_v18, %v426_v17  ;;  %v435_v59 = vld [vmem:[%s3732_s1 + $0xb10] sm:$0xff]  ;;  %v440_v63 = vld [vmem:[%s3732_s1 + $0xb38] sm:$0xff] }
  0x47   :  { %1706 = vmatprep.subr.bf16.mxu0 %v1705_v24  ;;  %663 = vmatprep.mubr.f32.mxu1 %v34_v0  ;;  %v1723_v24 = vpack.c.bf16 %v423_v11, %v421_v10  ;;  %v182_v60 = vld [vmem:[%s3732_s1 + $0x328] sm:$0xff]  ;;  %v437_v5 = vld [vmem:[%s3732_s1 + $0xb20] sm:$0xff]  ;;  %v444_v11 = vld [vmem:[%s3732_s1 + $0xb58] sm:$0xff] }
  0x48   :  { %1019 = vmatprep.mubr.f32.mxu0 %v42_v3  ;;  %664 = vmatmul.mubr.f32.gmra.mrb[2].mxu1 %v33_v7  ;;  %v438_v62 = vld [vmem:[%s3732_s1 + $0xb28] sm:$0xff]  ;;  %v181_v3 = vld [vmem:[%s3732_s1 + $0x320] sm:$0xff]  ;;  %v439_v7 = vld [vmem:[%s3732_s1 + $0xb30] sm:$0xff] }
  0x49   :  { %1452 = vmatpush1.bf16.msra.mxu1 %v1451_v30  ;;  %1020 = vmatmul.mubr.f32.gmra.mrb[2].mxu0 %v41_v12  ;;  %v174_v30 = vld [vmem:[%s3732_s1 + $0x2e8] sm:$0xff]  ;;  %v1737_v6 = vpack.c.bf16 %v440_v63, %v438_v62  ;;  %v185_v15 = vld [vmem:[%s3732_s1 + $0x340] sm:$0xff]  ;;  %v196_v33 = vld [vmem:[%s3732_s1 + $0x398] sm:$0xff] }
  0x4a   :  { %1708 = vmatpush1.bf16.msra.mxu0 %v1707_v31  ;;  %1454 = vmatprep.subr.bf16.mxu1 %v1453_v32  ;;  %v176_v31 = vld [vmem:[%s3732_s1 + $0x2f8] sm:$0xff]  ;;  %v66_v32 = vld [vmem:[%s3733_s0 + $0x188] sm:$0xff]  ;;  %v441_v17 = vld [vmem:[%s3732_s1 + $0xb40] sm:$0xff] }
  0x4b   :  { %1710 = vmatprep.subr.bf16.mxu0 %v1709_v36  ;;  %669 = vmatprep.mubr.f32.mxu1 %v50_v16  ;;  %v1471_v36 = vpack.c.bf16 %v171_v22, %v169_v21  ;;  %v1473_v41 = vpack.c.bf16 %v176_v31, %v174_v30  ;;  %v442_v10 = vld [vmem:[%s3732_s1 + $0xb48] sm:$0xff]  ;;  %v187_v16 = vld [vmem:[%s3732_s1 + $0x350] sm:$0xff]  ;;  %v192_v21 = vld [vmem:[%s3732_s1 + $0x378] sm:$0xff] }
  0x4c   :  { %1025 = vmatprep.mubr.f32.mxu0 %v58_v19  ;;  %670 = vmatmul.mubr.f32.gmra.mrb[4].mxu1 %v49_v23  ;;  %v1741_v18 = vpack.c.bf16 %v444_v11, %v442_v10  ;;  %v443_v19 = vld [vmem:[%s3732_s1 + $0xb50] sm:$0xff]  ;;  %v446_v22 = vld [vmem:[%s3732_s1 + $0xb68] sm:$0xff]  ;;  %v448_v23 = vld [vmem:[%s3732_s1 + $0xb78] sm:$0xff] }
  0x4d   :  { %1456 = vmatpush1.bf16.msra.mxu1 %v1455_v42  ;;  %1026 = vmatmul.mubr.f32.gmra.mrb[4].mxu0 %v57_v28  ;;  %v429_v42 = vld [vmem:[%s3732_s1 + $0xae0] sm:$0xff]  ;;  %v191_v28 = vld [vmem:[%s3732_s1 + $0x370] sm:$0xff]  ;;  %v1745_v30 = vpack.c.bf16 %v448_v23, %v446_v22  ;;  %v450_v34 = vld [vmem:[%s3732_s1 + $0xb88] sm:$0xff] }
  0x4e   :  { %1712 = vmatpush1.bf16.msra.mxu0 %v1711_v43  ;;  %1458 = vmatprep.subr.bf16.mxu1 %v1457_v44  ;;  %v431_v43 = vld [vmem:[%s3732_s1 + $0xaf0] sm:$0xff]  ;;  %v73_v44 = vld [vmem:[%s3733_s0 + $0x1c0] sm:$0xff] }
  0x4f   :  { %1714 = vmatprep.subr.bf16.mxu0 %v1713_v48  ;;  %675 = vmatprep.mubr.f32.mxu1 %v66_v32  ;;  %v20_v48 = vld [vmem:[%s3733_s0 + $0x18] sm:$0xff]  ;;  %v1731_v53 = vpack.c.bf16 %v431_v43, %v429_v42  ;;  %v189_v27 = vld [vmem:[%s3732_s1 + $0x360] sm:$0xff]  ;;  %v447_v31 = vld [vmem:[%s3732_s1 + $0xb70] sm:$0xff] }
  0x50   :  { %1031 = vmatprep.mubr.f32.mxu0 %v74_v35  ;;  %676 = vmatmul.mubr.f32.gmra.mrb[6].mxu1 %v65_v39  ;;  %v194_v32 = vld [vmem:[%s3732_s1 + $0x388] sm:$0xff]  ;;  %v452_v35 = vld [vmem:[%s3732_s1 + $0xb98] sm:$0xff]  ;;  %v193_v39 = vld [vmem:[%s3732_s1 + $0x380] sm:$0xff] }
  0x51   :  { %1460 = vmatpush1.bf16.msra.mxu1 %v1459_v54  ;;  %1032 = vmatmul.mubr.f32.gmra.mrb[6].mxu0 %v73_v44  ;;  %v1477_v54 = vpack.c.bf16 %v180_v47, %v178_v46  ;;  %v1493_v38 = vpack.c.bf16 %v196_v33, %v194_v32  ;;  %v1749_v42 = vpack.c.bf16 %v452_v35, %v450_v34  ;;  %v451_v43 = vld [vmem:[%s3732_s1 + $0xb90] sm:$0xff]  ;;  %v198_v44 = vld [vmem:[%s3732_s1 + $0x3a8] sm:$0xff]  ;;  %v456_v47 = vld [vmem:[%s3732_s1 + $0xbb8] sm:$0xff] }
  0x52   :  { %1716 = vmatpush1.bf16.msra.mxu0 %v1715_v56  ;;  %1462 = vmatprep.subr.bf16.mxu1 %v1461_v57  ;;  %v179_v56 = vld [vmem:[%s3732_s1 + $0x310] sm:$0xff]  ;;  %v433_v57 = vld [vmem:[%s3732_s1 + $0xb00] sm:$0xff]  ;;  %v454_v46 = vld [vmem:[%s3732_s1 + $0xba8] sm:$0xff] }
  0x53   :  { %1718 = vmatprep.subr.bf16.mxu0 %v1717_v61  ;;  %746 = vmatprep.mubr.f32.mxu1 %v20_v48  ;;  %v184_v61 = vld [vmem:[%s3732_s1 + $0x338] sm:$0xff]  ;;  %v1479_v0 = vpack.c.bf16 %v179_v56, %v177_v55  ;;  %v1735_v1 = vpack.c.bf16 %v435_v59, %v433_v57  ;;  %v455_v55 = vld [vmem:[%s3732_s1 + $0xbb0] sm:$0xff]  ;;  %v202_v56 = vld [vmem:[%s3732_s1 + $0x3c8] sm:$0xff] }
  0x54   :  { %1102 = vmatprep.mubr.f32.mxu0 %v28_v51  ;;  %v1481_v2 = vpack.c.bf16 %v184_v61, %v182_v60  ;;  %v197_v51 = vld [vmem:[%s3732_s1 + $0x3a0] sm:$0xff]  ;;  %v204_v57 = vld [vmem:[%s3732_s1 + $0x3d8] sm:$0xff]  ;;  %v19_v32 = vld [vmem:[%s3733_s0 + $0x10] sm:$0xff] }
  0x55   :  { %1464 = vmatpush1.bf16.msra.mxu1 %v1463_v4  ;;  %v183_v4 = vld [vmem:[%s3732_s1 + $0x330] sm:$0xff]  ;;  %v460_v59 = vld [vmem:[%s3732_s1 + $0xbd8] sm:$0xff]  ;;  %v1501_v62 = vpack.c.bf16 %v204_v57, %v202_v56  ;;  %v201_v63 = vld [vmem:[%s3732_s1 + $0x3c0] sm:$0xff] }
  0x56   :  { %1720 = vmatpush1.bf16.msra.mxu0 %v1719_v8  ;;  %1466 = vmatprep.subr.bf16.mxu1 %v1465_v9  ;;  %v186_v8 = vld [vmem:[%s3732_s1 + $0x348] sm:$0xff]  ;;  %v188_v9 = vld [vmem:[%s3732_s1 + $0x358] sm:$0xff]  ;;  %v1483_v12 = vpack.c.bf16 %v183_v4, %v181_v3  ;;  %v459_v3 = vld [vmem:[%s3732_s1 + $0xbd0] sm:$0xff] }
  0x57   :  { %1722 = vmatprep.subr.bf16.mxu0 %v1721_v13  ;;  %v1739_v13 = vpack.c.bf16 %v439_v7, %v437_v5  ;;  %v1485_v14 = vpack.c.bf16 %v188_v9, %v186_v8  ;;  %v206_v4 = vld [vmem:[%s3732_s1 + $0x3e8] sm:$0xff]  ;;  %v208_v5 = vld [vmem:[%s3732_s1 + $0x3f8] sm:$0xff]  ;;  %v205_v11 = vld [vmem:[%s3732_s1 + $0x3e0] sm:$0xff] }
  0x58   :  { %v464_v7 = vld [vmem:[%s3732_s1 + $0xbf8] sm:$0xff]  ;;  %v1505_v10 = vpack.c.bf16 %v208_v5, %v206_v4  ;;  %v209_v23 = vld [vmem:[%s3732_s1 + $0x400] sm:$0xff]  ;;  %v27_v34 = vld [vmem:[%s3733_s0 + $0x50] sm:$0xff] }
  0x59   :  { %1468 = vmatpush1.bf16.msra.mxu1 %v1467_v20  ;;  %v190_v20 = vld [vmem:[%s3732_s1 + $0x368] sm:$0xff]  ;;  %v475_v57 = vld [vmem:[%s3732_s1 + $0xc50] sm:$0xff] }
  0x5a   :  { %1724 = vmatpush1.bf16.msra.mxu0 %v1723_v24  ;;  %1470 = vmatprep.subr.bf16.mxu1 %v1469_v25  ;;  %v1487_v24 = vpack.c.bf16 %v187_v16, %v185_v15  ;;  %v1743_v25 = vpack.c.bf16 %v443_v19, %v441_v17  ;;  %v1489_v26 = vpack.c.bf16 %v192_v21, %v190_v20  ;;  %v463_v15 = vld [vmem:[%s3732_s1 + $0xbf0] sm:$0xff]  ;;  %v210_v16 = vld [vmem:[%s3732_s1 + $0x408] sm:$0xff]  ;;  %v212_v17 = vld [vmem:[%s3732_s1 + $0x418] sm:$0xff] }
  0x5b   :  { %1726 = vmatprep.subr.bf16.mxu0 %v1725_v29  ;;  %v445_v29 = vld [vmem:[%s3732_s1 + $0xb60] sm:$0xff]  ;;  %v468_v19 = vld [vmem:[%s3732_s1 + $0xc18] sm:$0xff]  ;;  %v1509_v22 = vpack.c.bf16 %v212_v17, %v210_v16  ;;  %v223_v5 = vld [vmem:[%s3732_s1 + $0x470] sm:$0xff] }
  0x5c   :  { %v1747_v37 = vpack.c.bf16 %v447_v31, %v445_v29  ;;  %v216_v29 = vld [vmem:[%s3732_s1 + $0x438] sm:$0xff]  ;;  %v225_v16 = vld [vmem:[%s3732_s1 + $0x480] sm:$0xff] }
  0x5d   :  { %1472 = vmatpush1.bf16.msra.mxu1 %v1471_v36  ;;  %v1491_v36 = vpack.c.bf16 %v191_v28, %v189_v27  ;;  %v467_v27 = vld [vmem:[%s3732_s1 + $0xc10] sm:$0xff]  ;;  %v214_v28 = vld [vmem:[%s3732_s1 + $0x428] sm:$0xff]  ;;  %v472_v31 = vld [vmem:[%s3732_s1 + $0xc38] sm:$0xff] }
  0x5e   :  { %1728 = vmatpush1.bf16.msra.mxu0 %v1727_v40  ;;  %1474 = vmatprep.subr.bf16.mxu1 %v1473_v41  ;;  %v195_v40 = vld [vmem:[%s3732_s1 + $0x390] sm:$0xff]  ;;  %v449_v41 = vld [vmem:[%s3732_s1 + $0xb80] sm:$0xff]  ;;  %v76_v17 = vld [vmem:[%s3733_s0 + $0x1d8] sm:$0xff] }
  0x5f   :  { %1730 = vmatprep.subr.bf16.mxu0 %v1729_v45  ;;  %v200_v45 = vld [vmem:[%s3732_s1 + $0x3b8] sm:$0xff]  ;;  %v1495_v48 = vpack.c.bf16 %v195_v40, %v193_v39  ;;  %v1751_v49 = vpack.c.bf16 %v451_v43, %v449_v41  ;;  %v469_v39 = vld [vmem:[%s3732_s1 + $0xc20] sm:$0xff]  ;;  %v471_v41 = vld [vmem:[%s3732_s1 + $0xc30] sm:$0xff] }
  0x60   :  { %v1497_v50 = vpack.c.bf16 %v200_v45, %v198_v44  ;;  %v220_v43 = vld [vmem:[%s3732_s1 + $0x458] sm:$0xff]  ;;  %v474_v44 = vld [vmem:[%s3732_s1 + $0xc48] sm:$0xff] }
  0x61   :  { %1476 = vmatpush1.bf16.msra.mxu1 %v1475_v52  ;;  %v199_v52 = vld [vmem:[%s3732_s1 + $0x3b0] sm:$0xff]  ;;  %v476_v45 = vld [vmem:[%s3732_s1 + $0xc58] sm:$0xff] }
  0x62   :  { %1732 = vmatpush1.bf16.msra.mxu0 %v1731_v53  ;;  %1478 = vmatprep.subr.bf16.mxu1 %v1477_v54  ;;  %v453_v53 = vld [vmem:[%s3732_s1 + $0xba0] sm:$0xff]  ;;  %v1753_v54 = vpack.c.bf16 %v456_v47, %v454_v46  ;;  %v1499_v60 = vpack.c.bf16 %v199_v52, %v197_v51  ;;  %v36_v46 = vld [vmem:[%s3733_s0 + $0x98] sm:$0xff]  ;;  %v1771_v51 = vpack.c.bf16 %v471_v41, %v469_v39  ;;  %v487_v39 = vld [vmem:[%s3732_s1 + $0xcb0] sm:$0xff] }
  0x63   :  { %1734 = vmatprep.subr.bf16.mxu0 %v1733_v58  ;;  %v458_v58 = vld [vmem:[%s3732_s1 + $0xbc8] sm:$0xff]  ;;  %v1755_v61 = vpack.c.bf16 %v455_v55, %v453_v53  ;;  %v219_v53 = vld [vmem:[%s3732_s1 + $0x450] sm:$0xff]  ;;  %v1773_v56 = vpack.c.bf16 %v476_v45, %v474_v44  ;;  %v236_v41 = vld [vmem:[%s3732_s1 + $0x4d8] sm:$0xff] }
  0x64   :  { %v43_v55 = vld [vmem:[%s3733_s0 + $0xd0] sm:$0xff] }
  0x65   :  { %1480 = vmatpush1.bf16.msra.mxu1 %v1479_v0  ;;  %v203_v0 = vld [vmem:[%s3732_s1 + $0x3d0] sm:$0xff] }
  0x66   :  { %1736 = vmatpush1.bf16.msra.mxu0 %v1735_v1  ;;  %1482 = vmatprep.subr.bf16.mxu1 %v1481_v2  ;;  %v457_v1 = vld [vmem:[%s3732_s1 + $0xbc0] sm:$0xff]  ;;  %v1757_v2 = vpack.c.bf16 %v460_v59, %v458_v58  ;;  %v1503_v8 = vpack.c.bf16 %v203_v0, %v201_v63  ;;  %v222_v58 = vld [vmem:[%s3732_s1 + $0x468] sm:$0xff]  ;;  %v224_v59 = vld [vmem:[%s3732_s1 + $0x478] sm:$0xff] }
  0x67   :  { %1738 = vmatprep.subr.bf16.mxu0 %v1737_v6  ;;  %v462_v6 = vld [vmem:[%s3732_s1 + $0xbe8] sm:$0xff]  ;;  %v1759_v9 = vpack.c.bf16 %v459_v3, %v457_v1  ;;  %v221_v0 = vld [vmem:[%s3732_s1 + $0x460] sm:$0xff]  ;;  %v60_v1 = vld [vmem:[%s3733_s0 + $0x158] sm:$0xff]  ;;  %v1521_v4 = vpack.c.bf16 %v224_v59, %v222_v58 }
  0x68   :  { %v237_v59 = vld [vmem:[%s3732_s1 + $0x4e0] sm:$0xff] }
  0x69   :  { %1484 = vmatpush1.bf16.msra.mxu1 %v1483_v12  ;;  %v207_v12 = vld [vmem:[%s3732_s1 + $0x3f0] sm:$0xff] }
  0x6a   :  { %1740 = vmatpush1.bf16.msra.mxu0 %v1739_v13  ;;  %1486 = vmatprep.subr.bf16.mxu1 %v1485_v14  ;;  %v461_v13 = vld [vmem:[%s3732_s1 + $0xbe0] sm:$0xff]  ;;  %v1761_v14 = vpack.c.bf16 %v464_v7, %v462_v6  ;;  %v1507_v20 = vpack.c.bf16 %v207_v12, %v205_v11  ;;  %v59_v7 = vld [vmem:[%s3733_s0 + $0x150] sm:$0xff]  ;;  %v228_v11 = vld [vmem:[%s3732_s1 + $0x498] sm:$0xff] }
  0x6b   :  { %1742 = vmatprep.subr.bf16.mxu0 %v1741_v18  ;;  %v466_v18 = vld [vmem:[%s3732_s1 + $0xc08] sm:$0xff]  ;;  %v1763_v21 = vpack.c.bf16 %v463_v15, %v461_v13  ;;  %v477_v6 = vld [vmem:[%s3732_s1 + $0xc60] sm:$0xff]  ;;  %v484_v13 = vld [vmem:[%s3732_s1 + $0xc98] sm:$0xff]  ;;  %v1523_v15 = vpack.c.bf16 %v223_v5, %v221_v0 }
  0x6c   :  { %v482_v12 = vld [vmem:[%s3732_s1 + $0xc88] sm:$0xff] }
  0x6d   :  { %1488 = vmatpush1.bf16.msra.mxu1 %v1487_v24  ;;  %v211_v24 = vld [vmem:[%s3732_s1 + $0x410] sm:$0xff]  ;;  %v242_v0 = vld [vmem:[%s3732_s1 + $0x508] sm:$0xff] }
  0x6e   :  { %1744 = vmatpush1.bf16.msra.mxu0 %v1743_v25  ;;  %1490 = vmatprep.subr.bf16.mxu1 %v1489_v26  ;;  %v465_v25 = vld [vmem:[%s3732_s1 + $0xc00] sm:$0xff]  ;;  %v1765_v26 = vpack.c.bf16 %v468_v19, %v466_v18  ;;  %v1511_v33 = vpack.c.bf16 %v211_v24, %v209_v23  ;;  %v67_v18 = vld [vmem:[%s3733_s0 + $0x190] sm:$0xff]  ;;  %v1781_v24 = vpack.c.bf16 %v484_v13, %v482_v12  ;;  %v246_v12 = vld [vmem:[%s3732_s1 + $0x528] sm:$0xff] }
  0x6f   :  { %1746 = vmatprep.subr.bf16.mxu0 %v1745_v30  ;;  %v470_v30 = vld [vmem:[%s3732_s1 + $0xc28] sm:$0xff]  ;;  %v1767_v35 = vpack.c.bf16 %v467_v27, %v465_v25  ;;  %v75_v23 = vld [vmem:[%s3733_s0 + $0x1d0] sm:$0xff]  ;;  %v232_v27 = vld [vmem:[%s3732_s1 + $0x4b8] sm:$0xff] }
  0x70   :  { %v1769_v40 = vpack.c.bf16 %v472_v31, %v470_v30  ;;  %v483_v25 = vld [vmem:[%s3732_s1 + $0xc90] sm:$0xff]  ;;  %v22_v30 = vld [vmem:[%s3733_s0 + $0x28] sm:$0xff]  ;;  %v248_v13 = vld [vmem:[%s3732_s1 + $0x538] sm:$0xff] }
  0x71   :  { %1492 = vmatpush1.bf16.msra.mxu1 %v1491_v36  ;;  %v1513_v36 = vpack.c.bf16 %v216_v29, %v214_v28  ;;  %v486_v28 = vld [vmem:[%s3732_s1 + $0xca8] sm:$0xff]  ;;  %v488_v29 = vld [vmem:[%s3732_s1 + $0xcb8] sm:$0xff] }
  0x72   :  { %1748 = vmatpush1.bf16.msra.mxu0 %v1747_v37  ;;  %1494 = vmatprep.subr.bf16.mxu1 %v1493_v38  ;;  %v213_v37 = vld [vmem:[%s3732_s1 + $0x420] sm:$0xff]  ;;  %v215_v38 = vld [vmem:[%s3732_s1 + $0x430] sm:$0xff] }
  0x73   :  { %1750 = vmatprep.subr.bf16.mxu0 %v1749_v42  ;;  %v218_v42 = vld [vmem:[%s3732_s1 + $0x448] sm:$0xff]  ;;  %v1515_v47 = vpack.c.bf16 %v215_v38, %v213_v37  ;;  %v485_v37 = vld [vmem:[%s3732_s1 + $0xca0] sm:$0xff]  ;;  %v1785_v38 = vpack.c.bf16 %v488_v29, %v486_v28 }
  0x74   :  { %v1517_v52 = vpack.c.bf16 %v220_v43, %v218_v42  ;;  %v490_v42 = vld [vmem:[%s3732_s1 + $0xcc8] sm:$0xff]  ;;  %v492_v43 = vld [vmem:[%s3732_s1 + $0xcd8] sm:$0xff]  ;;  %v1787_v45 = vpack.c.bf16 %v487_v39, %v485_v37 }
  0x75   :  { %1496 = vmatpush1.bf16.msra.mxu1 %v1495_v48  ;;  %v217_v48 = vld [vmem:[%s3732_s1 + $0x440] sm:$0xff]  ;;  %v256_v37 = vld [vmem:[%s3732_s1 + $0x578] sm:$0xff] }
  0x76   :  { %1752 = vmatpush1.bf16.msra.mxu0 %v1751_v49  ;;  %1498 = vmatprep.subr.bf16.mxu1 %v1497_v50  ;;  %v44_v49 = vld [vmem:[%s3733_s0 + $0xd8] sm:$0xff]  ;;  %v35_v50 = vld [vmem:[%s3733_s0 + $0x90] sm:$0xff]  ;;  %v1519_v63 = vpack.c.bf16 %v219_v53, %v217_v48 }
  0x77   :  { %1754 = vmatprep.subr.bf16.mxu0 %v1753_v54  ;;  %v473_v54 = vld [vmem:[%s3732_s1 + $0xc40] sm:$0xff]  ;;  %v235_v48 = vld [vmem:[%s3732_s1 + $0x4d0] sm:$0xff]  ;;  %v240_v53 = vld [vmem:[%s3732_s1 + $0x4f8] sm:$0xff] }
  0x78   :  { %v1775_v3 = vpack.c.bf16 %v475_v57, %v473_v54  ;;  %v494_v54 = vld [vmem:[%s3732_s1 + $0xce8] sm:$0xff]  ;;  %v512_v39 = vld [vmem:[%s3732_s1 + $0xd78] sm:$0xff] }
  0x79   :  { %1500 = vmatpush1.bf16.msra.mxu1 %v1499_v60  ;;  %v478_v60 = vld [vmem:[%s3732_s1 + $0xc68] sm:$0xff] }
  0x7a   :  { %1756 = vmatpush1.bf16.msra.mxu0 %v1755_v61  ;;  %1502 = vmatprep.subr.bf16.mxu1 %v1501_v62  ;;  %v480_v61 = vld [vmem:[%s3732_s1 + $0xc78] sm:$0xff] }
  0x7b   :  { %1758 = vmatprep.subr.bf16.mxu0 %v1757_v2  ;;  %v52_v62 = vld [vmem:[%s3733_s0 + $0x118] sm:$0xff]  ;;  %v51_v2 = vld [vmem:[%s3733_s0 + $0x110] sm:$0xff] }
  0x7d   :  { %1504 = vmatpush1.bf16.msra.mxu1 %v1503_v8  ;;  %v1777_v8 = vpack.c.bf16 %v480_v61, %v478_v60  ;;  %v239_v60 = vld [vmem:[%s3732_s1 + $0x4f0] sm:$0xff]  ;;  %v493_v61 = vld [vmem:[%s3732_s1 + $0xce0] sm:$0xff] }
  0x7e   :  { %1760 = vmatpush1.bf16.msra.mxu0 %v1759_v9  ;;  %1506 = vmatprep.subr.bf16.mxu1 %v1505_v10  ;;  %v479_v9 = vld [vmem:[%s3732_s1 + $0xc70] sm:$0xff]  ;;  %v226_v10 = vld [vmem:[%s3732_s1 + $0x488] sm:$0xff] }
  0x7f   :  { %1762 = vmatprep.subr.bf16.mxu0 %v1761_v14  ;;  %v68_v14 = vld [vmem:[%s3733_s0 + $0x198] sm:$0xff]  ;;  %v1779_v19 = vpack.c.bf16 %v479_v9, %v477_v6  ;;  %v497_v9 = vld [vmem:[%s3732_s1 + $0xd00] sm:$0xff] }
  0x81   :  { %1508 = vmatpush1.bf16.msra.mxu1 %v1507_v20  ;;  %v1525_v20 = vpack.c.bf16 %v228_v11, %v226_v10  ;;  %v499_v11 = vld [vmem:[%s3732_s1 + $0xd10] sm:$0xff] }
  0x82   :  { %1764 = vmatpush1.bf16.msra.mxu0 %v1763_v21  ;;  %1510 = vmatprep.subr.bf16.mxu1 %v1509_v22  ;;  %v227_v21 = vld [vmem:[%s3732_s1 + $0x490] sm:$0xff]  ;;  %v481_v22 = vld [vmem:[%s3732_s1 + $0xc80] sm:$0xff] }
  0x83   :  { %1766 = vmatprep.subr.bf16.mxu0 %v1765_v26  ;;  %v230_v26 = vld [vmem:[%s3732_s1 + $0x4a8] sm:$0xff]  ;;  %v1527_v31 = vpack.c.bf16 %v227_v21, %v225_v16  ;;  %v501_v21 = vld [vmem:[%s3732_s1 + $0xd20] sm:$0xff] }
  0x84   :  { %747 = vmatmul.mubr.f32.vlgmr.msra.gmra.mrb[0].mxu1 %v19_v32  ;;  %v30_v32 = vld [vmem:[%s3733_s0 + $0x68] sm:$0xff] }
  0x85   :  { %1512 = vmatpush1.bf16.msra.mxu1 %v1511_v33  ;;  %1103 = vmatmul.mubr.f32.vlgmr.msra.gmra.mrb[0].mxu0 %v27_v34  ;;  %v1783_v33 = vpack.c.bf16 %v483_v25, %v481_v22  ;;  %v1529_v34 = vpack.c.bf16 %v232_v27, %v230_v26  ;;  %v252_v25 = vld [vmem:[%s3732_s1 + $0x558] sm:$0xff]  ;;  %v506_v26 = vld [vmem:[%s3732_s1 + $0xd48] sm:$0xff] }
  0x86   :  { %1768 = vmatpush1.bf16.msra.mxu0 %v1767_v35  ;;  %1514 = vmatprep.subr.bf16.mxu1 %v1513_v36  ;;  %v229_v35 = vld [vmem:[%s3732_s1 + $0x4a0] sm:$0xff]  ;;  %v231_v36 = vld [vmem:[%s3732_s1 + $0x4b0] sm:$0xff]  ;;  %v508_v27 = vld [vmem:[%s3732_s1 + $0xd58] sm:$0xff] }
  0x87   :  { %1770 = vmatprep.subr.bf16.mxu0 %v1769_v40  ;;  %752 = vmatprep.mubr.f32.mxu1 %v36_v46  ;;  %v234_v40 = vld [vmem:[%s3732_s1 + $0x4c8] sm:$0xff]  ;;  %v1531_v44 = vpack.c.bf16 %v231_v36, %v229_v35  ;;  %v507_v35 = vld [vmem:[%s3732_s1 + $0xd50] sm:$0xff] }
  0x88   :  { %1108 = vmatprep.mubr.f32.mxu0 %v44_v49  ;;  %753 = vmatmul.mubr.f32.gmra.mrb[2].mxu1 %v35_v50  ;;  %v1533_v46 = vpack.c.bf16 %v236_v41, %v234_v40  ;;  %v489_v49 = vld [vmem:[%s3732_s1 + $0xcc0] sm:$0xff]  ;;  %v1789_v50 = vpack.c.bf16 %v492_v43, %v490_v42  ;;  %v254_v36 = vld [vmem:[%s3732_s1 + $0x568] sm:$0xff] }
  0x89   :  { %1516 = vmatpush1.bf16.msra.mxu1 %v1515_v47  ;;  %1109 = vmatmul.mubr.f32.gmra.mrb[2].mxu0 %v43_v55  ;;  %v233_v47 = vld [vmem:[%s3732_s1 + $0x4c0] sm:$0xff]  ;;  %v496_v55 = vld [vmem:[%s3732_s1 + $0xcf8] sm:$0xff]  ;;  %v1553_v42 = vpack.c.bf16 %v256_v37, %v254_v36 }
  0x8a   :  { %1772 = vmatpush1.bf16.msra.mxu0 %v1771_v51  ;;  %1518 = vmatprep.subr.bf16.mxu1 %v1517_v52  ;;  %v491_v51 = vld [vmem:[%s3732_s1 + $0xcd0] sm:$0xff]  ;;  %v238_v52 = vld [vmem:[%s3732_s1 + $0x4e8] sm:$0xff]  ;;  %v253_v43 = vld [vmem:[%s3732_s1 + $0x560] sm:$0xff] }
  0x8b   :  { %1774 = vmatprep.subr.bf16.mxu0 %v1773_v56  ;;  %758 = vmatprep.mubr.f32.mxu1 %v52_v62  ;;  %v1535_v56 = vpack.c.bf16 %v235_v48, %v233_v47  ;;  %v1791_v57 = vpack.c.bf16 %v491_v51, %v489_v49  ;;  %v1537_v58 = vpack.c.bf16 %v240_v53, %v238_v52  ;;  %v511_v47 = vld [vmem:[%s3732_s1 + $0xd70] sm:$0xff]  ;;  %v258_v48 = vld [vmem:[%s3732_s1 + $0x588] sm:$0xff]  ;;  %v260_v49 = vld [vmem:[%s3732_s1 + $0x598] sm:$0xff] }
  0x8c   :  { %1114 = vmatprep.mubr.f32.mxu0 %v60_v1  ;;  %759 = vmatmul.mubr.f32.gmra.mrb[4].mxu1 %v51_v2  ;;  %v1793_v62 = vpack.c.bf16 %v496_v55, %v494_v54  ;;  %v244_v1 = vld [vmem:[%s3732_s1 + $0x518] sm:$0xff]  ;;  %v498_v2 = vld [vmem:[%s3732_s1 + $0xd08] sm:$0xff]  ;;  %v1557_v54 = vpack.c.bf16 %v260_v49, %v258_v48  ;;  %v257_v55 = vld [vmem:[%s3732_s1 + $0x580] sm:$0xff] }
  0x8d   :  { %1520 = vmatpush1.bf16.msra.mxu1 %v1519_v63  ;;  %1115 = vmatmul.mubr.f32.gmra.mrb[4].mxu0 %v59_v7  ;;  %v495_v63 = vld [vmem:[%s3732_s1 + $0xcf0] sm:$0xff]  ;;  %v1541_v6 = vpack.c.bf16 %v244_v1, %v242_v0  ;;  %v241_v7 = vld [vmem:[%s3732_s1 + $0x500] sm:$0xff]  ;;  %v516_v51 = vld [vmem:[%s3732_s1 + $0xd98] sm:$0xff] }
  0x8e   :  { %1776 = vmatpush1.bf16.msra.mxu0 %v1775_v3  ;;  %1522 = vmatprep.subr.bf16.mxu1 %v1521_v4  ;;  %v500_v3 = vld [vmem:[%s3732_s1 + $0xd18] sm:$0xff]  ;;  %v1539_v4 = vpack.c.bf16 %v239_v60, %v237_v59  ;;  %v1795_v5 = vpack.c.bf16 %v495_v63, %v493_v61  ;;  %v515_v59 = vld [vmem:[%s3732_s1 + $0xd90] sm:$0xff]  ;;  %v262_v60 = vld [vmem:[%s3732_s1 + $0x5a8] sm:$0xff] }
  0x8f   :  { %1778 = vmatprep.subr.bf16.mxu0 %v1777_v8  ;;  %764 = vmatprep.mubr.f32.mxu1 %v68_v14  ;;  %v243_v8 = vld [vmem:[%s3732_s1 + $0x510] sm:$0xff]  ;;  %v1797_v10 = vpack.c.bf16 %v500_v3, %v498_v2  ;;  %v502_v14 = vld [vmem:[%s3732_s1 + $0xd28] sm:$0xff]  ;;  %v264_v61 = vld [vmem:[%s3732_s1 + $0x5b8] sm:$0xff] }
  0x90   :  { %1120 = vmatprep.mubr.f32.mxu0 %v76_v17  ;;  %765 = vmatmul.mubr.f32.gmra.mrb[6].mxu1 %v67_v18  ;;  %v1543_v16 = vpack.c.bf16 %v243_v8, %v241_v7  ;;  %v1799_v17 = vpack.c.bf16 %v499_v11, %v497_v9  ;;  %v1545_v18 = vpack.c.bf16 %v248_v13, %v246_v12  ;;  %v520_v63 = vld [vmem:[%s3732_s1 + $0xdb8] sm:$0xff]  ;;  %v261_v3 = vld [vmem:[%s3732_s1 + $0x5a0] sm:$0xff]  ;;  %v519_v7 = vld [vmem:[%s3732_s1 + $0xdb0] sm:$0xff] }
  0x91   :  { %1524 = vmatpush1.bf16.msra.mxu1 %v1523_v15  ;;  %1121 = vmatmul.mubr.f32.gmra.mrb[6].mxu0 %v75_v23  ;;  %v504_v15 = vld [vmem:[%s3732_s1 + $0xd38] sm:$0xff]  ;;  %v503_v23 = vld [vmem:[%s3732_s1 + $0xd30] sm:$0xff]  ;;  %v1561_v2 = vpack.c.bf16 %v264_v61, %v262_v60  ;;  %v266_v8 = vld [vmem:[%s3732_s1 + $0x5c8] sm:$0xff] }
  0x92   :  { %1780 = vmatpush1.bf16.msra.mxu0 %v1779_v19  ;;  %1526 = vmatprep.subr.bf16.mxu1 %v1525_v20  ;;  %v245_v19 = vld [vmem:[%s3732_s1 + $0x520] sm:$0xff]  ;;  %v247_v20 = vld [vmem:[%s3732_s1 + $0x530] sm:$0xff]  ;;  %v1801_v22 = vpack.c.bf16 %v504_v15, %v502_v14  ;;  %v1803_v29 = vpack.c.bf16 %v503_v23, %v501_v21  ;;  %v268_v9 = vld [vmem:[%s3732_s1 + $0x5d8] sm:$0xff] }
  0x93   :  { %1782 = vmatprep.subr.bf16.mxu0 %v1781_v24  ;;  %835 = vmatprep.mubr.f32.mxu1 %v22_v30  ;;  %v250_v24 = vld [vmem:[%s3732_s1 + $0x548] sm:$0xff]  ;;  %v1547_v28 = vpack.c.bf16 %v247_v20, %v245_v19  ;;  %v524_v11 = vld [vmem:[%s3732_s1 + $0xdd8] sm:$0xff]  ;;  %v1565_v14 = vpack.c.bf16 %v268_v9, %v266_v8  ;;  %v265_v15 = vld [vmem:[%s3732_s1 + $0x5c0] sm:$0xff] }
  0x94   :  { %1191 = vmatprep.mubr.f32.mxu0 %v30_v32  ;;  %v1549_v30 = vpack.c.bf16 %v252_v25, %v250_v24  ;;  %v251_v32 = vld [vmem:[%s3732_s1 + $0x550] sm:$0xff]  ;;  %v270_v20 = vld [vmem:[%s3732_s1 + $0x5e8] sm:$0xff]  ;;  %v272_v21 = vld [vmem:[%s3732_s1 + $0x5f8] sm:$0xff] }
  0x95   :  { %1528 = vmatpush1.bf16.msra.mxu1 %v1527_v31  ;;  %v249_v31 = vld [vmem:[%s3732_s1 + $0x540] sm:$0xff]  ;;  %v523_v19 = vld [vmem:[%s3732_s1 + $0xdd0] sm:$0xff]  ;;  %v528_v23 = vld [vmem:[%s3732_s1 + $0xdf8] sm:$0xff] }
  0x96   :  { %1784 = vmatpush1.bf16.msra.mxu0 %v1783_v33  ;;  %1530 = vmatprep.subr.bf16.mxu1 %v1529_v34  ;;  %v505_v33 = vld [vmem:[%s3732_s1 + $0xd40] sm:$0xff]  ;;  %v1805_v34 = vpack.c.bf16 %v508_v27, %v506_v26  ;;  %v1551_v40 = vpack.c.bf16 %v251_v32, %v249_v31  ;;  %v1569_v26 = vpack.c.bf16 %v272_v21, %v270_v20  ;;  %v527_v31 = vld [vmem:[%s3732_s1 + $0xdf0] sm:$0xff]  ;;  %v274_v32 = vld [vmem:[%s3732_s1 + $0x608] sm:$0xff] }
  0x97   :  { %1786 = vmatprep.subr.bf16.mxu0 %v1785_v38  ;;  %v510_v38 = vld [vmem:[%s3732_s1 + $0xd68] sm:$0xff]  ;;  %v1807_v41 = vpack.c.bf16 %v507_v35, %v505_v33  ;;  %v269_v27 = vld [vmem:[%s3732_s1 + $0x5e0] sm:$0xff]  ;;  %v276_v33 = vld [vmem:[%s3732_s1 + $0x618] sm:$0xff] }
  0x98   :  { %v532_v35 = vld [vmem:[%s3732_s1 + $0xe18] sm:$0xff]  ;;  %v21_v48 = vld [vmem:[%s3733_s0 + $0x20] sm:$0xff]  ;;  %v538_v60 = vld [vmem:[%s3732_s1 + $0xe48] sm:$0xff] }
  0x99   :  { %1532 = vmatpush1.bf16.msra.mxu1 %v1531_v44  ;;  %v255_v44 = vld [vmem:[%s3732_s1 + $0x570] sm:$0xff]  ;;  %v540_v61 = vld [vmem:[%s3732_s1 + $0xe58] sm:$0xff] }
  0x9a   :  { %1788 = vmatpush1.bf16.msra.mxu0 %v1787_v45  ;;  %1534 = vmatprep.subr.bf16.mxu1 %v1533_v46  ;;  %v509_v45 = vld [vmem:[%s3732_s1 + $0xd60] sm:$0xff]  ;;  %v1809_v46 = vpack.c.bf16 %v512_v39, %v510_v38  ;;  %v1555_v52 = vpack.c.bf16 %v255_v44, %v253_v43  ;;  %v1573_v38 = vpack.c.bf16 %v276_v33, %v274_v32  ;;  %v531_v43 = vld [vmem:[%s3732_s1 + $0xe10] sm:$0xff]  ;;  %v278_v44 = vld [vmem:[%s3732_s1 + $0x628] sm:$0xff] }
  0x9b   :  { %1790 = vmatprep.subr.bf16.mxu0 %v1789_v50  ;;  %v514_v50 = vld [vmem:[%s3732_s1 + $0xd88] sm:$0xff]  ;;  %v1811_v53 = vpack.c.bf16 %v511_v47, %v509_v45  ;;  %v273_v39 = vld [vmem:[%s3732_s1 + $0x600] sm:$0xff]  ;;  %v280_v45 = vld [vmem:[%s3732_s1 + $0x638] sm:$0xff]  ;;  %v1837_v8 = vpack.c.bf16 %v540_v61, %v538_v60 }
  0x9c   :  { %v536_v47 = vld [vmem:[%s3732_s1 + $0xe38] sm:$0xff]  ;;  %v539_v9 = vld [vmem:[%s3732_s1 + $0xe50] sm:$0xff]  ;;  %v289_v32 = vld [vmem:[%s3732_s1 + $0x680] sm:$0xff] }
  0x9d   :  { %1536 = vmatpush1.bf16.msra.mxu1 %v1535_v56  ;;  %v259_v56 = vld [vmem:[%s3732_s1 + $0x590] sm:$0xff]  ;;  %v78_v33 = vld [vmem:[%s3733_s0 + $0x1e8] sm:$0xff] }
  0x9e   :  { %1792 = vmatpush1.bf16.msra.mxu0 %v1791_v57  ;;  %1538 = vmatprep.subr.bf16.mxu1 %v1537_v58  ;;  %v513_v57 = vld [vmem:[%s3732_s1 + $0xd80] sm:$0xff]  ;;  %v1813_v58 = vpack.c.bf16 %v516_v51, %v514_v50  ;;  %v1559_v0 = vpack.c.bf16 %v259_v56, %v257_v55  ;;  %v287_v21 = vld [vmem:[%s3732_s1 + $0x670] sm:$0xff] }
  0x9f   :  { %1794 = vmatprep.subr.bf16.mxu0 %v1793_v62  ;;  %v518_v62 = vld [vmem:[%s3732_s1 + $0xda8] sm:$0xff]  ;;  %v1815_v1 = vpack.c.bf16 %v515_v59, %v513_v57  ;;  %v29_v50 = vld [vmem:[%s3733_s0 + $0x60] sm:$0xff]  ;;  %v535_v57 = vld [vmem:[%s3732_s1 + $0xe30] sm:$0xff] }
  0xa0   :  { %v533_v55 = vld [vmem:[%s3732_s1 + $0xe20] sm:$0xff]  ;;  %v284_v59 = vld [vmem:[%s3732_s1 + $0x658] sm:$0xff] }
  0xa1   :  { %1540 = vmatpush1.bf16.msra.mxu1 %v1539_v4  ;;  %v263_v4 = vld [vmem:[%s3732_s1 + $0x5b0] sm:$0xff] }
  0xa2   :  { %1796 = vmatpush1.bf16.msra.mxu0 %v1795_v5  ;;  %1542 = vmatprep.subr.bf16.mxu1 %v1541_v6  ;;  %v517_v5 = vld [vmem:[%s3732_s1 + $0xda0] sm:$0xff]  ;;  %v1817_v6 = vpack.c.bf16 %v520_v63, %v518_v62  ;;  %v1563_v12 = vpack.c.bf16 %v263_v4, %v261_v3  ;;  %v38_v62 = vld [vmem:[%s3733_s0 + $0xa8] sm:$0xff]  ;;  %v1835_v3 = vpack.c.bf16 %v535_v57, %v533_v55  ;;  %v551_v55 = vld [vmem:[%s3732_s1 + $0xeb0] sm:$0xff] }
  0xa3   :  { %1798 = vmatprep.subr.bf16.mxu0 %v1797_v10  ;;  %v522_v10 = vld [vmem:[%s3732_s1 + $0xdc8] sm:$0xff]  ;;  %v1819_v13 = vpack.c.bf16 %v519_v7, %v517_v5  ;;  %v283_v5 = vld [vmem:[%s3732_s1 + $0x650] sm:$0xff]  ;;  %v45_v7 = vld [vmem:[%s3733_s0 + $0xe0] sm:$0xff] }
  0xa4   :  { %v300_v57 = vld [vmem:[%s3732_s1 + $0x6d8] sm:$0xff] }
  0xa5   :  { %1544 = vmatpush1.bf16.msra.mxu1 %v1543_v16  ;;  %v267_v16 = vld [vmem:[%s3732_s1 + $0x5d0] sm:$0xff] }
  0xa6   :  { %1800 = vmatpush1.bf16.msra.mxu0 %v1799_v17  ;;  %1546 = vmatprep.subr.bf16.mxu1 %v1545_v18  ;;  %v521_v17 = vld [vmem:[%s3732_s1 + $0xdc0] sm:$0xff]  ;;  %v1821_v18 = vpack.c.bf16 %v524_v11, %v522_v10  ;;  %v1567_v24 = vpack.c.bf16 %v267_v16, %v265_v15  ;;  %v286_v10 = vld [vmem:[%s3732_s1 + $0x668] sm:$0xff]  ;;  %v288_v11 = vld [vmem:[%s3732_s1 + $0x678] sm:$0xff] }
  0xa7   :  { %1802 = vmatprep.subr.bf16.mxu0 %v1801_v22  ;;  %v526_v22 = vld [vmem:[%s3732_s1 + $0xde8] sm:$0xff]  ;;  %v1823_v25 = vpack.c.bf16 %v523_v19, %v521_v17  ;;  %v285_v16 = vld [vmem:[%s3732_s1 + $0x660] sm:$0xff]  ;;  %v1585_v20 = vpack.c.bf16 %v288_v11, %v286_v10 }
  0xa8   :  { %v62_v17 = vld [vmem:[%s3733_s0 + $0x168] sm:$0xff]  ;;  %v301_v11 = vld [vmem:[%s3732_s1 + $0x6e0] sm:$0xff] }
  0xa9   :  { %1548 = vmatpush1.bf16.msra.mxu1 %v1547_v28  ;;  %v271_v28 = vld [vmem:[%s3732_s1 + $0x5f0] sm:$0xff] }
  0xaa   :  { %1804 = vmatpush1.bf16.msra.mxu0 %v1803_v29  ;;  %1550 = vmatprep.subr.bf16.mxu1 %v1549_v30  ;;  %v525_v29 = vld [vmem:[%s3732_s1 + $0xde0] sm:$0xff]  ;;  %v1825_v30 = vpack.c.bf16 %v528_v23, %v526_v22  ;;  %v1571_v36 = vpack.c.bf16 %v271_v28, %v269_v27  ;;  %v292_v27 = vld [vmem:[%s3732_s1 + $0x698] sm:$0xff]  ;;  %v546_v28 = vld [vmem:[%s3732_s1 + $0xe88] sm:$0xff] }
  0xab   :  { %1806 = vmatprep.subr.bf16.mxu0 %v1805_v34  ;;  %v530_v34 = vld [vmem:[%s3732_s1 + $0xe08] sm:$0xff]  ;;  %v1827_v37 = vpack.c.bf16 %v527_v31, %v525_v29  ;;  %v541_v22 = vld [vmem:[%s3732_s1 + $0xe60] sm:$0xff]  ;;  %v548_v29 = vld [vmem:[%s3732_s1 + $0xe98] sm:$0xff]  ;;  %v1587_v31 = vpack.c.bf16 %v287_v21, %v285_v16 }
  0xac   :  { %v61_v23 = vld [vmem:[%s3733_s0 + $0x160] sm:$0xff]  ;;  %v306_v16 = vld [vmem:[%s3732_s1 + $0x708] sm:$0xff] }
  0xad   :  { %1552 = vmatpush1.bf16.msra.mxu1 %v1551_v40  ;;  %v275_v40 = vld [vmem:[%s3732_s1 + $0x610] sm:$0xff] }
  0xae   :  { %1808 = vmatpush1.bf16.msra.mxu0 %v1807_v41  ;;  %1554 = vmatprep.subr.bf16.mxu1 %v1553_v42  ;;  %v529_v41 = vld [vmem:[%s3732_s1 + $0xe00] sm:$0xff]  ;;  %v1829_v42 = vpack.c.bf16 %v532_v35, %v530_v34  ;;  %v1575_v49 = vpack.c.bf16 %v275_v40, %v273_v39  ;;  %v1845_v40 = vpack.c.bf16 %v548_v29, %v546_v28  ;;  %v310_v28 = vld [vmem:[%s3732_s1 + $0x728] sm:$0xff]  ;;  %v312_v29 = vld [vmem:[%s3732_s1 + $0x738] sm:$0xff] }
  0xaf   :  { %1810 = vmatprep.subr.bf16.mxu0 %v1809_v46  ;;  %v534_v46 = vld [vmem:[%s3732_s1 + $0xe28] sm:$0xff]  ;;  %v1831_v51 = vpack.c.bf16 %v531_v43, %v529_v41  ;;  %v69_v34 = vld [vmem:[%s3733_s0 + $0x1a0] sm:$0xff]  ;;  %v547_v41 = vld [vmem:[%s3732_s1 + $0xe90] sm:$0xff] }
  0xb0   :  { %v1833_v56 = vpack.c.bf16 %v536_v47, %v534_v46  ;;  %v77_v39 = vld [vmem:[%s3733_s0 + $0x1e0] sm:$0xff]  ;;  %v296_v43 = vld [vmem:[%s3732_s1 + $0x6b8] sm:$0xff] }
  0xb1   :  { %1556 = vmatpush1.bf16.msra.mxu1 %v1555_v52  ;;  %v1577_v52 = vpack.c.bf16 %v280_v45, %v278_v44  ;;  %v550_v44 = vld [vmem:[%s3732_s1 + $0xea8] sm:$0xff]  ;;  %v552_v45 = vld [vmem:[%s3732_s1 + $0xeb8] sm:$0xff] }
  0xb2   :  { %1812 = vmatpush1.bf16.msra.mxu0 %v1811_v53  ;;  %1558 = vmatprep.subr.bf16.mxu1 %v1557_v54  ;;  %v277_v53 = vld [vmem:[%s3732_s1 + $0x620] sm:$0xff]  ;;  %v279_v54 = vld [vmem:[%s3732_s1 + $0x630] sm:$0xff]  ;;  %v24_v46 = vld [vmem:[%s3733_s0 + $0x38] sm:$0xff] }
  0xb3   :  { %1814 = vmatprep.subr.bf16.mxu0 %v1813_v58  ;;  %v282_v58 = vld [vmem:[%s3732_s1 + $0x648] sm:$0xff]  ;;  %v1579_v63 = vpack.c.bf16 %v279_v54, %v277_v53  ;;  %v549_v53 = vld [vmem:[%s3732_s1 + $0xea0] sm:$0xff]  ;;  %v1849_v54 = vpack.c.bf16 %v552_v45, %v550_v44 }
  0xb4   :  { %v1581_v4 = vpack.c.bf16 %v284_v59, %v282_v58  ;;  %v554_v58 = vld [vmem:[%s3732_s1 + $0xec8] sm:$0xff]  ;;  %v556_v59 = vld [vmem:[%s3732_s1 + $0xed8] sm:$0xff]  ;;  %v1851_v61 = vpack.c.bf16 %v551_v55, %v549_v53 }
  0xb5   :  { %1560 = vmatpush1.bf16.msra.mxu1 %v1559_v0  ;;  %v281_v0 = vld [vmem:[%s3732_s1 + $0x640] sm:$0xff]  ;;  %v320_v53 = vld [vmem:[%s3732_s1 + $0x778] sm:$0xff] }
  0xb6   :  { %1816 = vmatpush1.bf16.msra.mxu0 %v1815_v1  ;;  %1562 = vmatprep.subr.bf16.mxu1 %v1561_v2  ;;  %v46_v1 = vld [vmem:[%s3733_s0 + $0xe8] sm:$0xff]  ;;  %v37_v2 = vld [vmem:[%s3733_s0 + $0xa0] sm:$0xff]  ;;  %v1583_v15 = vpack.c.bf16 %v283_v5, %v281_v0  ;;  %v299_v0 = vld [vmem:[%s3732_s1 + $0x6d0] sm:$0xff] }
  0xb7   :  { %1818 = vmatprep.subr.bf16.mxu0 %v1817_v6  ;;  %v537_v6 = vld [vmem:[%s3732_s1 + $0xe40] sm:$0xff]  ;;  %v304_v5 = vld [vmem:[%s3732_s1 + $0x6f8] sm:$0xff] }
  0xb8   :  { %v1839_v19 = vpack.c.bf16 %v539_v9, %v537_v6  ;;  %v558_v6 = vld [vmem:[%s3732_s1 + $0xee8] sm:$0xff]  ;;  %v576_v55 = vld [vmem:[%s3732_s1 + $0xf78] sm:$0xff] }
  0xb9   :  { %1564 = vmatpush1.bf16.msra.mxu1 %v1563_v12  ;;  %v542_v12 = vld [vmem:[%s3732_s1 + $0xe68] sm:$0xff] }
  0xba   :  { %1820 = vmatpush1.bf16.msra.mxu0 %v1819_v13  ;;  %1566 = vmatprep.subr.bf16.mxu1 %v1565_v14  ;;  %v544_v13 = vld [vmem:[%s3732_s1 + $0xe78] sm:$0xff]  ;;  %v54_v14 = vld [vmem:[%s3733_s0 + $0x128] sm:$0xff] }
  0xbb   :  { %1822 = vmatprep.subr.bf16.mxu0 %v1821_v18  ;;  %v53_v18 = vld [vmem:[%s3733_s0 + $0x120] sm:$0xff] }
  0xbd   :  { %1568 = vmatpush1.bf16.msra.mxu1 %v1567_v24  ;;  %v1841_v24 = vpack.c.bf16 %v544_v13, %v542_v12  ;;  %v303_v12 = vld [vmem:[%s3732_s1 + $0x6f0] sm:$0xff]  ;;  %v557_v13 = vld [vmem:[%s3732_s1 + $0xee0] sm:$0xff] }
  0xbe   :  { %1824 = vmatpush1.bf16.msra.mxu0 %v1823_v25  ;;  %1570 = vmatprep.subr.bf16.mxu1 %v1569_v26  ;;  %v543_v25 = vld [vmem:[%s3732_s1 + $0xe70] sm:$0xff]  ;;  %v290_v26 = vld [vmem:[%s3732_s1 + $0x688] sm:$0xff] }
  0xbf   :  { %1826 = vmatprep.subr.bf16.mxu0 %v1825_v30  ;;  %v70_v30 = vld [vmem:[%s3733_s0 + $0x1a8] sm:$0xff]  ;;  %v1843_v35 = vpack.c.bf16 %v543_v25, %v541_v22  ;;  %v561_v25 = vld [vmem:[%s3732_s1 + $0xf00] sm:$0xff] }
  0xc1   :  { %1572 = vmatpush1.bf16.msra.mxu1 %v1571_v36  ;;  %v1589_v36 = vpack.c.bf16 %v292_v27, %v290_v26  ;;  %v563_v27 = vld [vmem:[%s3732_s1 + $0xf10] sm:$0xff] }
  0xc2   :  { %1828 = vmatpush1.bf16.msra.mxu0 %v1827_v37  ;;  %1574 = vmatprep.subr.bf16.mxu1 %v1573_v38  ;;  %v291_v37 = vld [vmem:[%s3732_s1 + $0x690] sm:$0xff]  ;;  %v545_v38 = vld [vmem:[%s3732_s1 + $0xe80] sm:$0xff] }
  0xc3   :  { %1830 = vmatprep.subr.bf16.mxu0 %v1829_v42  ;;  %v294_v42 = vld [vmem:[%s3732_s1 + $0x6a8] sm:$0xff]  ;;  %v1591_v47 = vpack.c.bf16 %v291_v37, %v289_v32  ;;  %v565_v37 = vld [vmem:[%s3732_s1 + $0xf20] sm:$0xff] }
  0xc4   :  { %836 = vmatmul.mubr.f32.vlgmr.msra.gmra.mrb[0].mxu1 %v21_v48  ;;  %v32_v48 = vld [vmem:[%s3733_s0 + $0x78] sm:$0xff] }
  0xc5   :  { %1576 = vmatpush1.bf16.msra.mxu1 %v1575_v49  ;;  %1192 = vmatmul.mubr.f32.vlgmr.msra.gmra.mrb[0].mxu0 %v29_v50  ;;  %v1847_v49 = vpack.c.bf16 %v547_v41, %v545_v38  ;;  %v1593_v50 = vpack.c.bf16 %v296_v43, %v294_v42  ;;  %v316_v41 = vld [vmem:[%s3732_s1 + $0x758] sm:$0xff]  ;;  %v570_v42 = vld [vmem:[%s3732_s1 + $0xf48] sm:$0xff] }
  0xc6   :  { %1832 = vmatpush1.bf16.msra.mxu0 %v1831_v51  ;;  %1578 = vmatprep.subr.bf16.mxu1 %v1577_v52  ;;  %v293_v51 = vld [vmem:[%s3732_s1 + $0x6a0] sm:$0xff]  ;;  %v295_v52 = vld [vmem:[%s3732_s1 + $0x6b0] sm:$0xff]  ;;  %v572_v43 = vld [vmem:[%s3732_s1 + $0xf58] sm:$0xff] }
  0xc7   :  { %1834 = vmatprep.subr.bf16.mxu0 %v1833_v56  ;;  %841 = vmatprep.mubr.f32.mxu1 %v38_v62  ;;  %v298_v56 = vld [vmem:[%s3732_s1 + $0x6c8] sm:$0xff]  ;;  %v1595_v60 = vpack.c.bf16 %v295_v52, %v293_v51  ;;  %v571_v51 = vld [vmem:[%s3732_s1 + $0xf50] sm:$0xff] }
  0xc8   :  { %1197 = vmatprep.mubr.f32.mxu0 %v46_v1  ;;  %842 = vmatmul.mubr.f32.gmra.mrb[2].mxu1 %v37_v2  ;;  %v1597_v62 = vpack.c.bf16 %v300_v57, %v298_v56  ;;  %v553_v1 = vld [vmem:[%s3732_s1 + $0xec0] sm:$0xff]  ;;  %v1853_v2 = vpack.c.bf16 %v556_v59, %v554_v58  ;;  %v318_v52 = vld [vmem:[%s3732_s1 + $0x768] sm:$0xff] }
  0xc9   :  { %1580 = vmatpush1.bf16.msra.mxu1 %v1579_v63  ;;  %1198 = vmatmul.mubr.f32.gmra.mrb[2].mxu0 %v45_v7  ;;  %v297_v63 = vld [vmem:[%s3732_s1 + $0x6c0] sm:$0xff]  ;;  %v560_v7 = vld [vmem:[%s3732_s1 + $0xef8] sm:$0xff]  ;;  %v1617_v58 = vpack.c.bf16 %v320_v53, %v318_v52 }
  0xca   :  { %1836 = vmatpush1.bf16.msra.mxu0 %v1835_v3  ;;  %1582 = vmatprep.subr.bf16.mxu1 %v1581_v4  ;;  %v555_v3 = vld [vmem:[%s3732_s1 + $0xed0] sm:$0xff]  ;;  %v302_v4 = vld [vmem:[%s3732_s1 + $0x6e8] sm:$0xff]  ;;  %v317_v59 = vld [vmem:[%s3732_s1 + $0x760] sm:$0xff] }
  0xcb   :  { %1838 = vmatprep.subr.bf16.mxu0 %v1837_v8  ;;  %847 = vmatprep.mubr.f32.mxu1 %v54_v14  ;;  %v1599_v8 = vpack.c.bf16 %v299_v0, %v297_v63  ;;  %v1855_v9 = vpack.c.bf16 %v555_v3, %v553_v1  ;;  %v1601_v10 = vpack.c.bf16 %v304_v5, %v302_v4  ;;  %v575_v63 = vld [vmem:[%s3732_s1 + $0xf70] sm:$0xff]  ;;  %v322_v0 = vld [vmem:[%s3732_s1 + $0x788] sm:$0xff]  ;;  %v324_v1 = vld [vmem:[%s3732_s1 + $0x798] sm:$0xff] }
  0xcc   :  { %1203 = vmatprep.mubr.f32.mxu0 %v62_v17  ;;  %848 = vmatmul.mubr.f32.gmra.mrb[4].mxu1 %v53_v18  ;;  %v1857_v14 = vpack.c.bf16 %v560_v7, %v558_v6  ;;  %v308_v17 = vld [vmem:[%s3732_s1 + $0x718] sm:$0xff]  ;;  %v562_v18 = vld [vmem:[%s3732_s1 + $0xf08] sm:$0xff]  ;;  %v1621_v6 = vpack.c.bf16 %v324_v1, %v322_v0  ;;  %v321_v7 = vld [vmem:[%s3732_s1 + $0x780] sm:$0xff]  ;;  %v1308_v0 = vlaneseq }
  0xcd   :  { %1584 = vmatpush1.bf16.msra.mxu1 %v1583_v15  ;;  %1204 = vmatmul.mubr.f32.gmra.mrb[4].mxu0 %v61_v23  ;;  %v559_v15 = vld [vmem:[%s3732_s1 + $0xef0] sm:$0xff]  ;;  %v1605_v22 = vpack.c.bf16 %v308_v17, %v306_v16  ;;  %v305_v23 = vld [vmem:[%s3732_s1 + $0x700] sm:$0xff]  ;;  %v580_v3 = vld [vmem:[%s3732_s1 + $0xf98] sm:$0xff] }
  0xce   :  { %1840 = vmatpush1.bf16.msra.mxu0 %v1839_v19  ;;  %1586 = vmatprep.subr.bf16.mxu1 %v1585_v20  ;;  %v564_v19 = vld [vmem:[%s3732_s1 + $0xf18] sm:$0xff]  ;;  %v1603_v20 = vpack.c.bf16 %v303_v12, %v301_v11  ;;  %v1859_v21 = vpack.c.bf16 %v559_v15, %v557_v13  ;;  %v579_v11 = vld [vmem:[%s3732_s1 + $0xf90] sm:$0xff]  ;;  %v326_v12 = vld [vmem:[%s3732_s1 + $0x7a8] sm:$0xff]  ;;  %v1309_v1 = vshrl.u32 %v1308_v0, 7 }
  0xcf   :  { %1842 = vmatprep.subr.bf16.mxu0 %v1841_v24  ;;  %853 = vmatprep.mubr.f32.mxu1 %v70_v30  ;;  %v307_v24 = vld [vmem:[%s3732_s1 + $0x710] sm:$0xff]  ;;  %v1861_v26 = vpack.c.bf16 %v564_v19, %v562_v18  ;;  %v566_v30 = vld [vmem:[%s3732_s1 + $0xf28] sm:$0xff]  ;;  %v328_v13 = vld [vmem:[%s3732_s1 + $0x7b8] sm:$0xff] }
  0xd0   :  { %1209 = vmatprep.mubr.f32.mxu0 %v78_v33  ;;  %854 = vmatmul.mubr.f32.gmra.mrb[6].mxu1 %v69_v34  ;;  %v1607_v32 = vpack.c.bf16 %v307_v24, %v305_v23  ;;  %v1863_v33 = vpack.c.bf16 %v563_v27, %v561_v25  ;;  %v1609_v34 = vpack.c.bf16 %v312_v29, %v310_v28  ;;  %v584_v15 = vld [vmem:[%s3732_s1 + $0xfb8] sm:$0xff]  ;;  %v325_v19 = vld [vmem:[%s3732_s1 + $0x7a0] sm:$0xff]  ;;  %v583_v23 = vld [vmem:[%s3732_s1 + $0xfb0] sm:$0xff] }
  0xd1   :  { %1588 = vmatpush1.bf16.msra.mxu1 %v1587_v31  ;;  %1210 = vmatmul.mubr.f32.gmra.mrb[6].mxu0 %v77_v39  ;;  %v568_v31 = vld [vmem:[%s3732_s1 + $0xf38] sm:$0xff]  ;;  %v567_v39 = vld [vmem:[%s3732_s1 + $0xf30] sm:$0xff]  ;;  %v1625_v18 = vpack.c.bf16 %v328_v13, %v326_v12  ;;  %v330_v24 = vld [vmem:[%s3732_s1 + $0x7c8] sm:$0xff] }
  0xd2   :  { %1844 = vmatpush1.bf16.msra.mxu0 %v1843_v35  ;;  %1590 = vmatprep.subr.bf16.mxu1 %v1589_v36  ;;  %v309_v35 = vld [vmem:[%s3732_s1 + $0x720] sm:$0xff]  ;;  %v311_v36 = vld [vmem:[%s3732_s1 + $0x730] sm:$0xff]  ;;  %v1865_v38 = vpack.c.bf16 %v568_v31, %v566_v30  ;;  %v1867_v45 = vpack.c.bf16 %v567_v39, %v565_v37  ;;  %v332_v25 = vld [vmem:[%s3732_s1 + $0x7d8] sm:$0xff] }
  0xd3   :  { %1846 = vmatprep.subr.bf16.mxu0 %v1845_v40  ;;  %924 = vmatprep.mubr.f32.mxu1 %v24_v46  ;;  %v314_v40 = vld [vmem:[%s3732_s1 + $0x748] sm:$0xff]  ;;  %v1611_v44 = vpack.c.bf16 %v311_v36, %v309_v35  ;;  %v588_v27 = vld [vmem:[%s3732_s1 + $0xfd8] sm:$0xff]  ;;  %v1629_v30 = vpack.c.bf16 %v332_v25, %v330_v24  ;;  %v329_v31 = vld [vmem:[%s3732_s1 + $0x7c0] sm:$0xff] }
  0xd4   :  { %1280 = vmatprep.mubr.f32.mxu0 %v32_v48  ;;  %v1613_v46 = vpack.c.bf16 %v316_v41, %v314_v40  ;;  %v315_v48 = vld [vmem:[%s3732_s1 + $0x750] sm:$0xff]  ;;  %v334_v36 = vld [vmem:[%s3732_s1 + $0x7e8] sm:$0xff]  ;;  %v336_v37 = vld [vmem:[%s3732_s1 + $0x7f8] sm:$0xff] }
  0xd5   :  { %1592 = vmatpush1.bf16.msra.mxu1 %v1591_v47  ;;  %v313_v47 = vld [vmem:[%s3732_s1 + $0x740] sm:$0xff]  ;;  %v587_v35 = vld [vmem:[%s3732_s1 + $0xfd0] sm:$0xff]  ;;  %v592_v39 = vld [vmem:[%s3732_s1 + $0xff8] sm:$0xff] }
  0xd6   :  { %1848 = vmatpush1.bf16.msra.mxu0 %v1847_v49  ;;  %1594 = vmatprep.subr.bf16.mxu1 %v1593_v50  ;;  %v569_v49 = vld [vmem:[%s3732_s1 + $0xf40] sm:$0xff]  ;;  %v1869_v50 = vpack.c.bf16 %v572_v43, %v570_v42  ;;  %v1615_v56 = vpack.c.bf16 %v315_v48, %v313_v47  ;;  %v1633_v42 = vpack.c.bf16 %v336_v37, %v334_v36  ;;  %v591_v47 = vld [vmem:[%s3732_s1 + $0xff0] sm:$0xff]  ;;  %v40_v52 = vld [vmem:[%s3733_s0 + $0xb8] sm:$0xff] }
  0xd7   :  { %1850 = vmatprep.subr.bf16.mxu0 %v1849_v54  ;;  %v574_v54 = vld [vmem:[%s3732_s1 + $0xf68] sm:$0xff]  ;;  %v1871_v57 = vpack.c.bf16 %v571_v51, %v569_v49  ;;  %v333_v43 = vld [vmem:[%s3732_s1 + $0x7e0] sm:$0xff]  ;;  %v31_v51 = vld [vmem:[%s3733_s0 + $0x70] sm:$0xff] }
  0xd8   :  { %v48_v53 = vld [vmem:[%s3733_s0 + $0xf8] sm:$0xff] }
  0xd9   :  { %1596 = vmatpush1.bf16.msra.mxu1 %v1595_v60  ;;  %v319_v60 = vld [vmem:[%s3732_s1 + $0x770] sm:$0xff] }
  0xda   :  { %1852 = vmatpush1.bf16.msra.mxu0 %v1851_v61  ;;  %1598 = vmatprep.subr.bf16.mxu1 %v1597_v62  ;;  %v573_v61 = vld [vmem:[%s3732_s1 + $0xf60] sm:$0xff]  ;;  %v1873_v62 = vpack.c.bf16 %v576_v55, %v574_v54  ;;  %v1619_v4 = vpack.c.bf16 %v319_v60, %v317_v59  ;;  %v39_v54 = vld [vmem:[%s3733_s0 + $0xb0] sm:$0xff]  ;;  %v72_v60 = vld [vmem:[%s3733_s0 + $0x1b8] sm:$0xff] }
  0xdb   :  { %1854 = vmatprep.subr.bf16.mxu0 %v1853_v2  ;;  %v578_v2 = vld [vmem:[%s3732_s1 + $0xf88] sm:$0xff]  ;;  %v1875_v5 = vpack.c.bf16 %v575_v63, %v573_v61  ;;  %v47_v55 = vld [vmem:[%s3733_s0 + $0xf0] sm:$0xff]  ;;  %v80_v61 = vld [vmem:[%s3733_s0 + $0x1f8] sm:$0xff] }
  0xdc   :  { %v63_v59 = vld [vmem:[%s3733_s0 + $0x170] sm:$0xff] }
  0xdd   :  { %1600 = vmatpush1.bf16.msra.mxu1 %v1599_v8  ;;  %v323_v8 = vld [vmem:[%s3732_s1 + $0x790] sm:$0xff] }
  0xde   :  { %1856 = vmatpush1.bf16.msra.mxu0 %v1855_v9  ;;  %1602 = vmatprep.subr.bf16.mxu1 %v1601_v10  ;;  %v577_v9 = vld [vmem:[%s3732_s1 + $0xf80] sm:$0xff]  ;;  %v1877_v10 = vpack.c.bf16 %v580_v3, %v578_v2  ;;  %v1623_v16 = vpack.c.bf16 %v323_v8, %v321_v7  ;;  %v79_v63 = vld [vmem:[%s3733_s0 + $0x1f0] sm:$0xff]  ;;  %v1310_v2 = vsub.s32 0, %v1309_v1 }
  0xdf   :  { %1858 = vmatprep.subr.bf16.mxu0 %v1857_v14  ;;  %v582_v14 = vld [vmem:[%s3732_s1 + $0xfa8] sm:$0xff]  ;;  %v1879_v17 = vpack.c.bf16 %v579_v11, %v577_v9  ;;  %v1305_v3 = vld [vmem:[%s3734_s2] sm:$0x3] }
  0xe0   :  { %v1311_v7 = vrot.slane %v1305_v3, %v1310_v2 }
  0xe1   :  { %1604 = vmatpush1.bf16.msra.mxu1 %v1603_v20  ;;  %v327_v20 = vld [vmem:[%s3732_s1 + $0x7b0] sm:$0xff] }
  0xe2   :  { %1860 = vmatpush1.bf16.msra.mxu0 %v1859_v21  ;;  %1606 = vmatprep.subr.bf16.mxu1 %v1605_v22  ;;  %v581_v21 = vld [vmem:[%s3732_s1 + $0xfa0] sm:$0xff]  ;;  %v1881_v22 = vpack.c.bf16 %v584_v15, %v582_v14  ;;  %v1627_v28 = vpack.c.bf16 %v327_v20, %v325_v19 }
  0xe3   :  { %1862 = vmatprep.subr.bf16.mxu0 %v1861_v26  ;;  %v586_v26 = vld [vmem:[%s3732_s1 + $0xfc8] sm:$0xff]  ;;  %v1883_v29 = vpack.c.bf16 %v583_v23, %v581_v21 }
  0xe5   :  { %1608 = vmatpush1.bf16.msra.mxu1 %v1607_v32  ;;  %v331_v32 = vld [vmem:[%s3732_s1 + $0x7d0] sm:$0xff] }
  0xe6   :  { %1864 = vmatpush1.bf16.msra.mxu0 %v1863_v33  ;;  %1610 = vmatprep.subr.bf16.mxu1 %v1609_v34  ;;  %v585_v33 = vld [vmem:[%s3732_s1 + $0xfc0] sm:$0xff]  ;;  %v1885_v34 = vpack.c.bf16 %v588_v27, %v586_v26  ;;  %v1631_v40 = vpack.c.bf16 %v331_v32, %v329_v31 }
  0xe7   :  { %1866 = vmatprep.subr.bf16.mxu0 %v1865_v38  ;;  %v590_v38 = vld [vmem:[%s3732_s1 + $0xfe8] sm:$0xff]  ;;  %v1887_v41 = vpack.c.bf16 %v587_v35, %v585_v33 }
  0xe9   :  { %1612 = vmatpush1.bf16.msra.mxu1 %v1611_v44  ;;  %v335_v44 = vld [vmem:[%s3732_s1 + $0x7f0] sm:$0xff] }
  0xea   :  { %1868 = vmatpush1.bf16.msra.mxu0 %v1867_v45  ;;  %1614 = vmatprep.subr.bf16.mxu1 %v1613_v46  ;;  %v1889_v45 = vpack.c.bf16 %v592_v39, %v590_v38  ;;  %v589_v46 = vld [vmem:[%s3732_s1 + $0xfe0] sm:$0xff]  ;;  %v1635_v48 = vpack.c.bf16 %v335_v44, %v333_v43 }
  0xeb   :  { %1870 = vmatprep.subr.bf16.mxu0 %v1869_v50  ;;  %v1891_v49 = vpack.c.bf16 %v591_v47, %v589_v46  ;;  %v23_v50 = vld [vmem:[%s3733_s0 + $0x30] sm:$0xff] }
  0xed   :  { %1616 = vmatpush1.bf16.msra.mxu1 %v1615_v56  ;;  %v56_v56 = vld [vmem:[%s3733_s0 + $0x138] sm:$0xff] }
  0xee   :  { %1872 = vmatpush1.bf16.msra.mxu0 %v1871_v57  ;;  %1618 = vmatprep.subr.bf16.mxu1 %v1617_v58  ;;  %v64_v57 = vld [vmem:[%s3733_s0 + $0x178] sm:$0xff]  ;;  %v55_v58 = vld [vmem:[%s3733_s0 + $0x130] sm:$0xff] }
  0xef   :  { %1874 = vmatprep.subr.bf16.mxu0 %v1873_v62  ;;  %v71_v62 = vld [vmem:[%s3733_s0 + $0x1b0] sm:$0xff] }
  0xf1   :  { %1620 = vmatpush1.bf16.msra.mxu1 %v1619_v4  ;;  %v1314_v4 = vsub.s32 1, %v1309_v1 }
  0xf2   :  { %1876 = vmatpush1.bf16.msra.mxu0 %v1875_v5  ;;  %1622 = vmatprep.subr.bf16.mxu1 %v1621_v6  ;;  %v1306_v5 = vld [vmem:[%s3735_s3] sm:$0x3] }
  0xf3   :  { %1878 = vmatprep.subr.bf16.mxu0 %v1877_v10  ;;  %v1315_v10 = vrot.slane %v1305_v3, %v1314_v4  ;;  %v1330_v12 = vrot.slane %v1306_v5, %v1310_v2  ;;  %v1334_v15 = vrot.slane %v1306_v5, %v1314_v4 }
  0xf5   :  { %1624 = vmatpush1.bf16.msra.mxu1 %v1623_v16 }
  0xf6   :  { %1880 = vmatpush1.bf16.msra.mxu0 %v1879_v17  ;;  %1626 = vmatprep.subr.bf16.mxu1 %v1625_v18 }
  0xf7   :  { %1882 = vmatprep.subr.bf16.mxu0 %v1881_v22 }
  0xf9   :  { %1628 = vmatpush1.bf16.msra.mxu1 %v1627_v28 }
  0xfa   :  { %1884 = vmatpush1.bf16.msra.mxu0 %v1883_v29  ;;  %1630 = vmatprep.subr.bf16.mxu1 %v1629_v30 }
  0xfb   :  { %1886 = vmatprep.subr.bf16.mxu0 %v1885_v34 }
  0xfd   :  { %1632 = vmatpush1.bf16.msra.mxu1 %v1631_v40 }
  0xfe   :  { %1888 = vmatpush1.bf16.msra.mxu0 %v1887_v41  ;;  %1634 = vmatprep.subr.bf16.mxu1 %v1633_v42 }
  0xff   :  { %1890 = vmatprep.subr.bf16.mxu0 %v1889_v45 }
 0x101   :  { %1636 = vmatpush1.bf16.msra.mxu1 %v1635_v48 }
 0x102   :  { %1892 = vmatpush1.bf16.msra.mxu0 %v1891_v49 }
 0x104   :  { %925 = vmatmul.mubr.f32.vlgmr.msra.gmra.mrb[0].mxu1 %v23_v50 }
 0x105   :  { %1281 = vmatmul.mubr.f32.vlgmr.msra.gmra.mrb[0].mxu0 %v31_v51  ;;  %930 = vmatprep.mubr.f32.mxu1 %v40_v52 }
 0x106   :  { %1286 = vmatprep.mubr.f32.mxu0 %v48_v53 }
 0x108   :  { %931 = vmatmul.mubr.f32.gmra.mrb[2].mxu1 %v39_v54 }
 0x109   :  { %1287 = vmatmul.mubr.f32.gmra.mrb[2].mxu0 %v47_v55  ;;  %936 = vmatprep.mubr.f32.mxu1 %v56_v56 }
 0x10a   :  { %1292 = vmatprep.mubr.f32.mxu0 %v64_v57 }
 0x10c   :  { %937 = vmatmul.mubr.f32.gmra.mrb[4].mxu1 %v55_v58 }
 0x10d   :  { %1293 = vmatmul.mubr.f32.gmra.mrb[4].mxu0 %v63_v59  ;;  %942 = vmatprep.mubr.f32.mxu1 %v72_v60 }
 0x10e   :  { %1298 = vmatprep.mubr.f32.mxu0 %v80_v61 }
 0x110   :  { %943 = vmatmul.mubr.f32.gmra.mrb[6].mxu1 %v71_v62 }
 0x111   :  { %1299 = vmatmul.mubr.f32.gmra.mrb[6].mxu0 %v79_v63 }
 0x1d7   :  { %v926_v6 = vpop.f32.mrb[0].mxu1 }
 0x1d8   :  { %v1282_v8 = vpop.f32.mrb[0].mxu0  ;;  %v928_v9 = vpop.f32.mrb[1].mxu1 }
 0x1d9   :  { %v1893_v11 = vadd.f32 %v1282_v8, %v926_v6  ;;  %v1284_v13 = vpop.f32.mrb[1].mxu0 }
 0x1da   :  { %v1894_v14 = vadd.f32 %v1284_v13, %v928_v9 }
 0x1db   :  { %v1318_v16 = vmul.f32 %v1893_v11, %v1311_v7  ;;  %v932_v17 = vpop.f32.mrb[2].mxu1 }
 0x1dc   :  { %v1319_v18 = vmul.f32 %v1894_v14, %v1315_v10  ;;  %v1288_v19 = vpop.f32.mrb[2].mxu0  ;;  %v934_v20 = vpop.f32.mrb[3].mxu1 }
 0x1dd   :  { %v1337_v21 = vadd.f32 %v1330_v12, %v1318_v16  ;;  %v1895_v22 = vadd.f32 %v1288_v19, %v932_v17  ;;  %v1290_v23 = vpop.f32.mrb[3].mxu0 }
 0x1de   :  { %v1338_v24 = vadd.f32 %v1334_v15, %v1319_v18  ;;  %v1896_v25 = vadd.f32 %v1290_v23, %v934_v20 }
 0x1df   :  { %vm1345_vm0 = vcmp.ge.f32.partialorder %v1337_v21, 0.0  ;;  %v1353_v26 = vmul.f32 0.2, %v1337_v21  ;;  %v1320_v27 = vmul.f32 %v1895_v22, %v1311_v7  ;;  %v938_v28 = vpop.f32.mrb[4].mxu1 }
 0x1e0   :  { %vm1346_vm1 = vcmp.ge.f32.partialorder %v1338_v24, 0.0  ;;  %v1354_v29 = vmul.f32 0.2, %v1338_v24  ;;  %v1321_v30 = vmul.f32 %v1896_v25, %v1315_v10  ;;  %v1294_v31 = vpop.f32.mrb[4].mxu0  ;;  %v940_v32 = vpop.f32.mrb[5].mxu1 }
 0x1e1   :  { %v1361_v33 = vsel %vm1345_vm0, %v1337_v21, %v1353_v26  ;;  %v1339_v34 = vadd.f32 %v1330_v12, %v1320_v27  ;;  %v1897_v35 = vadd.f32 %v1294_v31, %v938_v28  ;;  %v1296_v36 = vpop.f32.mrb[5].mxu0 }
 0x1e2   :  { %1369 = vst [vmem:[%s3736_s4] sm:$0xff] %v1361_v33  ;;  %v1362_v37 = vsel %vm1346_vm1, %v1338_v24, %v1354_v29  ;;  %v1340_v38 = vadd.f32 %v1334_v15, %v1321_v30  ;;  %v1898_v39 = vadd.f32 %v1296_v36, %v940_v32 }
 0x1e3   :  { %1370 = vst [vmem:[%s3736_s4 + $0x8] sm:$0xff] %v1362_v37  ;;  %vm1347_vm2 = vcmp.ge.f32.partialorder %v1339_v34, 0.0  ;;  %v1355_v40 = vmul.f32 0.2, %v1339_v34  ;;  %v1322_v41 = vmul.f32 %v1897_v35, %v1311_v7  ;;  %v944_v42 = vpop.f32.mrb[6].mxu1 }
 0x1e4   :  { %vm1348_vm3 = vcmp.ge.f32.partialorder %v1340_v38, 0.0  ;;  %v1356_v43 = vmul.f32 0.2, %v1340_v38  ;;  %v1323_v44 = vmul.f32 %v1898_v39, %v1315_v10  ;;  %v1300_v45 = vpop.f32.mrb[6].mxu0  ;;  %v946_v46 = vpop.f32.mrb[7].mxu1 }
 0x1e5   :  { %v1363_v47 = vsel %vm1347_vm2, %v1339_v34, %v1355_v40  ;;  %v1341_v48 = vadd.f32 %v1330_v12, %v1322_v41  ;;  %v1899_v49 = vadd.f32 %v1300_v45, %v944_v42  ;;  %v1302_v50 = vpop.f32.mrb[7].mxu0 }
 0x1e6   :  { %1371 = vst [vmem:[%s3736_s4 + $0x10] sm:$0xff] %v1363_v47  ;;  %v1364_v51 = vsel %vm1348_vm3, %v1340_v38, %v1356_v43  ;;  %v1342_v52 = vadd.f32 %v1334_v15, %v1323_v44  ;;  %v1900_v53 = vadd.f32 %v1302_v50, %v946_v46 }
 0x1e7   :  { %1372 = vst [vmem:[%s3736_s4 + $0x18] sm:$0xff] %v1364_v51  ;;  %vm1349_vm4 = vcmp.ge.f32.partialorder %v1341_v48, 0.0  ;;  %v1357_v54 = vmul.f32 0.2, %v1341_v48  ;;  %v1324_v55 = vmul.f32 %v1899_v49, %v1311_v7 }
 0x1e8   :  { %vm1350_vm5 = vcmp.ge.f32.partialorder %v1342_v52, 0.0  ;;  %v1358_v56 = vmul.f32 0.2, %v1342_v52  ;;  %v1325_v57 = vmul.f32 %v1900_v53, %v1315_v10 }
 0x1e9   :  { %v1365_v58 = vsel %vm1349_vm4, %v1341_v48, %v1357_v54  ;;  %v1343_v59 = vadd.f32 %v1330_v12, %v1324_v55 }
 0x1ea   :  { %1373 = vst [vmem:[%s3736_s4 + $0x20] sm:$0xff] %v1365_v58  ;;  %v1366_v60 = vsel %vm1350_vm5, %v1342_v52, %v1358_v56  ;;  %v1344_v61 = vadd.f32 %v1334_v15, %v1325_v57 }
 0x1eb   :  { %1374 = vst [vmem:[%s3736_s4 + $0x28] sm:$0xff] %v1366_v60  ;;  %vm1351_vm6 = vcmp.ge.f32.partialorder %v1343_v59, 0.0  ;;  %v1359_v62 = vmul.f32 0.2, %v1343_v59 }
 0x1ec   :  { %vm1352_vm7 = vcmp.ge.f32.partialorder %v1344_v61, 0.0  ;;  %v1360_v63 = vmul.f32 0.2, %v1344_v61 }
 0x1ed   :  { %v1367_v0 = vsel %vm1351_vm6, %v1343_v59, %v1359_v62 }
 0x1ee   :  { %1375 = vst [vmem:[%s3736_s4 + $0x30] sm:$0xff] %v1367_v0  ;;  %v1368_v1 = vsel %vm1352_vm7, %v1344_v61, %v1360_v63 }
 0x1ef   :  { %1376 = vst [vmem:[%s3736_s4 + $0x38] sm:$0xff] %v1368_v1 }

// kernel: cifar_discriminator_forward.7
= control target key start
LH: loop header
LB: loop body
LE: loop exit
PB: predicated region body
PF: predicated region fallthrough
CT: control target
= control target key end

     0   :  { %s4453_s1 = inlined_call_operand.vmem [shape: f32[4096,128], index: 1, kind: input, shape index: {}]   ;;  %s4454_s0 = inlined_call_operand.vmem [shape: f32[8,4096], index: 0, kind: input, shape index: {}]   ;;  %s4455_s2 = inlined_call_operand.vmem [shape: f32[1,128], index: 2, kind: input, shape index: {}]   ;;  %s4456_s3 = inlined_call_operand.vmem [shape: f32[1,128], index: 3, kind: input, shape index: {}]   ;;  %s4457_s4 = inlined_call_operand.vmem [shape: f32[8,128], index: 4, kind: output, shape index: {}]  }
   0x1   :  { %v65_v0 = vld [vmem:[%s4453_s1 + $0x80] sm:$0xff]  ;;  %v66_v1 = vld [vmem:[%s4453_s1 + $0x88] sm:$0xff]  ;;  %v67_v11 = vld [vmem:[%s4453_s1 + $0x90] sm:$0xff] }
   0x2   :  { %v97_v2 = vld [vmem:[%s4453_s1 + $0x180] sm:$0xff]  ;;  %v2271_v3 = vpack.c.bf16 %v66_v1, %v65_v0  ;;  %v98_v4 = vld [vmem:[%s4453_s1 + $0x188] sm:$0xff]  ;;  %v68_v13 = vld [vmem:[%s4453_s1 + $0x98] sm:$0xff] }
   0x3   :  { %v49_v5 = vld [vmem:[%s4453_s1] sm:$0xff]  ;;  %v50_v6 = vld [vmem:[%s4453_s1 + $0x8] sm:$0xff]  ;;  %v2303_v7 = vpack.c.bf16 %v98_v4, %v97_v2  ;;  %v99_v14 = vld [vmem:[%s4453_s1 + $0x190] sm:$0xff]  ;;  %v2275_v16 = vpack.c.bf16 %v68_v13, %v67_v11 }
   0x4   :  { %v2273_v8 = vpack.c.bf16 %v50_v6, %v49_v5  ;;  %v81_v9 = vld [vmem:[%s4453_s1 + $0x100] sm:$0xff]  ;;  %v82_v10 = vld [vmem:[%s4453_s1 + $0x108] sm:$0xff]  ;;  %2272 = vmatprep.subr.bf16.mxu0 %v2271_v3  ;;  %v100_v15 = vld [vmem:[%s4453_s1 + $0x198] sm:$0xff] }
   0x5   :  { %v2305_v12 = vpack.c.bf16 %v82_v10, %v81_v9  ;;  %2304 = vmatprep.subr.bf16.mxu1 %v2303_v7  ;;  %v2307_v17 = vpack.c.bf16 %v100_v15, %v99_v14  ;;  %v51_v18 = vld [vmem:[%s4453_s1 + $0x10] sm:$0xff]  ;;  %v52_v19 = vld [vmem:[%s4453_s1 + $0x18] sm:$0xff]  ;;  %v69_v23 = vld [vmem:[%s4453_s1 + $0xa0] sm:$0xff] }
   0x6   :  { %2274 = vmatpush3.bf16.msra.mxu0 %v2273_v8  ;;  %v83_v20 = vld [vmem:[%s4453_s1 + $0x110] sm:$0xff]  ;;  %v2277_v21 = vpack.c.bf16 %v52_v19, %v51_v18  ;;  %v84_v22 = vld [vmem:[%s4453_s1 + $0x118] sm:$0xff]  ;;  %v70_v24 = vld [vmem:[%s4453_s1 + $0xa8] sm:$0xff] }
   0x7   :  { %2306 = vmatpush3.bf16.msra.mxu1 %v2305_v12  ;;  %2276 = vmatprep.subr.bf16.mxu0 %v2275_v16  ;;  %v2309_v25 = vpack.c.bf16 %v84_v22, %v83_v20  ;;  %v2279_v26 = vpack.c.bf16 %v70_v24, %v69_v23  ;;  %v101_v27 = vld [vmem:[%s4453_s1 + $0x1a0] sm:$0xff]  ;;  %v102_v28 = vld [vmem:[%s4453_s1 + $0x1a8] sm:$0xff]  ;;  %v71_v35 = vld [vmem:[%s4453_s1 + $0xb0] sm:$0xff] }
   0x8   :  { %2308 = vmatprep.subr.bf16.mxu1 %v2307_v17  ;;  %v53_v29 = vld [vmem:[%s4453_s1 + $0x20] sm:$0xff]  ;;  %v2311_v30 = vpack.c.bf16 %v102_v28, %v101_v27  ;;  %v54_v31 = vld [vmem:[%s4453_s1 + $0x28] sm:$0xff]  ;;  %v72_v36 = vld [vmem:[%s4453_s1 + $0xb8] sm:$0xff] }
   0x9   :  { %v85_v32 = vld [vmem:[%s4453_s1 + $0x120] sm:$0xff]  ;;  %v86_v33 = vld [vmem:[%s4453_s1 + $0x128] sm:$0xff]  ;;  %v2281_v34 = vpack.c.bf16 %v54_v31, %v53_v29  ;;  %v103_v37 = vld [vmem:[%s4453_s1 + $0x1b0] sm:$0xff]  ;;  %v2283_v39 = vpack.c.bf16 %v72_v36, %v71_v35 }
   0xa   :  { %2278 = vmatpush3.bf16.msra.mxu0 %v2277_v21  ;;  %v2313_v38 = vpack.c.bf16 %v86_v33, %v85_v32  ;;  %v104_v40 = vld [vmem:[%s4453_s1 + $0x1b8] sm:$0xff]  ;;  %v55_v41 = vld [vmem:[%s4453_s1 + $0x30] sm:$0xff]  ;;  %v73_v46 = vld [vmem:[%s4453_s1 + $0xc0] sm:$0xff] }
   0xb   :  { %2310 = vmatpush3.bf16.msra.mxu1 %v2309_v25  ;;  %2280 = vmatprep.subr.bf16.mxu0 %v2279_v26  ;;  %v56_v42 = vld [vmem:[%s4453_s1 + $0x38] sm:$0xff]  ;;  %v2315_v43 = vpack.c.bf16 %v104_v40, %v103_v37  ;;  %v87_v44 = vld [vmem:[%s4453_s1 + $0x130] sm:$0xff]  ;;  %v74_v47 = vld [vmem:[%s4453_s1 + $0xc8] sm:$0xff] }
   0xc   :  { %2312 = vmatprep.subr.bf16.mxu1 %v2311_v30  ;;  %v88_v45 = vld [vmem:[%s4453_s1 + $0x138] sm:$0xff]  ;;  %v105_v48 = vld [vmem:[%s4453_s1 + $0x1c0] sm:$0xff]  ;;  %v106_v49 = vld [vmem:[%s4453_s1 + $0x1c8] sm:$0xff]  ;;  %v2285_v50 = vpack.c.bf16 %v56_v42, %v55_v41  ;;  %v2287_v52 = vpack.c.bf16 %v74_v47, %v73_v46 }
   0xd   :  { %v2317_v51 = vpack.c.bf16 %v88_v45, %v87_v44  ;;  %v57_v53 = vld [vmem:[%s4453_s1 + $0x40] sm:$0xff]  ;;  %v58_v54 = vld [vmem:[%s4453_s1 + $0x48] sm:$0xff]  ;;  %v2319_v56 = vpack.c.bf16 %v106_v49, %v105_v48  ;;  %v75_v58 = vld [vmem:[%s4453_s1 + $0xd0] sm:$0xff] }
   0xe   :  { %2282 = vmatpush3.bf16.msra.mxu0 %v2281_v34  ;;  %v89_v55 = vld [vmem:[%s4453_s1 + $0x140] sm:$0xff]  ;;  %v90_v57 = vld [vmem:[%s4453_s1 + $0x148] sm:$0xff]  ;;  %v76_v59 = vld [vmem:[%s4453_s1 + $0xd8] sm:$0xff]  ;;  %v2289_v62 = vpack.c.bf16 %v58_v54, %v57_v53 }
   0xf   :  { %2314 = vmatpush3.bf16.msra.mxu1 %v2313_v38  ;;  %2284 = vmatprep.subr.bf16.mxu0 %v2283_v39  ;;  %v107_v60 = vld [vmem:[%s4453_s1 + $0x1d0] sm:$0xff]  ;;  %v108_v61 = vld [vmem:[%s4453_s1 + $0x1d8] sm:$0xff]  ;;  %v2321_v63 = vpack.c.bf16 %v90_v57, %v89_v55  ;;  %v2291_v0 = vpack.c.bf16 %v76_v59, %v75_v58  ;;  %v77_v6 = vld [vmem:[%s4453_s1 + $0xe0] sm:$0xff] }
  0x10   :  { %2316 = vmatprep.subr.bf16.mxu1 %v2315_v43  ;;  %v59_v1 = vld [vmem:[%s4453_s1 + $0x50] sm:$0xff]  ;;  %v60_v2 = vld [vmem:[%s4453_s1 + $0x58] sm:$0xff]  ;;  %v2323_v4 = vpack.c.bf16 %v108_v61, %v107_v60  ;;  %v78_v7 = vld [vmem:[%s4453_s1 + $0xe8] sm:$0xff] }
  0x11   :  { %v91_v3 = vld [vmem:[%s4453_s1 + $0x150] sm:$0xff]  ;;  %v92_v5 = vld [vmem:[%s4453_s1 + $0x158] sm:$0xff]  ;;  %v109_v8 = vld [vmem:[%s4453_s1 + $0x1e0] sm:$0xff]  ;;  %v2293_v10 = vpack.c.bf16 %v60_v2, %v59_v1  ;;  %v2295_v14 = vpack.c.bf16 %v78_v7, %v77_v6 }
  0x12   :  { %2286 = vmatpush3.bf16.msra.mxu0 %v2285_v50  ;;  %v110_v9 = vld [vmem:[%s4453_s1 + $0x1e8] sm:$0xff]  ;;  %v61_v11 = vld [vmem:[%s4453_s1 + $0x60] sm:$0xff]  ;;  %v2325_v13 = vpack.c.bf16 %v92_v5, %v91_v3  ;;  %v20_v17 = vld [vmem:[%s4454_s0 + $0x18] sm:$0xff] }
  0x13   :  { %2318 = vmatpush3.bf16.msra.mxu1 %v2317_v51  ;;  %2288 = vmatprep.subr.bf16.mxu0 %v2287_v52  ;;  %v62_v12 = vld [vmem:[%s4453_s1 + $0x68] sm:$0xff]  ;;  %v93_v15 = vld [vmem:[%s4453_s1 + $0x160] sm:$0xff]  ;;  %v2327_v18 = vpack.c.bf16 %v110_v9, %v109_v8  ;;  %v79_v20 = vld [vmem:[%s4453_s1 + $0xf0] sm:$0xff] }
  0x14   :  { %2320 = vmatprep.subr.bf16.mxu1 %v2319_v56  ;;  %v18_v16 = vld [vmem:[%s4454_s0 + $0x8] sm:$0xff]  ;;  %v80_v21 = vld [vmem:[%s4453_s1 + $0xf8] sm:$0xff]  ;;  %v111_v22 = vld [vmem:[%s4453_s1 + $0x1f0] sm:$0xff]  ;;  %695 = vmatprep.mubr.f32.mxu1 %v20_v17  ;;  %v2297_v24 = vpack.c.bf16 %v62_v12, %v61_v11 }
  0x15   :  { %v94_v19 = vld [vmem:[%s4453_s1 + $0x168] sm:$0xff]  ;;  %625 = vmatprep.mubr.f32.mxu0 %v18_v16  ;;  %v112_v23 = vld [vmem:[%s4453_s1 + $0x1f8] sm:$0xff]  ;;  %v2299_v26 = vpack.c.bf16 %v80_v21, %v79_v20  ;;  %v63_v27 = vld [vmem:[%s4453_s1 + $0x70] sm:$0xff] }
  0x16   :  { %2290 = vmatpush3.bf16.msra.mxu0 %v2289_v62  ;;  %v2329_v25 = vpack.c.bf16 %v94_v19, %v93_v15  ;;  %v64_v28 = vld [vmem:[%s4453_s1 + $0x78] sm:$0xff]  ;;  %v95_v29 = vld [vmem:[%s4453_s1 + $0x170] sm:$0xff]  ;;  %v2331_v30 = vpack.c.bf16 %v112_v23, %v111_v22  ;;  %v129_v32 = vld [vmem:[%s4453_s1 + $0x280] sm:$0xff] }
  0x17   :  { %2322 = vmatpush3.bf16.msra.mxu1 %v2321_v63  ;;  %2292 = vmatprep.subr.bf16.mxu0 %v2291_v0  ;;  %v96_v31 = vld [vmem:[%s4453_s1 + $0x178] sm:$0xff]  ;;  %v130_v33 = vld [vmem:[%s4453_s1 + $0x288] sm:$0xff]  ;;  %v161_v34 = vld [vmem:[%s4453_s1 + $0x380] sm:$0xff]  ;;  %v2301_v36 = vpack.c.bf16 %v64_v28, %v63_v27 }
  0x18   :  { %2324 = vmatprep.subr.bf16.mxu1 %v2323_v4  ;;  %v162_v35 = vld [vmem:[%s4453_s1 + $0x388] sm:$0xff]  ;;  %v2333_v37 = vpack.c.bf16 %v96_v31, %v95_v29  ;;  %v2335_v38 = vpack.c.bf16 %v130_v33, %v129_v32  ;;  %v113_v39 = vld [vmem:[%s4453_s1 + $0x200] sm:$0xff]  ;;  %v131_v44 = vld [vmem:[%s4453_s1 + $0x290] sm:$0xff] }
  0x19   :  { %v114_v40 = vld [vmem:[%s4453_s1 + $0x208] sm:$0xff]  ;;  %v145_v41 = vld [vmem:[%s4453_s1 + $0x300] sm:$0xff]  ;;  %v2367_v42 = vpack.c.bf16 %v162_v35, %v161_v34  ;;  %v132_v45 = vld [vmem:[%s4453_s1 + $0x298] sm:$0xff] }
  0x1a   :  { %2294 = vmatpush3.bf16.msra.mxu0 %v2293_v10  ;;  %v146_v43 = vld [vmem:[%s4453_s1 + $0x308] sm:$0xff]  ;;  %v163_v46 = vld [vmem:[%s4453_s1 + $0x390] sm:$0xff]  ;;  %v164_v47 = vld [vmem:[%s4453_s1 + $0x398] sm:$0xff]  ;;  %v2337_v50 = vpack.c.bf16 %v114_v40, %v113_v39  ;;  %v2339_v52 = vpack.c.bf16 %v132_v45, %v131_v44 }
  0x1b   :  { %2326 = vmatpush3.bf16.msra.mxu1 %v2325_v13  ;;  %2296 = vmatprep.subr.bf16.mxu0 %v2295_v14  ;;  %v17_v48 = vld [vmem:[%s4454_s0] sm:$0xff]  ;;  %v19_v49 = vld [vmem:[%s4454_s0 + $0x10] sm:$0xff]  ;;  %v2369_v51 = vpack.c.bf16 %v146_v43, %v145_v41  ;;  %v116_v54 = vld [vmem:[%s4453_s1 + $0x218] sm:$0xff]  ;;  %v2371_v56 = vpack.c.bf16 %v164_v47, %v163_v46 }
  0x1c   :  { %2328 = vmatprep.subr.bf16.mxu1 %v2327_v18  ;;  %v115_v53 = vld [vmem:[%s4453_s1 + $0x210] sm:$0xff]  ;;  %v148_v57 = vld [vmem:[%s4453_s1 + $0x318] sm:$0xff]  ;;  %v133_v58 = vld [vmem:[%s4453_s1 + $0x2a0] sm:$0xff] }
  0x1d   :  { %v147_v55 = vld [vmem:[%s4453_s1 + $0x310] sm:$0xff]  ;;  %v134_v59 = vld [vmem:[%s4453_s1 + $0x2a8] sm:$0xff]  ;;  %v165_v60 = vld [vmem:[%s4453_s1 + $0x3a0] sm:$0xff]  ;;  %v2341_v62 = vpack.c.bf16 %v116_v54, %v115_v53 }
  0x1e   :  { %2298 = vmatpush3.bf16.msra.mxu0 %v2297_v24  ;;  %v166_v61 = vld [vmem:[%s4453_s1 + $0x3a8] sm:$0xff]  ;;  %v2373_v63 = vpack.c.bf16 %v148_v57, %v147_v55  ;;  %v2343_v0 = vpack.c.bf16 %v134_v59, %v133_v58  ;;  %v117_v1 = vld [vmem:[%s4453_s1 + $0x220] sm:$0xff]  ;;  %v135_v6 = vld [vmem:[%s4453_s1 + $0x2b0] sm:$0xff] }
  0x1f   :  { %2330 = vmatpush3.bf16.msra.mxu1 %v2329_v25  ;;  %2300 = vmatprep.subr.bf16.mxu0 %v2299_v26  ;;  %v118_v2 = vld [vmem:[%s4453_s1 + $0x228] sm:$0xff]  ;;  %v149_v3 = vld [vmem:[%s4453_s1 + $0x320] sm:$0xff]  ;;  %v2375_v4 = vpack.c.bf16 %v166_v61, %v165_v60  ;;  %v136_v7 = vld [vmem:[%s4453_s1 + $0x2b8] sm:$0xff] }
  0x20   :  { %2332 = vmatprep.subr.bf16.mxu1 %v2331_v30  ;;  %v150_v5 = vld [vmem:[%s4453_s1 + $0x328] sm:$0xff]  ;;  %v167_v8 = vld [vmem:[%s4453_s1 + $0x3b0] sm:$0xff]  ;;  %v168_v9 = vld [vmem:[%s4453_s1 + $0x3b8] sm:$0xff]  ;;  %v2345_v10 = vpack.c.bf16 %v118_v2, %v117_v1  ;;  %v2347_v12 = vpack.c.bf16 %v136_v7, %v135_v6 }
  0x21   :  { %v2377_v11 = vpack.c.bf16 %v150_v5, %v149_v3  ;;  %v119_v13 = vld [vmem:[%s4453_s1 + $0x230] sm:$0xff]  ;;  %v120_v14 = vld [vmem:[%s4453_s1 + $0x238] sm:$0xff]  ;;  %v2379_v16 = vpack.c.bf16 %v168_v9, %v167_v8  ;;  %v137_v18 = vld [vmem:[%s4453_s1 + $0x2c0] sm:$0xff] }
  0x22   :  { %2302 = vmatpush3.bf16.msra.mxu0 %v2301_v36  ;;  %v151_v15 = vld [vmem:[%s4453_s1 + $0x330] sm:$0xff]  ;;  %v152_v17 = vld [vmem:[%s4453_s1 + $0x338] sm:$0xff]  ;;  %v138_v19 = vld [vmem:[%s4453_s1 + $0x2c8] sm:$0xff]  ;;  %v2349_v22 = vpack.c.bf16 %v120_v14, %v119_v13 }
  0x23   :  { %2334 = vmatpush3.bf16.msra.mxu1 %v2333_v37  ;;  %2336 = vmatprep.subr.bf16.mxu0 %v2335_v38  ;;  %v169_v20 = vld [vmem:[%s4453_s1 + $0x3c0] sm:$0xff]  ;;  %v170_v21 = vld [vmem:[%s4453_s1 + $0x3c8] sm:$0xff]  ;;  %v2381_v25 = vpack.c.bf16 %v152_v17, %v151_v15  ;;  %v2351_v26 = vpack.c.bf16 %v138_v19, %v137_v18  ;;  %v24_v29 = vld [vmem:[%s4454_s0 + $0x38] sm:$0xff] }
  0x24   :  { %2368 = vmatprep.subr.bf16.mxu1 %v2367_v42  ;;  %v121_v23 = vld [vmem:[%s4453_s1 + $0x240] sm:$0xff]  ;;  %v22_v24 = vld [vmem:[%s4454_s0 + $0x28] sm:$0xff]  ;;  %v2383_v30 = vpack.c.bf16 %v170_v21, %v169_v20  ;;  %v139_v32 = vld [vmem:[%s4453_s1 + $0x2d0] sm:$0xff] }
  0x25   :  { %626 = vmatmul.mubr.f32.vlgmr.msra.gmra.mrb[0].mxu0 %v17_v48  ;;  %v122_v27 = vld [vmem:[%s4453_s1 + $0x248] sm:$0xff]  ;;  %v153_v28 = vld [vmem:[%s4453_s1 + $0x340] sm:$0xff]  ;;  %v140_v33 = vld [vmem:[%s4453_s1 + $0x2d8] sm:$0xff] }
  0x26   :  { %696 = vmatmul.mubr.f32.vlgmr.msra.gmra.mrb[0].mxu1 %v19_v49  ;;  %2338 = vmatpush3.bf16.msra.mxu0 %v2337_v50  ;;  %v154_v31 = vld [vmem:[%s4453_s1 + $0x348] sm:$0xff]  ;;  %v171_v34 = vld [vmem:[%s4453_s1 + $0x3d0] sm:$0xff]  ;;  %v172_v35 = vld [vmem:[%s4453_s1 + $0x3d8] sm:$0xff]  ;;  %v2353_v36 = vpack.c.bf16 %v122_v27, %v121_v23  ;;  %v2355_v38 = vpack.c.bf16 %v140_v33, %v139_v32 }
  0x27   :  { %2370 = vmatpush3.bf16.msra.mxu1 %v2369_v51  ;;  %2340 = vmatprep.subr.bf16.mxu0 %v2339_v52  ;;  %v2385_v37 = vpack.c.bf16 %v154_v31, %v153_v28  ;;  %v123_v39 = vld [vmem:[%s4453_s1 + $0x250] sm:$0xff]  ;;  %v124_v40 = vld [vmem:[%s4453_s1 + $0x258] sm:$0xff]  ;;  %v2387_v42 = vpack.c.bf16 %v172_v35, %v171_v34  ;;  %v141_v44 = vld [vmem:[%s4453_s1 + $0x2e0] sm:$0xff] }
  0x28   :  { %2372 = vmatprep.subr.bf16.mxu1 %v2371_v56  ;;  %765 = vmatprep.mubr.f32.mxu0 %v22_v24  ;;  %v155_v41 = vld [vmem:[%s4453_s1 + $0x350] sm:$0xff]  ;;  %v156_v43 = vld [vmem:[%s4453_s1 + $0x358] sm:$0xff]  ;;  %v142_v45 = vld [vmem:[%s4453_s1 + $0x2e8] sm:$0xff]  ;;  %v2357_v48 = vpack.c.bf16 %v124_v40, %v123_v39 }
  0x29   :  { %835 = vmatprep.mubr.f32.mxu1 %v24_v29  ;;  %v173_v46 = vld [vmem:[%s4453_s1 + $0x3e0] sm:$0xff]  ;;  %v174_v47 = vld [vmem:[%s4453_s1 + $0x3e8] sm:$0xff]  ;;  %v2389_v49 = vpack.c.bf16 %v156_v43, %v155_v41  ;;  %v2359_v50 = vpack.c.bf16 %v142_v45, %v141_v44  ;;  %v143_v56 = vld [vmem:[%s4453_s1 + $0x2f0] sm:$0xff] }
  0x2a   :  { %2342 = vmatpush3.bf16.msra.mxu0 %v2341_v62  ;;  %v125_v51 = vld [vmem:[%s4453_s1 + $0x260] sm:$0xff]  ;;  %v126_v52 = vld [vmem:[%s4453_s1 + $0x268] sm:$0xff]  ;;  %v2391_v54 = vpack.c.bf16 %v174_v47, %v173_v46  ;;  %v144_v57 = vld [vmem:[%s4453_s1 + $0x2f8] sm:$0xff] }
  0x2b   :  { %2374 = vmatpush3.bf16.msra.mxu1 %v2373_v63  ;;  %2344 = vmatprep.subr.bf16.mxu0 %v2343_v0  ;;  %v157_v53 = vld [vmem:[%s4453_s1 + $0x360] sm:$0xff]  ;;  %v158_v55 = vld [vmem:[%s4453_s1 + $0x368] sm:$0xff]  ;;  %v175_v58 = vld [vmem:[%s4453_s1 + $0x3f0] sm:$0xff]  ;;  %v2361_v60 = vpack.c.bf16 %v126_v52, %v125_v51  ;;  %v2363_v62 = vpack.c.bf16 %v144_v57, %v143_v56 }
  0x2c   :  { %2376 = vmatprep.subr.bf16.mxu1 %v2375_v4  ;;  %v176_v59 = vld [vmem:[%s4453_s1 + $0x3f8] sm:$0xff]  ;;  %v2393_v61 = vpack.c.bf16 %v158_v55, %v157_v53  ;;  %v127_v63 = vld [vmem:[%s4453_s1 + $0x270] sm:$0xff]  ;;  %v193_v4 = vld [vmem:[%s4453_s1 + $0x480] sm:$0xff] }
  0x2d   :  { %v128_v0 = vld [vmem:[%s4453_s1 + $0x278] sm:$0xff]  ;;  %v159_v1 = vld [vmem:[%s4453_s1 + $0x370] sm:$0xff]  ;;  %v2395_v2 = vpack.c.bf16 %v176_v59, %v175_v58  ;;  %v194_v5 = vld [vmem:[%s4453_s1 + $0x488] sm:$0xff] }
  0x2e   :  { %2346 = vmatpush3.bf16.msra.mxu0 %v2345_v10  ;;  %v160_v3 = vld [vmem:[%s4453_s1 + $0x378] sm:$0xff]  ;;  %v225_v6 = vld [vmem:[%s4453_s1 + $0x580] sm:$0xff]  ;;  %v226_v7 = vld [vmem:[%s4453_s1 + $0x588] sm:$0xff]  ;;  %v2365_v8 = vpack.c.bf16 %v128_v0, %v127_v63  ;;  %v2399_v10 = vpack.c.bf16 %v194_v5, %v193_v4 }
  0x2f   :  { %2378 = vmatpush3.bf16.msra.mxu1 %v2377_v11  ;;  %2348 = vmatprep.subr.bf16.mxu0 %v2347_v12  ;;  %v2397_v9 = vpack.c.bf16 %v160_v3, %v159_v1  ;;  %v177_v11 = vld [vmem:[%s4453_s1 + $0x400] sm:$0xff]  ;;  %v178_v12 = vld [vmem:[%s4453_s1 + $0x408] sm:$0xff]  ;;  %v2431_v14 = vpack.c.bf16 %v226_v7, %v225_v6  ;;  %v196_v17 = vld [vmem:[%s4453_s1 + $0x498] sm:$0xff] }
  0x30   :  { %2380 = vmatprep.subr.bf16.mxu1 %v2379_v16  ;;  %v209_v13 = vld [vmem:[%s4453_s1 + $0x500] sm:$0xff]  ;;  %v210_v15 = vld [vmem:[%s4453_s1 + $0x508] sm:$0xff]  ;;  %v195_v16 = vld [vmem:[%s4453_s1 + $0x490] sm:$0xff]  ;;  %v2401_v21 = vpack.c.bf16 %v178_v12, %v177_v11 }
  0x31   :  { %v227_v18 = vld [vmem:[%s4453_s1 + $0x590] sm:$0xff]  ;;  %v228_v19 = vld [vmem:[%s4453_s1 + $0x598] sm:$0xff]  ;;  %v21_v20 = vld [vmem:[%s4454_s0 + $0x20] sm:$0xff]  ;;  %v2433_v23 = vpack.c.bf16 %v210_v15, %v209_v13  ;;  %v2403_v24 = vpack.c.bf16 %v196_v17, %v195_v16 }
  0x32   :  { %2350 = vmatpush3.bf16.msra.mxu0 %v2349_v22  ;;  %v23_v22 = vld [vmem:[%s4454_s0 + $0x30] sm:$0xff]  ;;  %v2435_v28 = vpack.c.bf16 %v228_v19, %v227_v18  ;;  %v212_v29 = vld [vmem:[%s4453_s1 + $0x518] sm:$0xff]  ;;  %v198_v31 = vld [vmem:[%s4453_s1 + $0x4a8] sm:$0xff] }
  0x33   :  { %2382 = vmatpush3.bf16.msra.mxu1 %v2381_v25  ;;  %2352 = vmatprep.subr.bf16.mxu0 %v2351_v26  ;;  %v179_v25 = vld [vmem:[%s4453_s1 + $0x410] sm:$0xff]  ;;  %v180_v26 = vld [vmem:[%s4453_s1 + $0x418] sm:$0xff]  ;;  %v229_v32 = vld [vmem:[%s4453_s1 + $0x5a0] sm:$0xff] }
  0x34   :  { %2384 = vmatprep.subr.bf16.mxu1 %v2383_v30  ;;  %v211_v27 = vld [vmem:[%s4453_s1 + $0x510] sm:$0xff]  ;;  %v197_v30 = vld [vmem:[%s4453_s1 + $0x4a0] sm:$0xff]  ;;  %v230_v33 = vld [vmem:[%s4453_s1 + $0x5a8] sm:$0xff]  ;;  %v2405_v35 = vpack.c.bf16 %v180_v26, %v179_v25 }
  0x35   :  { %v26_v34 = vld [vmem:[%s4454_s0 + $0x48] sm:$0xff]  ;;  %v181_v39 = vld [vmem:[%s4453_s1 + $0x420] sm:$0xff]  ;;  %v199_v44 = vld [vmem:[%s4453_s1 + $0x4b0] sm:$0xff] }
  0x36   :  { %2354 = vmatpush3.bf16.msra.mxu0 %v2353_v36  ;;  %v28_v36 = vld [vmem:[%s4454_s0 + $0x58] sm:$0xff]  ;;  %v182_v40 = vld [vmem:[%s4453_s1 + $0x428] sm:$0xff]  ;;  %v213_v41 = vld [vmem:[%s4453_s1 + $0x520] sm:$0xff] }
  0x37   :  { %2386 = vmatpush3.bf16.msra.mxu1 %v2385_v37  ;;  %2356 = vmatprep.subr.bf16.mxu0 %v2355_v38  ;;  %v2437_v37 = vpack.c.bf16 %v212_v29, %v211_v27  ;;  %v2407_v38 = vpack.c.bf16 %v198_v31, %v197_v30  ;;  %v214_v43 = vld [vmem:[%s4453_s1 + $0x528] sm:$0xff]  ;;  %v200_v45 = vld [vmem:[%s4453_s1 + $0x4b8] sm:$0xff]  ;;  %v231_v46 = vld [vmem:[%s4453_s1 + $0x5b0] sm:$0xff] }
  0x38   :  { %2388 = vmatprep.subr.bf16.mxu1 %v2387_v42  ;;  %v2439_v42 = vpack.c.bf16 %v230_v33, %v229_v32  ;;  %v232_v47 = vld [vmem:[%s4453_s1 + $0x5b8] sm:$0xff]  ;;  %v183_v51 = vld [vmem:[%s4453_s1 + $0x430] sm:$0xff]  ;;  %v201_v56 = vld [vmem:[%s4453_s1 + $0x4c0] sm:$0xff] }
  0x39   :  { %v184_v52 = vld [vmem:[%s4453_s1 + $0x438] sm:$0xff]  ;;  %v215_v53 = vld [vmem:[%s4453_s1 + $0x530] sm:$0xff]  ;;  %v202_v57 = vld [vmem:[%s4453_s1 + $0x4c8] sm:$0xff] }
  0x3a   :  { %2358 = vmatpush3.bf16.msra.mxu0 %v2357_v48  ;;  %v2409_v48 = vpack.c.bf16 %v182_v40, %v181_v39  ;;  %v216_v55 = vld [vmem:[%s4453_s1 + $0x538] sm:$0xff]  ;;  %v233_v58 = vld [vmem:[%s4453_s1 + $0x5c0] sm:$0xff]  ;;  %v234_v59 = vld [vmem:[%s4453_s1 + $0x5c8] sm:$0xff] }
  0x3b   :  { %2390 = vmatpush3.bf16.msra.mxu1 %v2389_v49  ;;  %2360 = vmatprep.subr.bf16.mxu0 %v2359_v50  ;;  %v2441_v49 = vpack.c.bf16 %v214_v43, %v213_v41  ;;  %v2411_v50 = vpack.c.bf16 %v200_v45, %v199_v44  ;;  %v185_v63 = vld [vmem:[%s4453_s1 + $0x440] sm:$0xff]  ;;  %v186_v0 = vld [vmem:[%s4453_s1 + $0x448] sm:$0xff]  ;;  %v203_v4 = vld [vmem:[%s4453_s1 + $0x4d0] sm:$0xff] }
  0x3c   :  { %2392 = vmatprep.subr.bf16.mxu1 %v2391_v54  ;;  %v2443_v54 = vpack.c.bf16 %v232_v47, %v231_v46  ;;  %v217_v1 = vld [vmem:[%s4453_s1 + $0x540] sm:$0xff]  ;;  %v218_v3 = vld [vmem:[%s4453_s1 + $0x548] sm:$0xff]  ;;  %v204_v5 = vld [vmem:[%s4453_s1 + $0x4d8] sm:$0xff] }
  0x3d   :  { %v235_v6 = vld [vmem:[%s4453_s1 + $0x5d0] sm:$0xff]  ;;  %v236_v7 = vld [vmem:[%s4453_s1 + $0x5d8] sm:$0xff]  ;;  %v205_v16 = vld [vmem:[%s4453_s1 + $0x4e0] sm:$0xff] }
  0x3e   :  { %2362 = vmatpush3.bf16.msra.mxu0 %v2361_v60  ;;  %v2413_v60 = vpack.c.bf16 %v184_v52, %v183_v51  ;;  %v187_v11 = vld [vmem:[%s4453_s1 + $0x450] sm:$0xff]  ;;  %v188_v12 = vld [vmem:[%s4453_s1 + $0x458] sm:$0xff]  ;;  %v206_v17 = vld [vmem:[%s4453_s1 + $0x4e8] sm:$0xff] }
  0x3f   :  { %2394 = vmatpush3.bf16.msra.mxu1 %v2393_v61  ;;  %2364 = vmatprep.subr.bf16.mxu0 %v2363_v62  ;;  %v2445_v61 = vpack.c.bf16 %v216_v55, %v215_v53  ;;  %v2415_v62 = vpack.c.bf16 %v202_v57, %v201_v56  ;;  %v219_v13 = vld [vmem:[%s4453_s1 + $0x550] sm:$0xff]  ;;  %v220_v15 = vld [vmem:[%s4453_s1 + $0x558] sm:$0xff]  ;;  %v237_v18 = vld [vmem:[%s4453_s1 + $0x5e0] sm:$0xff] }
  0x40   :  { %2396 = vmatprep.subr.bf16.mxu1 %v2395_v2  ;;  %v2447_v2 = vpack.c.bf16 %v234_v59, %v233_v58  ;;  %v238_v19 = vld [vmem:[%s4453_s1 + $0x5e8] sm:$0xff]  ;;  %v221_v25 = vld [vmem:[%s4453_s1 + $0x560] sm:$0xff]  ;;  %v208_v29 = vld [vmem:[%s4453_s1 + $0x4f8] sm:$0xff] }
  0x41   :  { %v2455_v26 = vpack.c.bf16 %v238_v19, %v237_v18  ;;  %v222_v27 = vld [vmem:[%s4453_s1 + $0x568] sm:$0xff]  ;;  %v239_v30 = vld [vmem:[%s4453_s1 + $0x5f0] sm:$0xff]  ;;  %v240_v31 = vld [vmem:[%s4453_s1 + $0x5f8] sm:$0xff] }
  0x42   :  { %2366 = vmatpush3.bf16.msra.mxu0 %v2365_v8  ;;  %v2417_v8 = vpack.c.bf16 %v186_v0, %v185_v63  ;;  %v2457_v33 = vpack.c.bf16 %v222_v27, %v221_v25  ;;  %v224_v39 = vld [vmem:[%s4453_s1 + $0x578] sm:$0xff]  ;;  %v257_v40 = vld [vmem:[%s4453_s1 + $0x680] sm:$0xff]  ;;  %v258_v41 = vld [vmem:[%s4453_s1 + $0x688] sm:$0xff] }
  0x43   :  { %2398 = vmatpush3.bf16.msra.mxu1 %v2397_v9  ;;  %2400 = vmatprep.subr.bf16.mxu0 %v2399_v10  ;;  %v2449_v9 = vpack.c.bf16 %v218_v3, %v217_v1  ;;  %v2419_v10 = vpack.c.bf16 %v204_v5, %v203_v4  ;;  %v290_v43 = vld [vmem:[%s4453_s1 + $0x788] sm:$0xff]  ;;  %v2463_v46 = vpack.c.bf16 %v258_v41, %v257_v40  ;;  %v241_v47 = vld [vmem:[%s4453_s1 + $0x600] sm:$0xff]  ;;  %v259_v52 = vld [vmem:[%s4453_s1 + $0x690] sm:$0xff] }
  0x44   :  { %2432 = vmatprep.subr.bf16.mxu1 %v2431_v14  ;;  %v2451_v14 = vpack.c.bf16 %v236_v7, %v235_v6  ;;  %v274_v51 = vld [vmem:[%s4453_s1 + $0x708] sm:$0xff]  ;;  %v260_v53 = vld [vmem:[%s4453_s1 + $0x698] sm:$0xff]  ;;  %v25_v56 = vld [vmem:[%s4454_s0 + $0x40] sm:$0xff] }
  0x45   :  { %766 = vmatmul.mubr.f32.vlgmr.msra.gmra.mrb[2].mxu0 %v21_v20  ;;  %v2421_v20 = vpack.c.bf16 %v188_v12, %v187_v11  ;;  %v292_v55 = vld [vmem:[%s4453_s1 + $0x798] sm:$0xff]  ;;  %v27_v58 = vld [vmem:[%s4454_s0 + $0x50] sm:$0xff]  ;;  %v262_v3 = vld [vmem:[%s4453_s1 + $0x6a8] sm:$0xff] }
  0x46   :  { %2402 = vmatpush3.bf16.msra.mxu0 %v2401_v21  ;;  %836 = vmatmul.mubr.f32.vlgmr.msra.gmra.mrb[2].mxu1 %v23_v22  ;;  %v2453_v21 = vpack.c.bf16 %v220_v15, %v219_v13  ;;  %v2423_v22 = vpack.c.bf16 %v206_v17, %v205_v16  ;;  %v275_v63 = vld [vmem:[%s4453_s1 + $0x710] sm:$0xff]  ;;  %v276_v1 = vld [vmem:[%s4453_s1 + $0x718] sm:$0xff]  ;;  %v293_v4 = vld [vmem:[%s4453_s1 + $0x7a0] sm:$0xff] }
  0x47   :  { %2434 = vmatpush3.bf16.msra.mxu1 %v2433_v23  ;;  %2404 = vmatprep.subr.bf16.mxu0 %v2403_v24  ;;  %v189_v23 = vld [vmem:[%s4453_s1 + $0x460] sm:$0xff]  ;;  %v190_v24 = vld [vmem:[%s4453_s1 + $0x468] sm:$0xff]  ;;  %v263_v16 = vld [vmem:[%s4453_s1 + $0x6b0] sm:$0xff] }
  0x48   :  { %2436 = vmatprep.subr.bf16.mxu1 %v2435_v28  ;;  %905 = vmatprep.mubr.f32.mxu0 %v26_v34  ;;  %v207_v28 = vld [vmem:[%s4453_s1 + $0x4f0] sm:$0xff]  ;;  %v2425_v32 = vpack.c.bf16 %v190_v24, %v189_v23  ;;  %v294_v5 = vld [vmem:[%s4453_s1 + $0x7a8] sm:$0xff]  ;;  %v245_v11 = vld [vmem:[%s4453_s1 + $0x620] sm:$0xff] }
  0x49   :  { %975 = vmatprep.mubr.f32.mxu1 %v28_v36  ;;  %v2427_v34 = vpack.c.bf16 %v208_v29, %v207_v28  ;;  %v192_v36 = vld [vmem:[%s4453_s1 + $0x478] sm:$0xff]  ;;  %v30_v6 = vld [vmem:[%s4454_s0 + $0x68] sm:$0xff]  ;;  %v277_v13 = vld [vmem:[%s4453_s1 + $0x720] sm:$0xff] }
  0x4a   :  { %2406 = vmatpush3.bf16.msra.mxu0 %v2405_v35  ;;  %v191_v35 = vld [vmem:[%s4453_s1 + $0x470] sm:$0xff]  ;;  %v246_v12 = vld [vmem:[%s4453_s1 + $0x628] sm:$0xff]  ;;  %v264_v17 = vld [vmem:[%s4453_s1 + $0x6b8] sm:$0xff] }
  0x4b   :  { %2438 = vmatpush3.bf16.msra.mxu1 %v2437_v37  ;;  %2408 = vmatprep.subr.bf16.mxu0 %v2407_v38  ;;  %v223_v37 = vld [vmem:[%s4453_s1 + $0x570] sm:$0xff]  ;;  %v2459_v38 = vpack.c.bf16 %v240_v31, %v239_v30  ;;  %v2429_v44 = vpack.c.bf16 %v192_v36, %v191_v35  ;;  %v278_v15 = vld [vmem:[%s4453_s1 + $0x728] sm:$0xff]  ;;  %v296_v19 = vld [vmem:[%s4453_s1 + $0x7b8] sm:$0xff] }
  0x4c   :  { %2440 = vmatprep.subr.bf16.mxu1 %v2439_v42  ;;  %v289_v42 = vld [vmem:[%s4453_s1 + $0x780] sm:$0xff]  ;;  %v2461_v45 = vpack.c.bf16 %v224_v39, %v223_v37  ;;  %v295_v18 = vld [vmem:[%s4453_s1 + $0x7b0] sm:$0xff]  ;;  %v248_v24 = vld [vmem:[%s4453_s1 + $0x638] sm:$0xff] }
  0x4d   :  { %v247_v23 = vld [vmem:[%s4453_s1 + $0x630] sm:$0xff]  ;;  %v280_v27 = vld [vmem:[%s4453_s1 + $0x738] sm:$0xff]  ;;  %v265_v28 = vld [vmem:[%s4453_s1 + $0x6c0] sm:$0xff] }
  0x4e   :  { %2410 = vmatpush3.bf16.msra.mxu0 %v2409_v48  ;;  %v242_v48 = vld [vmem:[%s4453_s1 + $0x608] sm:$0xff]  ;;  %v279_v25 = vld [vmem:[%s4453_s1 + $0x730] sm:$0xff]  ;;  %v297_v30 = vld [vmem:[%s4453_s1 + $0x7c0] sm:$0xff] }
  0x4f   :  { %2442 = vmatpush3.bf16.msra.mxu1 %v2441_v49  ;;  %2412 = vmatprep.subr.bf16.mxu0 %v2411_v50  ;;  %v273_v49 = vld [vmem:[%s4453_s1 + $0x700] sm:$0xff]  ;;  %v2495_v50 = vpack.c.bf16 %v290_v43, %v289_v42  ;;  %v2465_v57 = vpack.c.bf16 %v242_v48, %v241_v47  ;;  %v266_v29 = vld [vmem:[%s4453_s1 + $0x6c8] sm:$0xff]  ;;  %v267_v40 = vld [vmem:[%s4453_s1 + $0x6d0] sm:$0xff] }
  0x50   :  { %2444 = vmatprep.subr.bf16.mxu1 %v2443_v54  ;;  %v291_v54 = vld [vmem:[%s4453_s1 + $0x790] sm:$0xff]  ;;  %v2497_v59 = vpack.c.bf16 %v274_v51, %v273_v49  ;;  %v298_v31 = vld [vmem:[%s4453_s1 + $0x7c8] sm:$0xff]  ;;  %v249_v35 = vld [vmem:[%s4453_s1 + $0x640] sm:$0xff] }
  0x51   :  { %v2499_v0 = vpack.c.bf16 %v292_v55, %v291_v54  ;;  %v250_v36 = vld [vmem:[%s4453_s1 + $0x648] sm:$0xff]  ;;  %v281_v37 = vld [vmem:[%s4453_s1 + $0x740] sm:$0xff]  ;;  %v268_v41 = vld [vmem:[%s4453_s1 + $0x6d8] sm:$0xff] }
  0x52   :  { %2414 = vmatpush3.bf16.msra.mxu0 %v2413_v60  ;;  %v2467_v60 = vpack.c.bf16 %v260_v53, %v259_v52  ;;  %v282_v39 = vld [vmem:[%s4453_s1 + $0x748] sm:$0xff]  ;;  %v299_v42 = vld [vmem:[%s4453_s1 + $0x7d0] sm:$0xff]  ;;  %v300_v43 = vld [vmem:[%s4453_s1 + $0x7d8] sm:$0xff] }
  0x53   :  { %2446 = vmatpush3.bf16.msra.mxu1 %v2445_v61  ;;  %2416 = vmatprep.subr.bf16.mxu0 %v2415_v62  ;;  %v243_v61 = vld [vmem:[%s4453_s1 + $0x610] sm:$0xff]  ;;  %v244_v62 = vld [vmem:[%s4453_s1 + $0x618] sm:$0xff]  ;;  %v269_v52 = vld [vmem:[%s4453_s1 + $0x6e0] sm:$0xff] }
  0x54   :  { %2448 = vmatprep.subr.bf16.mxu1 %v2447_v2  ;;  %v261_v2 = vld [vmem:[%s4453_s1 + $0x6a0] sm:$0xff]  ;;  %v2469_v7 = vpack.c.bf16 %v244_v62, %v243_v61  ;;  %v251_v47 = vld [vmem:[%s4453_s1 + $0x650] sm:$0xff]  ;;  %v252_v48 = vld [vmem:[%s4453_s1 + $0x658] sm:$0xff] }
  0x55   :  { %v283_v49 = vld [vmem:[%s4453_s1 + $0x750] sm:$0xff]  ;;  %v284_v51 = vld [vmem:[%s4453_s1 + $0x758] sm:$0xff]  ;;  %v270_v53 = vld [vmem:[%s4453_s1 + $0x6e8] sm:$0xff] }
  0x56   :  { %2418 = vmatpush3.bf16.msra.mxu0 %v2417_v8  ;;  %v32_v8 = vld [vmem:[%s4454_s0 + $0x78] sm:$0xff]  ;;  %v301_v54 = vld [vmem:[%s4453_s1 + $0x7e0] sm:$0xff]  ;;  %v302_v55 = vld [vmem:[%s4453_s1 + $0x7e8] sm:$0xff] }
  0x57   :  { %2450 = vmatpush3.bf16.msra.mxu1 %v2449_v9  ;;  %2420 = vmatprep.subr.bf16.mxu0 %v2419_v10  ;;  %v2501_v9 = vpack.c.bf16 %v276_v1, %v275_v63  ;;  %v2471_v10 = vpack.c.bf16 %v262_v3, %v261_v2  ;;  %v285_v61 = vld [vmem:[%s4453_s1 + $0x760] sm:$0xff]  ;;  %v2519_v62 = vpack.c.bf16 %v302_v55, %v301_v54  ;;  %v286_v63 = vld [vmem:[%s4453_s1 + $0x768] sm:$0xff]  ;;  %v272_v1 = vld [vmem:[%s4453_s1 + $0x6f8] sm:$0xff] }
  0x58   :  { %2452 = vmatprep.subr.bf16.mxu1 %v2451_v14  ;;  %v2503_v14 = vpack.c.bf16 %v294_v5, %v293_v4  ;;  %v303_v2 = vld [vmem:[%s4453_s1 + $0x7f0] sm:$0xff]  ;;  %v304_v3 = vld [vmem:[%s4453_s1 + $0x7f8] sm:$0xff]  ;;  %v2521_v5 = vpack.c.bf16 %v286_v63, %v285_v61 }
  0x59   :  { %v359_v54 = vld [vmem:[%s4453_s1 + $0x9b0] sm:$0xff]  ;;  %v360_v55 = vld [vmem:[%s4453_s1 + $0x9b8] sm:$0xff] }
  0x5a   :  { %2422 = vmatpush3.bf16.msra.mxu0 %v2421_v20  ;;  %v2473_v20 = vpack.c.bf16 %v246_v12, %v245_v11  ;;  %v288_v11 = vld [vmem:[%s4453_s1 + $0x778] sm:$0xff]  ;;  %v321_v12 = vld [vmem:[%s4453_s1 + $0x880] sm:$0xff]  ;;  %v343_v61 = vld [vmem:[%s4453_s1 + $0x930] sm:$0xff] }
  0x5b   :  { %2454 = vmatpush3.bf16.msra.mxu1 %v2453_v21  ;;  %2424 = vmatprep.subr.bf16.mxu0 %v2423_v22  ;;  %v2505_v21 = vpack.c.bf16 %v278_v15, %v277_v13  ;;  %v2475_v22 = vpack.c.bf16 %v264_v17, %v263_v16  ;;  %v322_v13 = vld [vmem:[%s4453_s1 + $0x888] sm:$0xff]  ;;  %v344_v63 = vld [vmem:[%s4453_s1 + $0x938] sm:$0xff] }
  0x5c   :  { %2456 = vmatprep.subr.bf16.mxu1 %v2455_v26  ;;  %v2507_v26 = vpack.c.bf16 %v296_v19, %v295_v18  ;;  %v354_v15 = vld [vmem:[%s4453_s1 + $0x988] sm:$0xff]  ;;  %v2527_v18 = vpack.c.bf16 %v322_v13, %v321_v12  ;;  %v305_v19 = vld [vmem:[%s4453_s1 + $0x800] sm:$0xff]  ;;  %v331_v12 = vld [vmem:[%s4453_s1 + $0x8d0] sm:$0xff] }
  0x5d   :  { %v332_v13 = vld [vmem:[%s4453_s1 + $0x8d8] sm:$0xff] }
  0x5e   :  { %2426 = vmatpush3.bf16.msra.mxu0 %v2425_v32  ;;  %v2477_v32 = vpack.c.bf16 %v248_v24, %v247_v23  ;;  %v338_v23 = vld [vmem:[%s4453_s1 + $0x908] sm:$0xff]  ;;  %v323_v24 = vld [vmem:[%s4453_s1 + $0x890] sm:$0xff] }
  0x5f   :  { %2458 = vmatpush3.bf16.msra.mxu1 %v2457_v33  ;;  %2428 = vmatprep.subr.bf16.mxu0 %v2427_v34  ;;  %v2509_v33 = vpack.c.bf16 %v280_v27, %v279_v25  ;;  %v2479_v34 = vpack.c.bf16 %v266_v29, %v265_v28  ;;  %v324_v25 = vld [vmem:[%s4453_s1 + $0x898] sm:$0xff]  ;;  %v29_v28 = vld [vmem:[%s4454_s0 + $0x60] sm:$0xff] }
  0x60   :  { %2460 = vmatprep.subr.bf16.mxu1 %v2459_v38  ;;  %v2511_v38 = vpack.c.bf16 %v298_v31, %v297_v30  ;;  %v356_v27 = vld [vmem:[%s4453_s1 + $0x998] sm:$0xff]  ;;  %v31_v30 = vld [vmem:[%s4454_s0 + $0x70] sm:$0xff] }
  0x62   :  { %2430 = vmatpush3.bf16.msra.mxu0 %v2429_v44  ;;  %v2481_v44 = vpack.c.bf16 %v250_v36, %v249_v35  ;;  %v339_v35 = vld [vmem:[%s4453_s1 + $0x910] sm:$0xff] }
  0x63   :  { %2462 = vmatpush3.bf16.msra.mxu1 %v2461_v45  ;;  %2464 = vmatprep.subr.bf16.mxu0 %v2463_v46  ;;  %v2513_v45 = vpack.c.bf16 %v282_v39, %v281_v37  ;;  %v2483_v46 = vpack.c.bf16 %v268_v41, %v267_v40  ;;  %v340_v37 = vld [vmem:[%s4453_s1 + $0x918] sm:$0xff]  ;;  %v326_v39 = vld [vmem:[%s4453_s1 + $0x8a8] sm:$0xff]  ;;  %v357_v40 = vld [vmem:[%s4453_s1 + $0x9a0] sm:$0xff] }
  0x64   :  { %2496 = vmatprep.subr.bf16.mxu1 %v2495_v50  ;;  %v2515_v50 = vpack.c.bf16 %v300_v43, %v299_v42  ;;  %v358_v41 = vld [vmem:[%s4453_s1 + $0x9a8] sm:$0xff] }
  0x65   :  { %906 = vmatmul.mubr.f32.vlgmr.msra.gmra.mrb[4].mxu0 %v25_v56  ;;  %v2485_v56 = vpack.c.bf16 %v252_v48, %v251_v47  ;;  %v34_v42 = vld [vmem:[%s4454_s0 + $0x88] sm:$0xff]  ;;  %v309_v47 = vld [vmem:[%s4453_s1 + $0x820] sm:$0xff] }
  0x66   :  { %2466 = vmatpush3.bf16.msra.mxu0 %v2465_v57  ;;  %976 = vmatmul.mubr.f32.vlgmr.msra.gmra.mrb[4].mxu1 %v27_v58  ;;  %v2517_v57 = vpack.c.bf16 %v284_v51, %v283_v49  ;;  %v2487_v58 = vpack.c.bf16 %v270_v53, %v269_v52  ;;  %v310_v48 = vld [vmem:[%s4453_s1 + $0x828] sm:$0xff]  ;;  %v341_v49 = vld [vmem:[%s4453_s1 + $0x920] sm:$0xff]  ;;  %v327_v52 = vld [vmem:[%s4453_s1 + $0x8b0] sm:$0xff] }
  0x67   :  { %2498 = vmatpush3.bf16.msra.mxu1 %v2497_v59  ;;  %2468 = vmatprep.subr.bf16.mxu0 %v2467_v60  ;;  %v253_v59 = vld [vmem:[%s4453_s1 + $0x660] sm:$0xff]  ;;  %v254_v60 = vld [vmem:[%s4453_s1 + $0x668] sm:$0xff]  ;;  %v328_v53 = vld [vmem:[%s4453_s1 + $0x8b8] sm:$0xff] }
  0x68   :  { %2500 = vmatprep.subr.bf16.mxu1 %v2499_v0  ;;  %1045 = vmatprep.mubr.f32.mxu0 %v30_v6  ;;  %v271_v0 = vld [vmem:[%s4453_s1 + $0x6f0] sm:$0xff]  ;;  %v2489_v4 = vpack.c.bf16 %v254_v60, %v253_v59  ;;  %v342_v51 = vld [vmem:[%s4453_s1 + $0x928] sm:$0xff]  ;;  %v312_v60 = vld [vmem:[%s4453_s1 + $0x838] sm:$0xff] }
  0x69   :  { %1115 = vmatprep.mubr.f32.mxu1 %v32_v8  ;;  %v2491_v6 = vpack.c.bf16 %v272_v1, %v271_v0  ;;  %v256_v8 = vld [vmem:[%s4453_s1 + $0x678] sm:$0xff]  ;;  %v311_v59 = vld [vmem:[%s4453_s1 + $0x830] sm:$0xff]  ;;  %v329_v0 = vld [vmem:[%s4453_s1 + $0x8c0] sm:$0xff] }
  0x6a   :  { %2470 = vmatpush3.bf16.msra.mxu0 %v2469_v7  ;;  %v255_v7 = vld [vmem:[%s4453_s1 + $0x670] sm:$0xff]  ;;  %v330_v1 = vld [vmem:[%s4453_s1 + $0x8c8] sm:$0xff] }
  0x6b   :  { %2502 = vmatpush3.bf16.msra.mxu1 %v2501_v9  ;;  %2472 = vmatprep.subr.bf16.mxu0 %v2471_v10  ;;  %v287_v9 = vld [vmem:[%s4453_s1 + $0x770] sm:$0xff]  ;;  %v2523_v10 = vpack.c.bf16 %v304_v3, %v303_v2  ;;  %v2493_v16 = vpack.c.bf16 %v256_v8, %v255_v7  ;;  %v361_v2 = vld [vmem:[%s4453_s1 + $0x9c0] sm:$0xff]  ;;  %v362_v3 = vld [vmem:[%s4453_s1 + $0x9c8] sm:$0xff] }
  0x6c   :  { %2504 = vmatprep.subr.bf16.mxu1 %v2503_v14  ;;  %v353_v14 = vld [vmem:[%s4453_s1 + $0x980] sm:$0xff]  ;;  %v2525_v17 = vpack.c.bf16 %v288_v11, %v287_v9  ;;  %v314_v8 = vld [vmem:[%s4453_s1 + $0x848] sm:$0xff] }
  0x6d   :  { %v313_v7 = vld [vmem:[%s4453_s1 + $0x840] sm:$0xff]  ;;  %v346_v11 = vld [vmem:[%s4453_s1 + $0x948] sm:$0xff] }
  0x6e   :  { %2474 = vmatpush3.bf16.msra.mxu0 %v2473_v20  ;;  %v306_v20 = vld [vmem:[%s4453_s1 + $0x808] sm:$0xff]  ;;  %v345_v9 = vld [vmem:[%s4453_s1 + $0x940] sm:$0xff] }
  0x6f   :  { %2506 = vmatpush3.bf16.msra.mxu1 %v2505_v21  ;;  %2476 = vmatprep.subr.bf16.mxu0 %v2475_v22  ;;  %v337_v21 = vld [vmem:[%s4453_s1 + $0x900] sm:$0xff]  ;;  %v2559_v22 = vpack.c.bf16 %v354_v15, %v353_v14  ;;  %v2529_v29 = vpack.c.bf16 %v306_v20, %v305_v19  ;;  %v363_v14 = vld [vmem:[%s4453_s1 + $0x9d0] sm:$0xff]  ;;  %v364_v15 = vld [vmem:[%s4453_s1 + $0x9d8] sm:$0xff] }
  0x70   :  { %2508 = vmatprep.subr.bf16.mxu1 %v2507_v26  ;;  %v355_v26 = vld [vmem:[%s4453_s1 + $0x990] sm:$0xff]  ;;  %v2561_v31 = vpack.c.bf16 %v338_v23, %v337_v21  ;;  %v316_v20 = vld [vmem:[%s4453_s1 + $0x858] sm:$0xff] }
  0x71   :  { %v2563_v36 = vpack.c.bf16 %v356_v27, %v355_v26  ;;  %v315_v19 = vld [vmem:[%s4453_s1 + $0x850] sm:$0xff]  ;;  %v348_v23 = vld [vmem:[%s4453_s1 + $0x958] sm:$0xff]  ;;  %v365_v26 = vld [vmem:[%s4453_s1 + $0x9e0] sm:$0xff] }
  0x72   :  { %2478 = vmatpush3.bf16.msra.mxu0 %v2477_v32  ;;  %v2531_v32 = vpack.c.bf16 %v324_v25, %v323_v24  ;;  %v347_v21 = vld [vmem:[%s4453_s1 + $0x950] sm:$0xff]  ;;  %v333_v24 = vld [vmem:[%s4453_s1 + $0x8e0] sm:$0xff]  ;;  %v334_v25 = vld [vmem:[%s4453_s1 + $0x8e8] sm:$0xff] }
  0x73   :  { %2510 = vmatpush3.bf16.msra.mxu1 %v2509_v33  ;;  %2480 = vmatprep.subr.bf16.mxu0 %v2479_v34  ;;  %v307_v33 = vld [vmem:[%s4453_s1 + $0x810] sm:$0xff]  ;;  %v308_v34 = vld [vmem:[%s4453_s1 + $0x818] sm:$0xff]  ;;  %v366_v27 = vld [vmem:[%s4453_s1 + $0x9e8] sm:$0xff] }
  0x74   :  { %2512 = vmatprep.subr.bf16.mxu1 %v2511_v38  ;;  %v325_v38 = vld [vmem:[%s4453_s1 + $0x8a0] sm:$0xff]  ;;  %v2533_v43 = vpack.c.bf16 %v308_v34, %v307_v33  ;;  %v2583_v34 = vpack.c.bf16 %v366_v27, %v365_v26  ;;  %v423_v26 = vld [vmem:[%s4453_s1 + $0xbb0] sm:$0xff]  ;;  %v424_v27 = vld [vmem:[%s4453_s1 + $0xbb8] sm:$0xff] }
  0x75   :  { %v349_v33 = vld [vmem:[%s4453_s1 + $0x960] sm:$0xff] }
  0x76   :  { %2482 = vmatpush3.bf16.msra.mxu0 %v2481_v44  ;;  %v36_v44 = vld [vmem:[%s4454_s0 + $0x98] sm:$0xff] }
  0x77   :  { %2514 = vmatpush3.bf16.msra.mxu1 %v2513_v45  ;;  %2484 = vmatprep.subr.bf16.mxu0 %v2483_v46  ;;  %v2565_v45 = vpack.c.bf16 %v340_v37, %v339_v35  ;;  %v2535_v46 = vpack.c.bf16 %v326_v39, %v325_v38  ;;  %v350_v35 = vld [vmem:[%s4453_s1 + $0x968] sm:$0xff]  ;;  %v336_v37 = vld [vmem:[%s4453_s1 + $0x8f8] sm:$0xff]  ;;  %v367_v38 = vld [vmem:[%s4453_s1 + $0x9f0] sm:$0xff] }
  0x78   :  { %2516 = vmatprep.subr.bf16.mxu1 %v2515_v50  ;;  %v2567_v50 = vpack.c.bf16 %v358_v41, %v357_v40  ;;  %v368_v39 = vld [vmem:[%s4453_s1 + $0x9f8] sm:$0xff]  ;;  %v2585_v41 = vpack.c.bf16 %v350_v35, %v349_v33  ;;  %v407_v33 = vld [vmem:[%s4453_s1 + $0xb30] sm:$0xff] }
  0x79   :  { %v408_v35 = vld [vmem:[%s4453_s1 + $0xb38] sm:$0xff] }
  0x7a   :  { %2486 = vmatpush3.bf16.msra.mxu0 %v2485_v56  ;;  %v2537_v56 = vpack.c.bf16 %v310_v48, %v309_v47  ;;  %v352_v47 = vld [vmem:[%s4453_s1 + $0x978] sm:$0xff]  ;;  %v385_v48 = vld [vmem:[%s4453_s1 + $0xa80] sm:$0xff] }
  0x7b   :  { %2518 = vmatpush3.bf16.msra.mxu1 %v2517_v57  ;;  %2488 = vmatprep.subr.bf16.mxu0 %v2487_v58  ;;  %v2569_v57 = vpack.c.bf16 %v342_v51, %v341_v49  ;;  %v2539_v58 = vpack.c.bf16 %v328_v53, %v327_v52  ;;  %v386_v49 = vld [vmem:[%s4453_s1 + $0xa88] sm:$0xff] }
  0x7c   :  { %2520 = vmatprep.subr.bf16.mxu1 %v2519_v62  ;;  %v2571_v62 = vpack.c.bf16 %v360_v55, %v359_v54  ;;  %v418_v51 = vld [vmem:[%s4453_s1 + $0xb88] sm:$0xff]  ;;  %v2591_v54 = vpack.c.bf16 %v386_v49, %v385_v48  ;;  %v369_v55 = vld [vmem:[%s4453_s1 + $0xa00] sm:$0xff]  ;;  %v395_v48 = vld [vmem:[%s4453_s1 + $0xad0] sm:$0xff] }
  0x7d   :  { %v396_v49 = vld [vmem:[%s4453_s1 + $0xad8] sm:$0xff] }
  0x7e   :  { %2490 = vmatpush3.bf16.msra.mxu0 %v2489_v4  ;;  %v2541_v4 = vpack.c.bf16 %v312_v60, %v311_v59  ;;  %v402_v59 = vld [vmem:[%s4453_s1 + $0xb08] sm:$0xff]  ;;  %v387_v60 = vld [vmem:[%s4453_s1 + $0xa90] sm:$0xff] }
  0x7f   :  { %2522 = vmatpush3.bf16.msra.mxu1 %v2521_v5  ;;  %2492 = vmatprep.subr.bf16.mxu0 %v2491_v6  ;;  %v2573_v5 = vpack.c.bf16 %v344_v63, %v343_v61  ;;  %v2543_v6 = vpack.c.bf16 %v330_v1, %v329_v0  ;;  %v388_v61 = vld [vmem:[%s4453_s1 + $0xa98] sm:$0xff]  ;;  %v33_v0 = vld [vmem:[%s4454_s0 + $0x80] sm:$0xff] }
  0x80   :  { %2524 = vmatprep.subr.bf16.mxu1 %v2523_v10  ;;  %v2575_v10 = vpack.c.bf16 %v362_v3, %v361_v2  ;;  %v420_v63 = vld [vmem:[%s4453_s1 + $0xb98] sm:$0xff]  ;;  %v35_v2 = vld [vmem:[%s4454_s0 + $0x90] sm:$0xff] }
  0x82   :  { %2494 = vmatpush3.bf16.msra.mxu0 %v2493_v16  ;;  %v2545_v16 = vpack.c.bf16 %v314_v8, %v313_v7  ;;  %v403_v7 = vld [vmem:[%s4453_s1 + $0xb10] sm:$0xff] }
  0x83   :  { %2526 = vmatpush3.bf16.msra.mxu1 %v2525_v17  ;;  %2528 = vmatprep.subr.bf16.mxu0 %v2527_v18  ;;  %v2577_v17 = vpack.c.bf16 %v346_v11, %v345_v9  ;;  %v2547_v18 = vpack.c.bf16 %v332_v13, %v331_v12  ;;  %v404_v9 = vld [vmem:[%s4453_s1 + $0xb18] sm:$0xff]  ;;  %v390_v11 = vld [vmem:[%s4453_s1 + $0xaa8] sm:$0xff]  ;;  %v421_v12 = vld [vmem:[%s4453_s1 + $0xba0] sm:$0xff] }
  0x84   :  { %2560 = vmatprep.subr.bf16.mxu1 %v2559_v22  ;;  %v2579_v22 = vpack.c.bf16 %v364_v15, %v363_v14  ;;  %v422_v13 = vld [vmem:[%s4453_s1 + $0xba8] sm:$0xff] }
  0x85   :  { %1046 = vmatmul.mubr.f32.vlgmr.msra.gmra.mrb[6].mxu0 %v29_v28  ;;  %v2549_v28 = vpack.c.bf16 %v316_v20, %v315_v19  ;;  %v38_v14 = vld [vmem:[%s4454_s0 + $0xa8] sm:$0xff]  ;;  %v373_v19 = vld [vmem:[%s4453_s1 + $0xa20] sm:$0xff] }
  0x86   :  { %2530 = vmatpush3.bf16.msra.mxu0 %v2529_v29  ;;  %1116 = vmatmul.mubr.f32.vlgmr.msra.gmra.mrb[6].mxu1 %v31_v30  ;;  %v2581_v29 = vpack.c.bf16 %v348_v23, %v347_v21  ;;  %v2551_v30 = vpack.c.bf16 %v334_v25, %v333_v24  ;;  %v374_v20 = vld [vmem:[%s4453_s1 + $0xa28] sm:$0xff]  ;;  %v405_v21 = vld [vmem:[%s4453_s1 + $0xb20] sm:$0xff]  ;;  %v391_v24 = vld [vmem:[%s4453_s1 + $0xab0] sm:$0xff] }
  0x87   :  { %2562 = vmatpush3.bf16.msra.mxu1 %v2561_v31  ;;  %2532 = vmatprep.subr.bf16.mxu0 %v2531_v32  ;;  %v317_v31 = vld [vmem:[%s4453_s1 + $0x860] sm:$0xff]  ;;  %v318_v32 = vld [vmem:[%s4453_s1 + $0x868] sm:$0xff]  ;;  %v392_v25 = vld [vmem:[%s4453_s1 + $0xab8] sm:$0xff] }
  0x88   :  { %2564 = vmatprep.subr.bf16.mxu1 %v2563_v36  ;;  %1185 = vmatprep.mubr.f32.mxu0 %v34_v42  ;;  %v335_v36 = vld [vmem:[%s4453_s1 + $0x8f0] sm:$0xff]  ;;  %v2553_v40 = vpack.c.bf16 %v318_v32, %v317_v31  ;;  %v406_v23 = vld [vmem:[%s4453_s1 + $0xb28] sm:$0xff]  ;;  %v376_v32 = vld [vmem:[%s4453_s1 + $0xa38] sm:$0xff] }
  0x89   :  { %1255 = vmatprep.mubr.f32.mxu1 %v36_v44  ;;  %v2555_v42 = vpack.c.bf16 %v336_v37, %v335_v36  ;;  %v320_v44 = vld [vmem:[%s4453_s1 + $0x878] sm:$0xff]  ;;  %v375_v31 = vld [vmem:[%s4453_s1 + $0xa30] sm:$0xff]  ;;  %v393_v36 = vld [vmem:[%s4453_s1 + $0xac0] sm:$0xff] }
  0x8a   :  { %2534 = vmatpush3.bf16.msra.mxu0 %v2533_v43  ;;  %v319_v43 = vld [vmem:[%s4453_s1 + $0x870] sm:$0xff]  ;;  %v394_v37 = vld [vmem:[%s4453_s1 + $0xac8] sm:$0xff] }
  0x8b   :  { %2566 = vmatpush3.bf16.msra.mxu1 %v2565_v45  ;;  %2536 = vmatprep.subr.bf16.mxu0 %v2535_v46  ;;  %v351_v45 = vld [vmem:[%s4453_s1 + $0x970] sm:$0xff]  ;;  %v2587_v46 = vpack.c.bf16 %v368_v39, %v367_v38  ;;  %v2557_v52 = vpack.c.bf16 %v320_v44, %v319_v43  ;;  %v425_v38 = vld [vmem:[%s4453_s1 + $0xbc0] sm:$0xff]  ;;  %v426_v39 = vld [vmem:[%s4453_s1 + $0xbc8] sm:$0xff] }
  0x8c   :  { %2568 = vmatprep.subr.bf16.mxu1 %v2567_v50  ;;  %v417_v50 = vld [vmem:[%s4453_s1 + $0xb80] sm:$0xff]  ;;  %v2589_v53 = vpack.c.bf16 %v352_v47, %v351_v45  ;;  %v378_v44 = vld [vmem:[%s4453_s1 + $0xa48] sm:$0xff] }
  0x8d   :  { %v377_v43 = vld [vmem:[%s4453_s1 + $0xa40] sm:$0xff]  ;;  %v410_v47 = vld [vmem:[%s4453_s1 + $0xb48] sm:$0xff] }
  0x8e   :  { %2538 = vmatpush3.bf16.msra.mxu0 %v2537_v56  ;;  %v370_v56 = vld [vmem:[%s4453_s1 + $0xa08] sm:$0xff]  ;;  %v409_v45 = vld [vmem:[%s4453_s1 + $0xb40] sm:$0xff] }
  0x8f   :  { %2570 = vmatpush3.bf16.msra.mxu1 %v2569_v57  ;;  %2540 = vmatprep.subr.bf16.mxu0 %v2539_v58  ;;  %v401_v57 = vld [vmem:[%s4453_s1 + $0xb00] sm:$0xff]  ;;  %v2623_v58 = vpack.c.bf16 %v418_v51, %v417_v50  ;;  %v2593_v1 = vpack.c.bf16 %v370_v56, %v369_v55  ;;  %v427_v50 = vld [vmem:[%s4453_s1 + $0xbd0] sm:$0xff]  ;;  %v428_v51 = vld [vmem:[%s4453_s1 + $0xbd8] sm:$0xff] }
  0x90   :  { %2572 = vmatprep.subr.bf16.mxu1 %v2571_v62  ;;  %v419_v62 = vld [vmem:[%s4453_s1 + $0xb90] sm:$0xff]  ;;  %v2625_v3 = vpack.c.bf16 %v402_v59, %v401_v57  ;;  %v380_v56 = vld [vmem:[%s4453_s1 + $0xa58] sm:$0xff] }
  0x91   :  { %v2627_v8 = vpack.c.bf16 %v420_v63, %v419_v62  ;;  %v379_v55 = vld [vmem:[%s4453_s1 + $0xa50] sm:$0xff]  ;;  %v412_v59 = vld [vmem:[%s4453_s1 + $0xb58] sm:$0xff]  ;;  %v429_v62 = vld [vmem:[%s4453_s1 + $0xbe0] sm:$0xff] }
  0x92   :  { %2542 = vmatpush3.bf16.msra.mxu0 %v2541_v4  ;;  %v2595_v4 = vpack.c.bf16 %v388_v61, %v387_v60  ;;  %v411_v57 = vld [vmem:[%s4453_s1 + $0xb50] sm:$0xff]  ;;  %v397_v60 = vld [vmem:[%s4453_s1 + $0xae0] sm:$0xff]  ;;  %v398_v61 = vld [vmem:[%s4453_s1 + $0xae8] sm:$0xff] }
  0x93   :  { %2574 = vmatpush3.bf16.msra.mxu1 %v2573_v5  ;;  %2544 = vmatprep.subr.bf16.mxu0 %v2543_v6  ;;  %v371_v5 = vld [vmem:[%s4453_s1 + $0xa10] sm:$0xff]  ;;  %v372_v6 = vld [vmem:[%s4453_s1 + $0xa18] sm:$0xff]  ;;  %v430_v63 = vld [vmem:[%s4453_s1 + $0xbe8] sm:$0xff] }
  0x94   :  { %2576 = vmatprep.subr.bf16.mxu1 %v2575_v10  ;;  %v389_v10 = vld [vmem:[%s4453_s1 + $0xaa0] sm:$0xff]  ;;  %v2597_v15 = vpack.c.bf16 %v372_v6, %v371_v5  ;;  %v2647_v6 = vpack.c.bf16 %v430_v63, %v429_v62  ;;  %v487_v62 = vld [vmem:[%s4453_s1 + $0xdb0] sm:$0xff]  ;;  %v488_v63 = vld [vmem:[%s4453_s1 + $0xdb8] sm:$0xff] }
  0x95   :  { %v413_v5 = vld [vmem:[%s4453_s1 + $0xb60] sm:$0xff] }
  0x96   :  { %2546 = vmatpush3.bf16.msra.mxu0 %v2545_v16  ;;  %v40_v16 = vld [vmem:[%s4454_s0 + $0xb8] sm:$0xff] }
  0x97   :  { %2578 = vmatpush3.bf16.msra.mxu1 %v2577_v17  ;;  %2548 = vmatprep.subr.bf16.mxu0 %v2547_v18  ;;  %v2629_v17 = vpack.c.bf16 %v404_v9, %v403_v7  ;;  %v2599_v18 = vpack.c.bf16 %v390_v11, %v389_v10  ;;  %v414_v7 = vld [vmem:[%s4453_s1 + $0xb68] sm:$0xff]  ;;  %v400_v9 = vld [vmem:[%s4453_s1 + $0xaf8] sm:$0xff]  ;;  %v431_v10 = vld [vmem:[%s4453_s1 + $0xbf0] sm:$0xff] }
  0x98   :  { %2580 = vmatprep.subr.bf16.mxu1 %v2579_v22  ;;  %v2631_v22 = vpack.c.bf16 %v422_v13, %v421_v12  ;;  %v432_v11 = vld [vmem:[%s4453_s1 + $0xbf8] sm:$0xff]  ;;  %v2649_v13 = vpack.c.bf16 %v414_v7, %v413_v5  ;;  %v471_v5 = vld [vmem:[%s4453_s1 + $0xd30] sm:$0xff] }
  0x99   :  { %v472_v7 = vld [vmem:[%s4453_s1 + $0xd38] sm:$0xff] }
  0x9a   :  { %2550 = vmatpush3.bf16.msra.mxu0 %v2549_v28  ;;  %v2601_v28 = vpack.c.bf16 %v374_v20, %v373_v19  ;;  %v416_v19 = vld [vmem:[%s4453_s1 + $0xb78] sm:$0xff]  ;;  %v449_v20 = vld [vmem:[%s4453_s1 + $0xc80] sm:$0xff] }
  0x9b   :  { %2582 = vmatpush3.bf16.msra.mxu1 %v2581_v29  ;;  %2552 = vmatprep.subr.bf16.mxu0 %v2551_v30  ;;  %v2633_v29 = vpack.c.bf16 %v406_v23, %v405_v21  ;;  %v2603_v30 = vpack.c.bf16 %v392_v25, %v391_v24  ;;  %v450_v21 = vld [vmem:[%s4453_s1 + $0xc88] sm:$0xff] }
  0x9c   :  { %2584 = vmatprep.subr.bf16.mxu1 %v2583_v34  ;;  %v2635_v34 = vpack.c.bf16 %v424_v27, %v423_v26  ;;  %v482_v23 = vld [vmem:[%s4453_s1 + $0xd88] sm:$0xff]  ;;  %v2655_v26 = vpack.c.bf16 %v450_v21, %v449_v20  ;;  %v433_v27 = vld [vmem:[%s4453_s1 + $0xc00] sm:$0xff]  ;;  %v459_v20 = vld [vmem:[%s4453_s1 + $0xcd0] sm:$0xff] }
  0x9d   :  { %v460_v21 = vld [vmem:[%s4453_s1 + $0xcd8] sm:$0xff] }
  0x9e   :  { %2554 = vmatpush3.bf16.msra.mxu0 %v2553_v40  ;;  %v2605_v40 = vpack.c.bf16 %v376_v32, %v375_v31  ;;  %v466_v31 = vld [vmem:[%s4453_s1 + $0xd08] sm:$0xff]  ;;  %v451_v32 = vld [vmem:[%s4453_s1 + $0xc90] sm:$0xff] }
  0x9f   :  { %2586 = vmatpush3.bf16.msra.mxu1 %v2585_v41  ;;  %2556 = vmatprep.subr.bf16.mxu0 %v2555_v42  ;;  %v2637_v41 = vpack.c.bf16 %v408_v35, %v407_v33  ;;  %v2607_v42 = vpack.c.bf16 %v394_v37, %v393_v36  ;;  %v452_v33 = vld [vmem:[%s4453_s1 + $0xc98] sm:$0xff]  ;;  %v37_v36 = vld [vmem:[%s4454_s0 + $0xa0] sm:$0xff] }
  0xa0   :  { %2588 = vmatprep.subr.bf16.mxu1 %v2587_v46  ;;  %v2639_v46 = vpack.c.bf16 %v426_v39, %v425_v38  ;;  %v484_v35 = vld [vmem:[%s4453_s1 + $0xd98] sm:$0xff]  ;;  %v39_v38 = vld [vmem:[%s4454_s0 + $0xb0] sm:$0xff] }
  0xa2   :  { %2558 = vmatpush3.bf16.msra.mxu0 %v2557_v52  ;;  %v2609_v52 = vpack.c.bf16 %v378_v44, %v377_v43  ;;  %v467_v43 = vld [vmem:[%s4453_s1 + $0xd10] sm:$0xff] }
  0xa3   :  { %2590 = vmatpush3.bf16.msra.mxu1 %v2589_v53  ;;  %2592 = vmatprep.subr.bf16.mxu0 %v2591_v54  ;;  %v2641_v53 = vpack.c.bf16 %v410_v47, %v409_v45  ;;  %v2611_v54 = vpack.c.bf16 %v396_v49, %v395_v48  ;;  %v468_v45 = vld [vmem:[%s4453_s1 + $0xd18] sm:$0xff]  ;;  %v454_v47 = vld [vmem:[%s4453_s1 + $0xca8] sm:$0xff]  ;;  %v485_v48 = vld [vmem:[%s4453_s1 + $0xda0] sm:$0xff] }
  0xa4   :  { %2624 = vmatprep.subr.bf16.mxu1 %v2623_v58  ;;  %v2643_v58 = vpack.c.bf16 %v428_v51, %v427_v50  ;;  %v486_v49 = vld [vmem:[%s4453_s1 + $0xda8] sm:$0xff] }
  0xa5   :  { %1186 = vmatmul.mubr.f32.vlgmr.msra.gmra.mrb[8].mxu0 %v33_v0  ;;  %v2613_v0 = vpack.c.bf16 %v380_v56, %v379_v55  ;;  %v42_v50 = vld [vmem:[%s4454_s0 + $0xc8] sm:$0xff]  ;;  %v437_v55 = vld [vmem:[%s4453_s1 + $0xc20] sm:$0xff] }
  0xa6   :  { %2594 = vmatpush3.bf16.msra.mxu0 %v2593_v1  ;;  %1256 = vmatmul.mubr.f32.vlgmr.msra.gmra.mrb[8].mxu1 %v35_v2  ;;  %v2645_v1 = vpack.c.bf16 %v412_v59, %v411_v57  ;;  %v2615_v2 = vpack.c.bf16 %v398_v61, %v397_v60  ;;  %v438_v56 = vld [vmem:[%s4453_s1 + $0xc28] sm:$0xff]  ;;  %v469_v57 = vld [vmem:[%s4453_s1 + $0xd20] sm:$0xff]  ;;  %v455_v60 = vld [vmem:[%s4453_s1 + $0xcb0] sm:$0xff] }
  0xa7   :  { %2626 = vmatpush3.bf16.msra.mxu1 %v2625_v3  ;;  %2596 = vmatprep.subr.bf16.mxu0 %v2595_v4  ;;  %v381_v3 = vld [vmem:[%s4453_s1 + $0xa60] sm:$0xff]  ;;  %v382_v4 = vld [vmem:[%s4453_s1 + $0xa68] sm:$0xff]  ;;  %v456_v61 = vld [vmem:[%s4453_s1 + $0xcb8] sm:$0xff] }
  0xa8   :  { %2628 = vmatprep.subr.bf16.mxu1 %v2627_v8  ;;  %1325 = vmatprep.mubr.f32.mxu0 %v38_v14  ;;  %v399_v8 = vld [vmem:[%s4453_s1 + $0xaf0] sm:$0xff]  ;;  %v2617_v12 = vpack.c.bf16 %v382_v4, %v381_v3  ;;  %v470_v59 = vld [vmem:[%s4453_s1 + $0xd28] sm:$0xff]  ;;  %v440_v4 = vld [vmem:[%s4453_s1 + $0xc38] sm:$0xff] }
  0xa9   :  { %1395 = vmatprep.mubr.f32.mxu1 %v40_v16  ;;  %v2619_v14 = vpack.c.bf16 %v400_v9, %v399_v8  ;;  %v384_v16 = vld [vmem:[%s4453_s1 + $0xa78] sm:$0xff]  ;;  %v439_v3 = vld [vmem:[%s4453_s1 + $0xc30] sm:$0xff]  ;;  %v457_v8 = vld [vmem:[%s4453_s1 + $0xcc0] sm:$0xff] }
  0xaa   :  { %2598 = vmatpush3.bf16.msra.mxu0 %v2597_v15  ;;  %v383_v15 = vld [vmem:[%s4453_s1 + $0xa70] sm:$0xff]  ;;  %v458_v9 = vld [vmem:[%s4453_s1 + $0xcc8] sm:$0xff] }
  0xab   :  { %2630 = vmatpush3.bf16.msra.mxu1 %v2629_v17  ;;  %2600 = vmatprep.subr.bf16.mxu0 %v2599_v18  ;;  %v415_v17 = vld [vmem:[%s4453_s1 + $0xb70] sm:$0xff]  ;;  %v2651_v18 = vpack.c.bf16 %v432_v11, %v431_v10  ;;  %v2621_v24 = vpack.c.bf16 %v384_v16, %v383_v15  ;;  %v489_v10 = vld [vmem:[%s4453_s1 + $0xdc0] sm:$0xff]  ;;  %v490_v11 = vld [vmem:[%s4453_s1 + $0xdc8] sm:$0xff] }
  0xac   :  { %2632 = vmatprep.subr.bf16.mxu1 %v2631_v22  ;;  %v481_v22 = vld [vmem:[%s4453_s1 + $0xd80] sm:$0xff]  ;;  %v2653_v25 = vpack.c.bf16 %v416_v19, %v415_v17  ;;  %v442_v16 = vld [vmem:[%s4453_s1 + $0xc48] sm:$0xff] }
  0xad   :  { %v441_v15 = vld [vmem:[%s4453_s1 + $0xc40] sm:$0xff]  ;;  %v474_v19 = vld [vmem:[%s4453_s1 + $0xd48] sm:$0xff] }
  0xae   :  { %2602 = vmatpush3.bf16.msra.mxu0 %v2601_v28  ;;  %v434_v28 = vld [vmem:[%s4453_s1 + $0xc08] sm:$0xff]  ;;  %v473_v17 = vld [vmem:[%s4453_s1 + $0xd40] sm:$0xff] }
  0xaf   :  { %2634 = vmatpush3.bf16.msra.mxu1 %v2633_v29  ;;  %2604 = vmatprep.subr.bf16.mxu0 %v2603_v30  ;;  %v465_v29 = vld [vmem:[%s4453_s1 + $0xd00] sm:$0xff]  ;;  %v2687_v30 = vpack.c.bf16 %v482_v23, %v481_v22  ;;  %v2657_v37 = vpack.c.bf16 %v434_v28, %v433_v27  ;;  %v491_v22 = vld [vmem:[%s4453_s1 + $0xdd0] sm:$0xff]  ;;  %v492_v23 = vld [vmem:[%s4453_s1 + $0xdd8] sm:$0xff] }
  0xb0   :  { %2636 = vmatprep.subr.bf16.mxu1 %v2635_v34  ;;  %v483_v34 = vld [vmem:[%s4453_s1 + $0xd90] sm:$0xff]  ;;  %v2689_v39 = vpack.c.bf16 %v466_v31, %v465_v29  ;;  %v444_v28 = vld [vmem:[%s4453_s1 + $0xc58] sm:$0xff] }
  0xb1   :  { %v2691_v44 = vpack.c.bf16 %v484_v35, %v483_v34  ;;  %v443_v27 = vld [vmem:[%s4453_s1 + $0xc50] sm:$0xff]  ;;  %v476_v31 = vld [vmem:[%s4453_s1 + $0xd58] sm:$0xff]  ;;  %v493_v34 = vld [vmem:[%s4453_s1 + $0xde0] sm:$0xff] }
  0xb2   :  { %2606 = vmatpush3.bf16.msra.mxu0 %v2605_v40  ;;  %v2659_v40 = vpack.c.bf16 %v452_v33, %v451_v32  ;;  %v475_v29 = vld [vmem:[%s4453_s1 + $0xd50] sm:$0xff]  ;;  %v461_v32 = vld [vmem:[%s4453_s1 + $0xce0] sm:$0xff]  ;;  %v462_v33 = vld [vmem:[%s4453_s1 + $0xce8] sm:$0xff] }
  0xb3   :  { %2638 = vmatpush3.bf16.msra.mxu1 %v2637_v41  ;;  %2608 = vmatprep.subr.bf16.mxu0 %v2607_v42  ;;  %v435_v41 = vld [vmem:[%s4453_s1 + $0xc10] sm:$0xff]  ;;  %v436_v42 = vld [vmem:[%s4453_s1 + $0xc18] sm:$0xff]  ;;  %v494_v35 = vld [vmem:[%s4453_s1 + $0xde8] sm:$0xff] }
  0xb4   :  { %2640 = vmatprep.subr.bf16.mxu1 %v2639_v46  ;;  %v453_v46 = vld [vmem:[%s4453_s1 + $0xca0] sm:$0xff]  ;;  %v2661_v51 = vpack.c.bf16 %v436_v42, %v435_v41  ;;  %v2711_v42 = vpack.c.bf16 %v494_v35, %v493_v34  ;;  %v551_v34 = vld [vmem:[%s4453_s1 + $0xfb0] sm:$0xff]  ;;  %v552_v35 = vld [vmem:[%s4453_s1 + $0xfb8] sm:$0xff] }
  0xb5   :  { %v477_v41 = vld [vmem:[%s4453_s1 + $0xd60] sm:$0xff] }
  0xb6   :  { %2610 = vmatpush3.bf16.msra.mxu0 %v2609_v52  ;;  %v44_v52 = vld [vmem:[%s4454_s0 + $0xd8] sm:$0xff] }
  0xb7   :  { %2642 = vmatpush3.bf16.msra.mxu1 %v2641_v53  ;;  %2612 = vmatprep.subr.bf16.mxu0 %v2611_v54  ;;  %v2693_v53 = vpack.c.bf16 %v468_v45, %v467_v43  ;;  %v2663_v54 = vpack.c.bf16 %v454_v47, %v453_v46  ;;  %v478_v43 = vld [vmem:[%s4453_s1 + $0xd68] sm:$0xff]  ;;  %v464_v45 = vld [vmem:[%s4453_s1 + $0xcf8] sm:$0xff]  ;;  %v495_v46 = vld [vmem:[%s4453_s1 + $0xdf0] sm:$0xff] }
  0xb8   :  { %2644 = vmatprep.subr.bf16.mxu1 %v2643_v58  ;;  %v2695_v58 = vpack.c.bf16 %v486_v49, %v485_v48  ;;  %v496_v47 = vld [vmem:[%s4453_s1 + $0xdf8] sm:$0xff]  ;;  %v2713_v49 = vpack.c.bf16 %v478_v43, %v477_v41  ;;  %v535_v41 = vld [vmem:[%s4453_s1 + $0xf30] sm:$0xff] }
  0xb9   :  { %v536_v43 = vld [vmem:[%s4453_s1 + $0xf38] sm:$0xff] }
  0xba   :  { %2614 = vmatpush3.bf16.msra.mxu0 %v2613_v0  ;;  %v2665_v0 = vpack.c.bf16 %v438_v56, %v437_v55  ;;  %v480_v55 = vld [vmem:[%s4453_s1 + $0xd78] sm:$0xff]  ;;  %v513_v56 = vld [vmem:[%s4453_s1 + $0xe80] sm:$0xff] }
  0xbb   :  { %2646 = vmatpush3.bf16.msra.mxu1 %v2645_v1  ;;  %2616 = vmatprep.subr.bf16.mxu0 %v2615_v2  ;;  %v2697_v1 = vpack.c.bf16 %v470_v59, %v469_v57  ;;  %v2667_v2 = vpack.c.bf16 %v456_v61, %v455_v60  ;;  %v514_v57 = vld [vmem:[%s4453_s1 + $0xe88] sm:$0xff] }
  0xbc   :  { %2648 = vmatprep.subr.bf16.mxu1 %v2647_v6  ;;  %v2699_v6 = vpack.c.bf16 %v488_v63, %v487_v62  ;;  %v546_v59 = vld [vmem:[%s4453_s1 + $0xf88] sm:$0xff]  ;;  %v2719_v62 = vpack.c.bf16 %v514_v57, %v513_v56  ;;  %v497_v63 = vld [vmem:[%s4453_s1 + $0xe00] sm:$0xff]  ;;  %v523_v56 = vld [vmem:[%s4453_s1 + $0xed0] sm:$0xff] }
  0xbd   :  { %v524_v57 = vld [vmem:[%s4453_s1 + $0xed8] sm:$0xff] }
  0xbe   :  { %2618 = vmatpush3.bf16.msra.mxu0 %v2617_v12  ;;  %v2669_v12 = vpack.c.bf16 %v440_v4, %v439_v3  ;;  %v530_v3 = vld [vmem:[%s4453_s1 + $0xf08] sm:$0xff]  ;;  %v515_v4 = vld [vmem:[%s4453_s1 + $0xe90] sm:$0xff] }
  0xbf   :  { %2650 = vmatpush3.bf16.msra.mxu1 %v2649_v13  ;;  %2620 = vmatprep.subr.bf16.mxu0 %v2619_v14  ;;  %v2701_v13 = vpack.c.bf16 %v472_v7, %v471_v5  ;;  %v2671_v14 = vpack.c.bf16 %v458_v9, %v457_v8  ;;  %v516_v5 = vld [vmem:[%s4453_s1 + $0xe98] sm:$0xff]  ;;  %v41_v8 = vld [vmem:[%s4454_s0 + $0xc0] sm:$0xff] }
  0xc0   :  { %2652 = vmatprep.subr.bf16.mxu1 %v2651_v18  ;;  %v2703_v18 = vpack.c.bf16 %v490_v11, %v489_v10  ;;  %v548_v7 = vld [vmem:[%s4453_s1 + $0xf98] sm:$0xff]  ;;  %v43_v10 = vld [vmem:[%s4454_s0 + $0xd0] sm:$0xff] }
  0xc2   :  { %2622 = vmatpush3.bf16.msra.mxu0 %v2621_v24  ;;  %v2673_v24 = vpack.c.bf16 %v442_v16, %v441_v15  ;;  %v531_v15 = vld [vmem:[%s4453_s1 + $0xf10] sm:$0xff] }
  0xc3   :  { %2654 = vmatpush3.bf16.msra.mxu1 %v2653_v25  ;;  %2656 = vmatprep.subr.bf16.mxu0 %v2655_v26  ;;  %v2705_v25 = vpack.c.bf16 %v474_v19, %v473_v17  ;;  %v2675_v26 = vpack.c.bf16 %v460_v21, %v459_v20  ;;  %v532_v17 = vld [vmem:[%s4453_s1 + $0xf18] sm:$0xff]  ;;  %v518_v19 = vld [vmem:[%s4453_s1 + $0xea8] sm:$0xff]  ;;  %v549_v20 = vld [vmem:[%s4453_s1 + $0xfa0] sm:$0xff] }
  0xc4   :  { %2688 = vmatprep.subr.bf16.mxu1 %v2687_v30  ;;  %v2707_v30 = vpack.c.bf16 %v492_v23, %v491_v22  ;;  %v550_v21 = vld [vmem:[%s4453_s1 + $0xfa8] sm:$0xff] }
  0xc5   :  { %1326 = vmatmul.mubr.f32.vlgmr.msra.gmra.mrb[10].mxu0 %v37_v36  ;;  %v2677_v36 = vpack.c.bf16 %v444_v28, %v443_v27  ;;  %v46_v22 = vld [vmem:[%s4454_s0 + $0xe8] sm:$0xff]  ;;  %v501_v27 = vld [vmem:[%s4453_s1 + $0xe20] sm:$0xff] }
  0xc6   :  { %2658 = vmatpush3.bf16.msra.mxu0 %v2657_v37  ;;  %1396 = vmatmul.mubr.f32.vlgmr.msra.gmra.mrb[10].mxu1 %v39_v38  ;;  %v2709_v37 = vpack.c.bf16 %v476_v31, %v475_v29  ;;  %v2679_v38 = vpack.c.bf16 %v462_v33, %v461_v32  ;;  %v502_v28 = vld [vmem:[%s4453_s1 + $0xe28] sm:$0xff]  ;;  %v533_v29 = vld [vmem:[%s4453_s1 + $0xf20] sm:$0xff]  ;;  %v519_v32 = vld [vmem:[%s4453_s1 + $0xeb0] sm:$0xff] }
  0xc7   :  { %2690 = vmatpush3.bf16.msra.mxu1 %v2689_v39  ;;  %2660 = vmatprep.subr.bf16.mxu0 %v2659_v40  ;;  %v445_v39 = vld [vmem:[%s4453_s1 + $0xc60] sm:$0xff]  ;;  %v446_v40 = vld [vmem:[%s4453_s1 + $0xc68] sm:$0xff]  ;;  %v520_v33 = vld [vmem:[%s4453_s1 + $0xeb8] sm:$0xff] }
  0xc8   :  { %2692 = vmatprep.subr.bf16.mxu1 %v2691_v44  ;;  %1465 = vmatprep.mubr.f32.mxu0 %v42_v50  ;;  %v463_v44 = vld [vmem:[%s4453_s1 + $0xcf0] sm:$0xff]  ;;  %v2681_v48 = vpack.c.bf16 %v446_v40, %v445_v39  ;;  %v534_v31 = vld [vmem:[%s4453_s1 + $0xf28] sm:$0xff]  ;;  %v504_v40 = vld [vmem:[%s4453_s1 + $0xe38] sm:$0xff] }
  0xc9   :  { %1535 = vmatprep.mubr.f32.mxu1 %v44_v52  ;;  %v2683_v50 = vpack.c.bf16 %v464_v45, %v463_v44  ;;  %v448_v52 = vld [vmem:[%s4453_s1 + $0xc78] sm:$0xff]  ;;  %v503_v39 = vld [vmem:[%s4453_s1 + $0xe30] sm:$0xff]  ;;  %v521_v44 = vld [vmem:[%s4453_s1 + $0xec0] sm:$0xff] }
  0xca   :  { %2662 = vmatpush3.bf16.msra.mxu0 %v2661_v51  ;;  %v447_v51 = vld [vmem:[%s4453_s1 + $0xc70] sm:$0xff]  ;;  %v522_v45 = vld [vmem:[%s4453_s1 + $0xec8] sm:$0xff] }
  0xcb   :  { %2694 = vmatpush3.bf16.msra.mxu1 %v2693_v53  ;;  %2664 = vmatprep.subr.bf16.mxu0 %v2663_v54  ;;  %v479_v53 = vld [vmem:[%s4453_s1 + $0xd70] sm:$0xff]  ;;  %v2715_v54 = vpack.c.bf16 %v496_v47, %v495_v46  ;;  %v2685_v60 = vpack.c.bf16 %v448_v52, %v447_v51  ;;  %v553_v46 = vld [vmem:[%s4453_s1 + $0xfc0] sm:$0xff]  ;;  %v554_v47 = vld [vmem:[%s4453_s1 + $0xfc8] sm:$0xff] }
  0xcc   :  { %2696 = vmatprep.subr.bf16.mxu1 %v2695_v58  ;;  %v545_v58 = vld [vmem:[%s4453_s1 + $0xf80] sm:$0xff]  ;;  %v2717_v61 = vpack.c.bf16 %v480_v55, %v479_v53  ;;  %v506_v52 = vld [vmem:[%s4453_s1 + $0xe48] sm:$0xff] }
  0xcd   :  { %v505_v51 = vld [vmem:[%s4453_s1 + $0xe40] sm:$0xff]  ;;  %v538_v55 = vld [vmem:[%s4453_s1 + $0xf48] sm:$0xff] }
  0xce   :  { %2666 = vmatpush3.bf16.msra.mxu0 %v2665_v0  ;;  %v498_v0 = vld [vmem:[%s4453_s1 + $0xe08] sm:$0xff]  ;;  %v537_v53 = vld [vmem:[%s4453_s1 + $0xf40] sm:$0xff] }
  0xcf   :  { %2698 = vmatpush3.bf16.msra.mxu1 %v2697_v1  ;;  %2668 = vmatprep.subr.bf16.mxu0 %v2667_v2  ;;  %v529_v1 = vld [vmem:[%s4453_s1 + $0xf00] sm:$0xff]  ;;  %v2751_v2 = vpack.c.bf16 %v546_v59, %v545_v58  ;;  %v2721_v9 = vpack.c.bf16 %v498_v0, %v497_v63  ;;  %v555_v58 = vld [vmem:[%s4453_s1 + $0xfd0] sm:$0xff]  ;;  %v556_v59 = vld [vmem:[%s4453_s1 + $0xfd8] sm:$0xff] }
  0xd0   :  { %2700 = vmatprep.subr.bf16.mxu1 %v2699_v6  ;;  %v547_v6 = vld [vmem:[%s4453_s1 + $0xf90] sm:$0xff]  ;;  %v2753_v11 = vpack.c.bf16 %v530_v3, %v529_v1  ;;  %v508_v0 = vld [vmem:[%s4453_s1 + $0xe58] sm:$0xff] }
  0xd1   :  { %v2755_v16 = vpack.c.bf16 %v548_v7, %v547_v6  ;;  %v507_v63 = vld [vmem:[%s4453_s1 + $0xe50] sm:$0xff]  ;;  %v540_v3 = vld [vmem:[%s4453_s1 + $0xf58] sm:$0xff]  ;;  %v557_v6 = vld [vmem:[%s4453_s1 + $0xfe0] sm:$0xff] }
  0xd2   :  { %2670 = vmatpush3.bf16.msra.mxu0 %v2669_v12  ;;  %v2723_v12 = vpack.c.bf16 %v516_v5, %v515_v4  ;;  %v539_v1 = vld [vmem:[%s4453_s1 + $0xf50] sm:$0xff]  ;;  %v525_v4 = vld [vmem:[%s4453_s1 + $0xee0] sm:$0xff]  ;;  %v526_v5 = vld [vmem:[%s4453_s1 + $0xee8] sm:$0xff] }
  0xd3   :  { %2702 = vmatpush3.bf16.msra.mxu1 %v2701_v13  ;;  %2672 = vmatprep.subr.bf16.mxu0 %v2671_v14  ;;  %v499_v13 = vld [vmem:[%s4453_s1 + $0xe10] sm:$0xff]  ;;  %v500_v14 = vld [vmem:[%s4453_s1 + $0xe18] sm:$0xff]  ;;  %v558_v7 = vld [vmem:[%s4453_s1 + $0xfe8] sm:$0xff] }
  0xd4   :  { %2704 = vmatprep.subr.bf16.mxu1 %v2703_v18  ;;  %v517_v18 = vld [vmem:[%s4453_s1 + $0xea0] sm:$0xff]  ;;  %v2725_v23 = vpack.c.bf16 %v500_v14, %v499_v13 }
  0xd5   :  { %v541_v13 = vld [vmem:[%s4453_s1 + $0xf60] sm:$0xff] }
  0xd6   :  { %2674 = vmatpush3.bf16.msra.mxu0 %v2673_v24  ;;  %v48_v24 = vld [vmem:[%s4454_s0 + $0xf8] sm:$0xff] }
  0xd7   :  { %2706 = vmatpush3.bf16.msra.mxu1 %v2705_v25  ;;  %2676 = vmatprep.subr.bf16.mxu0 %v2675_v26  ;;  %v2757_v25 = vpack.c.bf16 %v532_v17, %v531_v15  ;;  %v2727_v26 = vpack.c.bf16 %v518_v19, %v517_v18  ;;  %v2775_v15 = vpack.c.bf16 %v558_v7, %v557_v6  ;;  %v527_v17 = vld [vmem:[%s4453_s1 + $0xef0] sm:$0xff]  ;;  %v528_v18 = vld [vmem:[%s4453_s1 + $0xef8] sm:$0xff] }
  0xd8   :  { %2708 = vmatprep.subr.bf16.mxu1 %v2707_v30  ;;  %v2759_v30 = vpack.c.bf16 %v550_v21, %v549_v20  ;;  %v559_v21 = vld [vmem:[%s4453_s1 + $0xff0] sm:$0xff] }
  0xda   :  { %2678 = vmatpush3.bf16.msra.mxu0 %v2677_v36  ;;  %v2729_v36 = vpack.c.bf16 %v502_v28, %v501_v27  ;;  %v2747_v28 = vpack.c.bf16 %v528_v18, %v527_v17 }
  0xdb   :  { %2710 = vmatpush3.bf16.msra.mxu1 %v2709_v37  ;;  %2680 = vmatprep.subr.bf16.mxu0 %v2679_v38  ;;  %v2761_v37 = vpack.c.bf16 %v534_v31, %v533_v29  ;;  %v2731_v38 = vpack.c.bf16 %v520_v33, %v519_v32  ;;  %v511_v29 = vld [vmem:[%s4453_s1 + $0xe70] sm:$0xff]  ;;  %v544_v33 = vld [vmem:[%s4453_s1 + $0xf78] sm:$0xff] }
  0xdc   :  { %2712 = vmatprep.subr.bf16.mxu1 %v2711_v42  ;;  %v2763_v42 = vpack.c.bf16 %v552_v35, %v551_v34  ;;  %v543_v32 = vld [vmem:[%s4453_s1 + $0xf70] sm:$0xff] }
  0xde   :  { %2682 = vmatpush3.bf16.msra.mxu0 %v2681_v48  ;;  %v2733_v48 = vpack.c.bf16 %v504_v40, %v503_v39 }
  0xdf   :  { %2714 = vmatpush3.bf16.msra.mxu1 %v2713_v49  ;;  %2684 = vmatprep.subr.bf16.mxu0 %v2683_v50  ;;  %v2765_v49 = vpack.c.bf16 %v536_v43, %v535_v41  ;;  %v2735_v50 = vpack.c.bf16 %v522_v45, %v521_v44 }
  0xe0   :  { %2716 = vmatprep.subr.bf16.mxu1 %v2715_v54  ;;  %v2767_v54 = vpack.c.bf16 %v554_v47, %v553_v46 }
  0xe2   :  { %2686 = vmatpush3.bf16.msra.mxu0 %v2685_v60  ;;  %v2737_v60 = vpack.c.bf16 %v506_v52, %v505_v51 }
  0xe3   :  { %2718 = vmatpush3.bf16.msra.mxu1 %v2717_v61  ;;  %2720 = vmatprep.subr.bf16.mxu0 %v2719_v62  ;;  %v2769_v61 = vpack.c.bf16 %v538_v55, %v537_v53  ;;  %v2739_v62 = vpack.c.bf16 %v524_v57, %v523_v56 }
  0xe4   :  { %2752 = vmatprep.subr.bf16.mxu1 %v2751_v2  ;;  %v2771_v2 = vpack.c.bf16 %v556_v59, %v555_v58 }
  0xe5   :  { %1466 = vmatmul.mubr.f32.vlgmr.msra.gmra.mrb[12].mxu0 %v41_v8  ;;  %v2741_v8 = vpack.c.bf16 %v508_v0, %v507_v63 }
  0xe6   :  { %2722 = vmatpush3.bf16.msra.mxu0 %v2721_v9  ;;  %1536 = vmatmul.mubr.f32.vlgmr.msra.gmra.mrb[12].mxu1 %v43_v10  ;;  %v2773_v9 = vpack.c.bf16 %v540_v3, %v539_v1  ;;  %v2743_v10 = vpack.c.bf16 %v526_v5, %v525_v4 }
  0xe7   :  { %2754 = vmatpush3.bf16.msra.mxu1 %v2753_v11  ;;  %2724 = vmatprep.subr.bf16.mxu0 %v2723_v12  ;;  %v509_v11 = vld [vmem:[%s4453_s1 + $0xe60] sm:$0xff]  ;;  %v510_v12 = vld [vmem:[%s4453_s1 + $0xe68] sm:$0xff] }
  0xe8   :  { %2756 = vmatprep.subr.bf16.mxu1 %v2755_v16  ;;  %1605 = vmatprep.mubr.f32.mxu0 %v46_v22  ;;  %v542_v16 = vld [vmem:[%s4453_s1 + $0xf68] sm:$0xff]  ;;  %v560_v22 = vld [vmem:[%s4453_s1 + $0xff8] sm:$0xff] }
  0xe9   :  { %1675 = vmatprep.mubr.f32.mxu1 %v48_v24  ;;  %v2777_v27 = vpack.c.bf16 %v542_v16, %v541_v13  ;;  %v2779_v31 = vpack.c.bf16 %v560_v22, %v559_v21 }
  0xea   :  { %2726 = vmatpush3.bf16.msra.mxu0 %v2725_v23 }
  0xeb   :  { %2758 = vmatpush3.bf16.msra.mxu1 %v2757_v25  ;;  %2728 = vmatprep.subr.bf16.mxu0 %v2727_v26  ;;  %v2745_v25 = vpack.c.bf16 %v510_v12, %v509_v11 }
  0xec   :  { %2760 = vmatprep.subr.bf16.mxu1 %v2759_v30  ;;  %v512_v30 = vld [vmem:[%s4453_s1 + $0xe78] sm:$0xff] }
  0xed   :  { %v2749_v35 = vpack.c.bf16 %v512_v30, %v511_v29  ;;  %v1708_v30 = vld [vmem:[%s4455_s2] ss:$0 sm:$0xff] }
  0xee   :  { %2730 = vmatpush3.bf16.msra.mxu0 %v2729_v36  ;;  %v2781_v36 = vpack.c.bf16 %v544_v33, %v543_v32  ;;  %v1709_v32 = vld [vmem:[%s4456_s3] ss:$0 sm:$0xff] }
  0xef   :  { %2762 = vmatpush3.bf16.msra.mxu1 %v2761_v37  ;;  %2732 = vmatprep.subr.bf16.mxu0 %v2731_v38  ;;  %v45_v37 = vld [vmem:[%s4454_s0 + $0xe0] sm:$0xff]  ;;  %v47_v38 = vld [vmem:[%s4454_s0 + $0xf0] sm:$0xff] }
  0xf0   :  { %2764 = vmatprep.subr.bf16.mxu1 %v2763_v42 }
  0xf2   :  { %2734 = vmatpush3.bf16.msra.mxu0 %v2733_v48 }
  0xf3   :  { %2766 = vmatpush3.bf16.msra.mxu1 %v2765_v49  ;;  %2736 = vmatprep.subr.bf16.mxu0 %v2735_v50 }
  0xf4   :  { %2768 = vmatprep.subr.bf16.mxu1 %v2767_v54 }
  0xf6   :  { %2738 = vmatpush3.bf16.msra.mxu0 %v2737_v60 }
  0xf7   :  { %2770 = vmatpush3.bf16.msra.mxu1 %v2769_v61  ;;  %2740 = vmatprep.subr.bf16.mxu0 %v2739_v62 }
  0xf8   :  { %v1743_v14 = vpop.f32.mrb[0].mxu0  ;;  %2772 = vmatprep.subr.bf16.mxu1 %v2771_v2 }
  0xf9   :  { %v1778_v19 = vpop.f32.mrb[0].mxu1  ;;  %v1744_v20 = vpop.f32.mrb[1].mxu0 }
  0xfa   :  { %v1745_v23 = vadd.f32 %v1744_v20, %v1743_v14  ;;  %v1779_v24 = vpop.f32.mrb[1].mxu1  ;;  %2742 = vmatpush3.bf16.msra.mxu0 %v2741_v8 }
  0xfb   :  { %v1780_v26 = vadd.f32 %v1779_v24, %v1778_v19  ;;  %2774 = vmatpush3.bf16.msra.mxu1 %v2773_v9  ;;  %2744 = vmatprep.subr.bf16.mxu0 %v2743_v10 }
  0xfc   :  { %2776 = vmatprep.subr.bf16.mxu1 %v2775_v15 }
  0xfd   :  { %v698_v34 = vadd.f32 %v1780_v26, %v1745_v23 }
  0xfe   :  { %2746 = vmatpush3.bf16.msra.mxu0 %v2745_v25 }
  0xff   :  { %2778 = vmatpush3.bf16.msra.mxu1 %v2777_v27  ;;  %2748 = vmatprep.subr.bf16.mxu0 %v2747_v28 }
 0x100   :  { %2780 = vmatprep.subr.bf16.mxu1 %v2779_v31 }
 0x102   :  { %2750 = vmatpush3.bf16.msra.mxu0 %v2749_v35 }
 0x103   :  { %2782 = vmatpush3.bf16.msra.mxu1 %v2781_v36 }
 0x105   :  { %1606 = vmatmul.mubr.f32.vlgmr.msra.gmra.mrb[14].mxu0 %v45_v37 }
 0x106   :  { %1676 = vmatmul.mubr.f32.vlgmr.msra.gmra.mrb[14].mxu1 %v47_v38 }
 0x118   :  { %v1813_v39 = vpop.f32.mrb[2].mxu0 }
 0x119   :  { %v1814_v40 = vpop.f32.mrb[3].mxu0  ;;  %v1848_v41 = vpop.f32.mrb[2].mxu1 }
 0x11a   :  { %v1815_v42 = vadd.f32 %v1814_v40, %v1813_v39  ;;  %v1849_v43 = vpop.f32.mrb[3].mxu1 }
 0x11b   :  { %v1850_v44 = vadd.f32 %v1849_v43, %v1848_v41 }
 0x11c   :  { %v768_v45 = vadd.f32 %v1815_v42, %v698_v34 }
 0x11e   :  { %v838_v46 = vadd.f32 %v1850_v44, %v768_v45 }
 0x138   :  { %v1883_v47 = vpop.f32.mrb[4].mxu0 }
 0x139   :  { %v1884_v48 = vpop.f32.mrb[5].mxu0  ;;  %v1918_v49 = vpop.f32.mrb[4].mxu1 }
 0x13a   :  { %v1885_v50 = vadd.f32 %v1884_v48, %v1883_v47  ;;  %v1919_v51 = vpop.f32.mrb[5].mxu1 }
 0x13b   :  { %v1920_v52 = vadd.f32 %v1919_v51, %v1918_v49 }
 0x13c   :  { %v908_v53 = vadd.f32 %v1885_v50, %v838_v46 }
 0x13e   :  { %v978_v54 = vadd.f32 %v1920_v52, %v908_v53 }
 0x158   :  { %v1953_v55 = vpop.f32.mrb[6].mxu0 }
 0x159   :  { %v1954_v56 = vpop.f32.mrb[7].mxu0  ;;  %v1988_v57 = vpop.f32.mrb[6].mxu1 }
 0x15a   :  { %v1955_v58 = vadd.f32 %v1954_v56, %v1953_v55  ;;  %v1989_v59 = vpop.f32.mrb[7].mxu1 }
 0x15b   :  { %v1990_v60 = vadd.f32 %v1989_v59, %v1988_v57 }
 0x15c   :  { %v1048_v61 = vadd.f32 %v1955_v58, %v978_v54 }
 0x15e   :  { %v1118_v62 = vadd.f32 %v1990_v60, %v1048_v61 }
 0x178   :  { %v2023_v63 = vpop.f32.mrb[8].mxu0 }
 0x179   :  { %v2024_v0 = vpop.f32.mrb[9].mxu0  ;;  %v2058_v1 = vpop.f32.mrb[8].mxu1 }
 0x17a   :  { %v2025_v2 = vadd.f32 %v2024_v0, %v2023_v63  ;;  %v2059_v3 = vpop.f32.mrb[9].mxu1 }
 0x17b   :  { %v2060_v4 = vadd.f32 %v2059_v3, %v2058_v1 }
 0x17c   :  { %v1188_v5 = vadd.f32 %v2025_v2, %v1118_v62 }
 0x17e   :  { %v1258_v6 = vadd.f32 %v2060_v4, %v1188_v5 }
 0x198   :  { %v2093_v7 = vpop.f32.mrb[10].mxu0 }
 0x199   :  { %v2094_v8 = vpop.f32.mrb[11].mxu0  ;;  %v2128_v9 = vpop.f32.mrb[10].mxu1 }
 0x19a   :  { %v2095_v10 = vadd.f32 %v2094_v8, %v2093_v7  ;;  %v2129_v11 = vpop.f32.mrb[11].mxu1 }
 0x19b   :  { %v2130_v12 = vadd.f32 %v2129_v11, %v2128_v9 }
 0x19c   :  { %v1328_v13 = vadd.f32 %v2095_v10, %v1258_v6 }
 0x19e   :  { %v1398_v14 = vadd.f32 %v2130_v12, %v1328_v13 }
 0x1b8   :  { %v2163_v15 = vpop.f32.mrb[12].mxu0 }
 0x1b9   :  { %v2164_v16 = vpop.f32.mrb[13].mxu0  ;;  %v2198_v17 = vpop.f32.mrb[12].mxu1 }
 0x1ba   :  { %v2165_v18 = vadd.f32 %v2164_v16, %v2163_v15  ;;  %v2199_v19 = vpop.f32.mrb[13].mxu1 }
 0x1bb   :  { %v2200_v20 = vadd.f32 %v2199_v19, %v2198_v17 }
 0x1bc   :  { %v1468_v21 = vadd.f32 %v2165_v18, %v1398_v14 }
 0x1be   :  { %v1538_v22 = vadd.f32 %v2200_v20, %v1468_v21 }
 0x1d8   :  { %v2233_v23 = vpop.f32.mrb[14].mxu0 }
 0x1d9   :  { %v2234_v24 = vpop.f32.mrb[15].mxu0  ;;  %v2268_v25 = vpop.f32.mrb[14].mxu1 }
 0x1da   :  { %v2235_v26 = vadd.f32 %v2234_v24, %v2233_v23  ;;  %v2269_v27 = vpop.f32.mrb[15].mxu1 }
 0x1db   :  { %v2270_v28 = vadd.f32 %v2269_v27, %v2268_v25 }
 0x1dc   :  { %v1608_v29 = vadd.f32 %v2235_v26, %v1538_v22 }
 0x1de   :  { %v1678_v31 = vadd.f32 %v2270_v28, %v1608_v29 }
 0x1e0   :  { %v1689_v33 = vmul.f32 %v1708_v30, %v1678_v31 }
 0x1e2   :  { %v1696_v34 = vadd.f32 %v1709_v32, %v1689_v33 }
 0x1e4   :  { %v1710_v35 = vmul.f32 -1.442695, %v1696_v34 }
 0x1e6   :  { %2783 = vpow2.f32 %v1710_v35 }
 0x1f0   :  { %v2784_v36 = vpop.eup %2783 }
 0x1f1   :  { %v1700_v37 = vadd.f32 1.0, %v2784_v36 }
 0x1f3   :  { %2785 = vrcp.f32 %v1700_v37 }
 0x1fd   :  { %v2786_v38 = vpop.eup %2785 }
 0x1fe   :  { %1703 = vst [vmem:[%s4457_s4] sm:$0xff] %v2786_v38 }

</bundles_post_ra>
